<compile_context>
chip_gen: v7x
topology: tpu7x:2x2x1
jax: 0.10.0
libtpu: 0.0.40
codegen_flags: <defaults>
</compile_context>

<pallas_src>
import jax
import jax.numpy as jnp
from jax.experimental import pallas as pl
from jax.experimental.pallas import tpu as pltpu

# ----------------------------- model hyper-params -----------------------------
NUM_STEP_MESSAGE_PASSING = 3
NUM_STEP_SET2SET = 3
NUM_LAYER_SET2SET = 1  # single-layer Set2Set LSTM (only case implemented)

F32 = jnp.float32


# --------------------------------- fused kernel --------------------------------
def _mpnn_kernel(node_ref, edge_ref, src1h_ref, dst1h_ref,
                 proj_w_ref, proj_b_ref,
                 msg_w_ref, msg_b_ref, nnconv_b_ref,
                 gru_w_ref, gru_b_ref,
                 lstm_w_ref, lstm_b_ref,
                 sp_w_ref, sp_b_ref, prelu_a_ref,
                 out_ref):
    H = proj_w_ref.shape[1]          # hidden_feats
    D = 2 * H                        # Set2Set input_dim
    E, C = edge_ref.shape

    # ---- project_node_feats: Linear(node_in -> H) + ReLU ---------------------
    h0 = jnp.maximum(
        jnp.dot(node_ref[...], proj_w_ref[...], preferred_element_type=F32)
        + proj_b_ref[...], 0.0)                                        # [N, H]

    # ---- expanded edge features (built once, reused every MP step) ------------
    # ef_exp[:, c*H + hh] = ef[:, c]
    ef = edge_ref[...]                                                 # [E, C]
    ef_exp = jnp.concatenate(
        [jnp.broadcast_to(ef[:, c:c + 1], (E, H)) for c in range(C)],
        axis=1)                                                        # [E, C*H]

    # ---- message passing: NNConv('sum') + bias + ReLU, then GRU cell ----------
    h = h0            # node features
    hidden = h0       # GRU hidden state
    for _ in range(NUM_STEP_MESSAGE_PASSING):
        # gather source-node features for every edge (MXU)
        h_src = jnp.dot(src1h_ref[...], h, preferred_element_type=F32)       # [E, H]

        # outer-product reformulation of the NNConv messages:
        #   msgs[e,k] = sum_{c,hh} ef[e,c]*h_src[e,hh]*edge_w[c, hh*H+k]
        #             + sum_{hh}   h_src[e,hh]*edge_b[hh*H+k]
        z = ef_exp * jnp.concatenate([h_src] * C, axis=1)                     # [E, C*H]
        msgs = (jnp.dot(z, msg_w_ref[...], preferred_element_type=F32)
                + jnp.dot(h_src, msg_b_ref[...], preferred_element_type=F32)) # [E, H]

        # scatter-add to destination nodes (MXU) + bias + ReLU
        agg = jnp.dot(dst1h_ref[...], msgs, preferred_element_type=F32)       # [N, H]
        m = jnp.maximum(agg + nnconv_b_ref[...], 0.0)

        # GRU cell (PyTorch gate order r, z, n) — single block-diagonal matmul
        # producing [gi | gh] so gi_n / gh_n stay separate for the n gate.
        mh = jnp.concatenate([m, hidden], axis=1)                             # [N, 2H]
        gates = (jnp.dot(mh, gru_w_ref[...], preferred_element_type=F32)
                 + gru_b_ref[...])                                            # [N, 6H]
        gi = gates[:, 0:3 * H]
        gh = gates[:, 3 * H:6 * H]
        r = jax.nn.sigmoid(gi[:, 0:H] + gh[:, 0:H])
        u = jax.nn.sigmoid(gi[:, H:2 * H] + gh[:, H:2 * H])
        n = jnp.tanh(gi[:, 2 * H:3 * H] + r * gh[:, 2 * H:3 * H])
        hidden = (1.0 - u) * n + u * hidden
        h = hidden

    # ---- Set2Set readout -------------------------------------------------------
    feat = jnp.concatenate([h0, h], axis=1)                                   # [N, D]
    featT = jnp.transpose(feat)      # hoisted out of the Set2Set loop        # [D, N]

    q = jnp.zeros((1, D), F32)        # LSTM output of previous iteration
    readout = jnp.zeros((1, D), F32)  # attention-weighted readout
    h_l = jnp.zeros((1, D), F32)
    c_l = jnp.zeros((1, D), F32)
    for _ in range(NUM_STEP_SET2SET):
        # LSTM cell on q_star = [q | readout]; one matmul on [q|readout|h_l]
        x = jnp.concatenate([q, readout, h_l], axis=1)                        # [1, 3D]
        gates = (jnp.dot(x, lstm_w_ref[...], preferred_element_type=F32)
                 + lstm_b_ref[...])                                           # [1, 4D]
        i_g = jax.nn.sigmoid(gates[:, 0:D])
        f_g = jax.nn.sigmoid(gates[:, D:2 * D])
        g_g = jnp.tanh(gates[:, 2 * D:3 * D])
        o_g = jax.nn.sigmoid(gates[:, 3 * D:4 * D])
        c_l = f_g * c_l + i_g * g_g
        h_l = o_g * jnp.tanh(c_l)
        q = h_l                                                               # [1, D]

        # attention scores (lane-dense [1, N]), softmax over lanes
        e = jnp.dot(q, featT, preferred_element_type=F32)                     # [1, N]
        e = e - jnp.max(e, axis=-1, keepdims=True)
        p = jnp.exp(e)
        alpha = p * pl.reciprocal(jnp.sum(p, axis=-1, keepdims=True), approx=True)
        # weighted readout (MXU)
        readout = jnp.dot(alpha, feat, preferred_element_type=F32)            # [1, D]

    # ---- sparsify: Linear(4H -> R) on q_star = [q | readout], then PReLU -------
    q_star = jnp.concatenate([q, readout], axis=1)                            # [1, 2D]
    y = (jnp.dot(q_star, sp_w_ref[...], preferred_element_type=F32)
         + sp_b_ref[...])                                                     # [1, R]
    out_ref[...] = jnp.where(y >= 0.0, y, prelu_a_ref[...] * y)


# ------------------------------ pallas_call glue --------------------------------
def mpnn_forward(params, node_feats, edge_feats, src1h, dst1h):
    R = params["sp_b"].shape[1]

    args = (node_feats, edge_feats, src1h, dst1h,
            params["proj_w"], params["proj_b"],
            params["msg_w"], params["msg_b"], params["nnconv_b"],
            params["gru_w"], params["gru_b"],
            params["lstm_w"], params["lstm_b"],
            params["sp_w"], params["sp_b"], params["prelu_a"])

    vmem = pl.BlockSpec(memory_space=pltpu.MemorySpace.VMEM)
    return pl.pallas_call(
        _mpnn_kernel,
        out_shape=jax.ShapeDtypeStruct((1, R), F32),
        in_specs=[vmem] * len(args),
        out_specs=vmem,
    )(*args)


# --------------------------------- parameters ----------------------------------
def init_params(key, node_in, edge_in, hidden, readout_feats):
    H = hidden
    D = 2 * H
    C = edge_in
    ks = jax.random.split(key, 16)

    def u(k, shape, fan_in):
        b = 1.0 / float(fan_in) ** 0.5
        return jax.random.uniform(k, shape, F32, -b, b)

    p = {}
    # project_node_feats: Linear(node_in -> H) (+ ReLU in kernel)
    p["proj_w"] = u(ks[0], (node_in, H), node_in)
    p["proj_b"] = u(ks[1], (1, H), node_in)

    # edge network Linear(C -> H*H), folded into the message matmul:
    #   msgs = z @ msg_w + h_src @ msg_b, z[e, c*H+hh] = ef[e,c]*h_src[e,hh]
    edge_w = u(ks[2], (C, H * H), C)                     # transposed Linear weight
    edge_b = u(ks[3], (1, H * H), C)
    p["msg_w"] = edge_w.reshape(C, H, H).reshape(C * H, H)   # [C*H, H]
    p["msg_b"] = edge_b.reshape(H, H)                        # [H, H]

    # NNConv bias
    p["nnconv_b"] = u(ks[4], (1, H), H)

    # GRU(H, H): gate order (r, z, n); block-diagonal merged weight so that
    # [m | hidden] @ gru_w -> [gi | gh] in a single contraction.
    wih = u(ks[5], (H, 3 * H), H)
    whh = u(ks[6], (H, 3 * H), H)
    gru_w = jnp.zeros((2 * H, 6 * H), F32)
    gru_w = gru_w.at[0:H, 0:3 * H].set(wih)
    gru_w = gru_w.at[H:2 * H, 3 * H:6 * H].set(whh)
    p["gru_w"] = gru_w
    p["gru_b"] = jnp.concatenate([u(ks[7], (1, 3 * H), H),
                                  u(ks[8], (1, 3 * H), H)], axis=1)   # [1, 6H]

    # Set2Set LSTM(input=2D, hidden=D): gate order (i, f, g, o); rows stacked
    # [0:2D] input weights (on q_star = [q | readout]), [2D:3D] hidden weights.
    lwih = u(ks[9], (2 * D, 4 * D), D)
    lwhh = u(ks[10], (D, 4 * D), D)
    p["lstm_w"] = jnp.concatenate([lwih, lwhh], axis=0)               # [3D, 4D]
    p["lstm_b"] = u(ks[11], (1, 4 * D), D) + u(ks[12], (1, 4 * D), D)

    # sparsify: Linear(4H -> readout_feats) + PReLU (single alpha, init 0.25)
    p["sp_w"] = u(ks[13], (4 * H, readout_feats), 4 * H)              # [2D, R]
    p["sp_b"] = u(ks[14], (1, readout_feats), 4 * H)
    p["prelu_a"] = jnp.full((1, 1), 0.25, F32)
    return p


# ------------------------------------ main --------------------------------------
if __name__ == "__main__":
    key = jax.random.PRNGKey(0)
    keys = jax.random.split(key, 8)

    # small synthetic graph (single graph in the batch)
    N, E = 24, 48
    NODE_IN, EDGE_IN, HIDDEN, READOUT = 16, 8, 32, 128

    node_feats = jax.random.normal(keys[0], (N, NODE_IN), F32)
    edge_feats = jax.random.normal(keys[1], (E, EDGE_IN), F32)
    src = jax.random.randint(keys[2], (E,), 0, N)
    dst = jax.random.randint(keys[3], (E,), 0, N)
    src1h = jax.nn.one_hot(src, N, dtype=F32)                    # [E, N] gather
    dst1h = jnp.transpose(jax.nn.one_hot(dst, N, dtype=F32))     # [N, E] scatter-add

    params = init_params(keys[4], NODE_IN, EDGE_IN, HIDDEN, READOUT)

    fwd = jax.jit(mpnn_forward)
    out = jax.block_until_ready(fwd(params, node_feats, edge_feats, src1h, dst1h))

    assert out.shape == (1, READOUT), out.shape
    assert out.dtype == F32
    assert bool(jnp.all(jnp.isfinite(out)))
    print("KERNEL_OK")
</pallas_src>

<mosaic_0001>
module attributes {stable_mosaic.version = 11 : i64} {
  func.func @_mpnn_kernel(%arg0: memref<24x16xf32, #tpu.memory_space<vmem>>, %arg1: memref<48x8xf32, #tpu.memory_space<vmem>>, %arg2: memref<48x24xf32, #tpu.memory_space<vmem>>, %arg3: memref<24x48xf32, #tpu.memory_space<vmem>>, %arg4: memref<16x32xf32, #tpu.memory_space<vmem>>, %arg5: memref<1x32xf32, #tpu.memory_space<vmem>>, %arg6: memref<256x32xf32, #tpu.memory_space<vmem>>, %arg7: memref<32x32xf32, #tpu.memory_space<vmem>>, %arg8: memref<1x32xf32, #tpu.memory_space<vmem>>, %arg9: memref<64x192xf32, #tpu.memory_space<vmem>>, %arg10: memref<1x192xf32, #tpu.memory_space<vmem>>, %arg11: memref<192x256xf32, #tpu.memory_space<vmem>>, %arg12: memref<1x256xf32, #tpu.memory_space<vmem>>, %arg13: memref<128x128xf32, #tpu.memory_space<vmem>>, %arg14: memref<1x128xf32, #tpu.memory_space<vmem>>, %arg15: memref<1x1xf32, #tpu.memory_space<vmem>>, %arg16: memref<1x128xf32, #tpu.memory_space<vmem>>) attributes {dimension_semantics = [], scalar_prefetch = 0 : i64, scratch_operands = 0 : i64, tpu.core_type = #tpu.core_type<tc>} {
    %c0 = arith.constant 0 : index
    %c0_0 = arith.constant 0 : index
    %0 = vector.load %arg0[%c0, %c0_0] : memref<24x16xf32, #tpu.memory_space<vmem>>, vector<24x16xf32>
    %c0_1 = arith.constant 0 : index
    %c0_2 = arith.constant 0 : index
    %1 = vector.load %arg4[%c0_1, %c0_2] : memref<16x32xf32, #tpu.memory_space<vmem>>, vector<16x32xf32>
    %cst = arith.constant dense<0.000000e+00> : vector<24x32xf32>
    %2 = tpu.matmul %0, %1, %cst {dimension_numbers = #tpu.dot_dimension_numbers<[1], [0], [0], [1], [0, 0, 1, 1], [], []>} : vector<24x16xf32>, vector<16x32xf32>, vector<24x32xf32> -> vector<24x32xf32>
    %c0_3 = arith.constant 0 : index
    %c0_4 = arith.constant 0 : index
    %3 = vector.load %arg5[%c0_3, %c0_4] : memref<1x32xf32, #tpu.memory_space<vmem>>, vector<1x32xf32>
    %4 = vector.broadcast %3 : vector<1x32xf32> to vector<24x32xf32>
    %5 = arith.addf %2, %4 : vector<24x32xf32>
    %cst_5 = arith.constant 0.000000e+00 : f32
    %6 = vector.broadcast %cst_5 : f32 to vector<24x32xf32>
    %7 = arith.maximumf %5, %6 : vector<24x32xf32>
    %c0_6 = arith.constant 0 : index
    %c0_7 = arith.constant 0 : index
    %8 = vector.load %arg1[%c0_6, %c0_7] : memref<48x8xf32, #tpu.memory_space<vmem>>, vector<48x8xf32>
    %9 = vector.extract_strided_slice %8 {offsets = [0, 0], sizes = [48, 1], strides = [1, 1]} : vector<48x8xf32> to vector<48x1xf32>
    %10 = vector.shape_cast %9 : vector<48x1xf32> to vector<48x1xf32>
    %11 = vector.broadcast %10 : vector<48x1xf32> to vector<48x32xf32>
    %12 = vector.extract_strided_slice %8 {offsets = [0, 1], sizes = [48, 1], strides = [1, 1]} : vector<48x8xf32> to vector<48x1xf32>
    %13 = vector.shape_cast %12 : vector<48x1xf32> to vector<48x1xf32>
    %14 = vector.broadcast %13 : vector<48x1xf32> to vector<48x32xf32>
    %15 = vector.extract_strided_slice %8 {offsets = [0, 2], sizes = [48, 1], strides = [1, 1]} : vector<48x8xf32> to vector<48x1xf32>
    %16 = vector.shape_cast %15 : vector<48x1xf32> to vector<48x1xf32>
    %17 = vector.broadcast %16 : vector<48x1xf32> to vector<48x32xf32>
    %18 = vector.extract_strided_slice %8 {offsets = [0, 3], sizes = [48, 1], strides = [1, 1]} : vector<48x8xf32> to vector<48x1xf32>
    %19 = vector.shape_cast %18 : vector<48x1xf32> to vector<48x1xf32>
    %20 = vector.broadcast %19 : vector<48x1xf32> to vector<48x32xf32>
    %21 = vector.extract_strided_slice %8 {offsets = [0, 4], sizes = [48, 1], strides = [1, 1]} : vector<48x8xf32> to vector<48x1xf32>
    %22 = vector.shape_cast %21 : vector<48x1xf32> to vector<48x1xf32>
    %23 = vector.broadcast %22 : vector<48x1xf32> to vector<48x32xf32>
    %24 = vector.extract_strided_slice %8 {offsets = [0, 5], sizes = [48, 1], strides = [1, 1]} : vector<48x8xf32> to vector<48x1xf32>
    %25 = vector.shape_cast %24 : vector<48x1xf32> to vector<48x1xf32>
    %26 = vector.broadcast %25 : vector<48x1xf32> to vector<48x32xf32>
    %27 = vector.extract_strided_slice %8 {offsets = [0, 6], sizes = [48, 1], strides = [1, 1]} : vector<48x8xf32> to vector<48x1xf32>
    %28 = vector.shape_cast %27 : vector<48x1xf32> to vector<48x1xf32>
    %29 = vector.broadcast %28 : vector<48x1xf32> to vector<48x32xf32>
    %30 = vector.extract_strided_slice %8 {offsets = [0, 7], sizes = [48, 1], strides = [1, 1]} : vector<48x8xf32> to vector<48x1xf32>
    %31 = vector.shape_cast %30 : vector<48x1xf32> to vector<48x1xf32>
    %32 = vector.broadcast %31 : vector<48x1xf32> to vector<48x32xf32>
    %33 = tpu.concatenate %11, %14, %17, %20, %23, %26, %29, %32 in 1 : vector<48x32xf32>, vector<48x32xf32>, vector<48x32xf32>, vector<48x32xf32>, vector<48x32xf32>, vector<48x32xf32>, vector<48x32xf32>, vector<48x32xf32> -> vector<48x256xf32>
    %c0_8 = arith.constant 0 : index
    %c0_9 = arith.constant 0 : index
    %34 = vector.load %arg2[%c0_8, %c0_9] : memref<48x24xf32, #tpu.memory_space<vmem>>, vector<48x24xf32>
    %cst_10 = arith.constant dense<0.000000e+00> : vector<48x32xf32>
    %35 = tpu.matmul %34, %7, %cst_10 {dimension_numbers = #tpu.dot_dimension_numbers<[1], [0], [0], [1], [0, 0, 1, 1], [], []>} : vector<48x24xf32>, vector<24x32xf32>, vector<48x32xf32> -> vector<48x32xf32>
    %36 = tpu.concatenate %35, %35, %35, %35, %35, %35, %35, %35 in 1 : vector<48x32xf32>, vector<48x32xf32>, vector<48x32xf32>, vector<48x32xf32>, vector<48x32xf32>, vector<48x32xf32>, vector<48x32xf32>, vector<48x32xf32> -> vector<48x256xf32>
    %37 = arith.mulf %33, %36 : vector<48x256xf32>
    %c0_11 = arith.constant 0 : index
    %c0_12 = arith.constant 0 : index
    %38 = vector.load %arg6[%c0_11, %c0_12] : memref<256x32xf32, #tpu.memory_space<vmem>>, vector<256x32xf32>
    %cst_13 = arith.constant dense<0.000000e+00> : vector<48x32xf32>
    %39 = tpu.matmul %37, %38, %cst_13 {dimension_numbers = #tpu.dot_dimension_numbers<[1], [0], [0], [1], [0, 0, 1, 1], [], []>} : vector<48x256xf32>, vector<256x32xf32>, vector<48x32xf32> -> vector<48x32xf32>
    %c0_14 = arith.constant 0 : index
    %c0_15 = arith.constant 0 : index
    %40 = vector.load %arg7[%c0_14, %c0_15] : memref<32x32xf32, #tpu.memory_space<vmem>>, vector<32x32xf32>
    %cst_16 = arith.constant dense<0.000000e+00> : vector<48x32xf32>
    %41 = tpu.matmul %35, %40, %cst_16 {dimension_numbers = #tpu.dot_dimension_numbers<[1], [0], [0], [1], [0, 0, 1, 1], [], []>} : vector<48x32xf32>, vector<32x32xf32>, vector<48x32xf32> -> vector<48x32xf32>
    %42 = arith.addf %39, %41 : vector<48x32xf32>
    %c0_17 = arith.constant 0 : index
    %c0_18 = arith.constant 0 : index
    %43 = vector.load %arg3[%c0_17, %c0_18] : memref<24x48xf32, #tpu.memory_space<vmem>>, vector<24x48xf32>
    %cst_19 = arith.constant dense<0.000000e+00> : vector<24x32xf32>
    %44 = tpu.matmul %43, %42, %cst_19 {dimension_numbers = #tpu.dot_dimension_numbers<[1], [0], [0], [1], [0, 0, 1, 1], [], []>} : vector<24x48xf32>, vector<48x32xf32>, vector<24x32xf32> -> vector<24x32xf32>
    %c0_20 = arith.constant 0 : index
    %c0_21 = arith.constant 0 : index
    %45 = vector.load %arg8[%c0_20, %c0_21] : memref<1x32xf32, #tpu.memory_space<vmem>>, vector<1x32xf32>
    %46 = vector.broadcast %45 : vector<1x32xf32> to vector<24x32xf32>
    %47 = arith.addf %44, %46 : vector<24x32xf32>
    %cst_22 = arith.constant 0.000000e+00 : f32
    %48 = vector.broadcast %cst_22 : f32 to vector<24x32xf32>
    %49 = arith.maximumf %47, %48 : vector<24x32xf32>
    %50 = tpu.concatenate %49, %7 in 1 : vector<24x32xf32>, vector<24x32xf32> -> vector<24x64xf32>
    %c0_23 = arith.constant 0 : index
    %c0_24 = arith.constant 0 : index
    %51 = vector.load %arg9[%c0_23, %c0_24] : memref<64x192xf32, #tpu.memory_space<vmem>>, vector<64x192xf32>
    %cst_25 = arith.constant dense<0.000000e+00> : vector<24x192xf32>
    %52 = tpu.matmul %50, %51, %cst_25 {dimension_numbers = #tpu.dot_dimension_numbers<[1], [0], [0], [1], [0, 0, 1, 1], [], []>} : vector<24x64xf32>, vector<64x192xf32>, vector<24x192xf32> -> vector<24x192xf32>
    %c0_26 = arith.constant 0 : index
    %c0_27 = arith.constant 0 : index
    %53 = vector.load %arg10[%c0_26, %c0_27] : memref<1x192xf32, #tpu.memory_space<vmem>>, vector<1x192xf32>
    %54 = vector.broadcast %53 : vector<1x192xf32> to vector<24x192xf32>
    %55 = arith.addf %52, %54 : vector<24x192xf32>
    %56 = vector.extract_strided_slice %55 {offsets = [0, 0], sizes = [24, 96], strides = [1, 1]} : vector<24x192xf32> to vector<24x96xf32>
    %57 = vector.extract_strided_slice %55 {offsets = [0, 96], sizes = [24, 96], strides = [1, 1]} : vector<24x192xf32> to vector<24x96xf32>
    %58 = vector.extract_strided_slice %56 {offsets = [0, 0], sizes = [24, 32], strides = [1, 1]} : vector<24x96xf32> to vector<24x32xf32>
    %59 = vector.extract_strided_slice %57 {offsets = [0, 0], sizes = [24, 32], strides = [1, 1]} : vector<24x96xf32> to vector<24x32xf32>
    %60 = arith.addf %58, %59 : vector<24x32xf32>
    %61 = arith.negf %60 : vector<24x32xf32>
    %62 = math.exp %61 : vector<24x32xf32>
    %cst_28 = arith.constant 1.000000e+00 : f32
    %63 = vector.broadcast %cst_28 : f32 to vector<24x32xf32>
    %64 = arith.addf %63, %62 : vector<24x32xf32>
    %65 = arith.divf %63, %64 : vector<24x32xf32>
    %66 = vector.extract_strided_slice %56 {offsets = [0, 32], sizes = [24, 32], strides = [1, 1]} : vector<24x96xf32> to vector<24x32xf32>
    %67 = vector.extract_strided_slice %57 {offsets = [0, 32], sizes = [24, 32], strides = [1, 1]} : vector<24x96xf32> to vector<24x32xf32>
    %68 = arith.addf %66, %67 : vector<24x32xf32>
    %69 = arith.negf %68 : vector<24x32xf32>
    %70 = math.exp %69 : vector<24x32xf32>
    %cst_29 = arith.constant 1.000000e+00 : f32
    %71 = vector.broadcast %cst_29 : f32 to vector<24x32xf32>
    %72 = arith.addf %71, %70 : vector<24x32xf32>
    %73 = arith.divf %71, %72 : vector<24x32xf32>
    %74 = vector.extract_strided_slice %56 {offsets = [0, 64], sizes = [24, 32], strides = [1, 1]} : vector<24x96xf32> to vector<24x32xf32>
    %75 = vector.extract_strided_slice %57 {offsets = [0, 64], sizes = [24, 32], strides = [1, 1]} : vector<24x96xf32> to vector<24x32xf32>
    %76 = arith.mulf %65, %75 : vector<24x32xf32>
    %77 = arith.addf %74, %76 : vector<24x32xf32>
    %78 = math.tanh %77 : vector<24x32xf32>
    %cst_30 = arith.constant 1.000000e+00 : f32
    %79 = vector.broadcast %cst_30 : f32 to vector<24x32xf32>
    %80 = arith.subf %79, %73 : vector<24x32xf32>
    %81 = arith.mulf %80, %78 : vector<24x32xf32>
    %82 = arith.mulf %73, %7 : vector<24x32xf32>
    %83 = arith.addf %81, %82 : vector<24x32xf32>
    %c0_31 = arith.constant 0 : index
    %c0_32 = arith.constant 0 : index
    %84 = vector.load %arg2[%c0_31, %c0_32] : memref<48x24xf32, #tpu.memory_space<vmem>>, vector<48x24xf32>
    %cst_33 = arith.constant dense<0.000000e+00> : vector<48x32xf32>
    %85 = tpu.matmul %84, %83, %cst_33 {dimension_numbers = #tpu.dot_dimension_numbers<[1], [0], [0], [1], [0, 0, 1, 1], [], []>} : vector<48x24xf32>, vector<24x32xf32>, vector<48x32xf32> -> vector<48x32xf32>
    %86 = tpu.concatenate %85, %85, %85, %85, %85, %85, %85, %85 in 1 : vector<48x32xf32>, vector<48x32xf32>, vector<48x32xf32>, vector<48x32xf32>, vector<48x32xf32>, vector<48x32xf32>, vector<48x32xf32>, vector<48x32xf32> -> vector<48x256xf32>
    %87 = arith.mulf %33, %86 : vector<48x256xf32>
    %c0_34 = arith.constant 0 : index
    %c0_35 = arith.constant 0 : index
    %88 = vector.load %arg6[%c0_34, %c0_35] : memref<256x32xf32, #tpu.memory_space<vmem>>, vector<256x32xf32>
    %cst_36 = arith.constant dense<0.000000e+00> : vector<48x32xf32>
    %89 = tpu.matmul %87, %88, %cst_36 {dimension_numbers = #tpu.dot_dimension_numbers<[1], [0], [0], [1], [0, 0, 1, 1], [], []>} : vector<48x256xf32>, vector<256x32xf32>, vector<48x32xf32> -> vector<48x32xf32>
    %c0_37 = arith.constant 0 : index
    %c0_38 = arith.constant 0 : index
    %90 = vector.load %arg7[%c0_37, %c0_38] : memref<32x32xf32, #tpu.memory_space<vmem>>, vector<32x32xf32>
    %cst_39 = arith.constant dense<0.000000e+00> : vector<48x32xf32>
    %91 = tpu.matmul %85, %90, %cst_39 {dimension_numbers = #tpu.dot_dimension_numbers<[1], [0], [0], [1], [0, 0, 1, 1], [], []>} : vector<48x32xf32>, vector<32x32xf32>, vector<48x32xf32> -> vector<48x32xf32>
    %92 = arith.addf %89, %91 : vector<48x32xf32>
    %c0_40 = arith.constant 0 : index
    %c0_41 = arith.constant 0 : index
    %93 = vector.load %arg3[%c0_40, %c0_41] : memref<24x48xf32, #tpu.memory_space<vmem>>, vector<24x48xf32>
    %cst_42 = arith.constant dense<0.000000e+00> : vector<24x32xf32>
    %94 = tpu.matmul %93, %92, %cst_42 {dimension_numbers = #tpu.dot_dimension_numbers<[1], [0], [0], [1], [0, 0, 1, 1], [], []>} : vector<24x48xf32>, vector<48x32xf32>, vector<24x32xf32> -> vector<24x32xf32>
    %c0_43 = arith.constant 0 : index
    %c0_44 = arith.constant 0 : index
    %95 = vector.load %arg8[%c0_43, %c0_44] : memref<1x32xf32, #tpu.memory_space<vmem>>, vector<1x32xf32>
    %96 = vector.broadcast %95 : vector<1x32xf32> to vector<24x32xf32>
    %97 = arith.addf %94, %96 : vector<24x32xf32>
    %cst_45 = arith.constant 0.000000e+00 : f32
    %98 = vector.broadcast %cst_45 : f32 to vector<24x32xf32>
    %99 = arith.maximumf %97, %98 : vector<24x32xf32>
    %100 = tpu.concatenate %99, %83 in 1 : vector<24x32xf32>, vector<24x32xf32> -> vector<24x64xf32>
    %c0_46 = arith.constant 0 : index
    %c0_47 = arith.constant 0 : index
    %101 = vector.load %arg9[%c0_46, %c0_47] : memref<64x192xf32, #tpu.memory_space<vmem>>, vector<64x192xf32>
    %cst_48 = arith.constant dense<0.000000e+00> : vector<24x192xf32>
    %102 = tpu.matmul %100, %101, %cst_48 {dimension_numbers = #tpu.dot_dimension_numbers<[1], [0], [0], [1], [0, 0, 1, 1], [], []>} : vector<24x64xf32>, vector<64x192xf32>, vector<24x192xf32> -> vector<24x192xf32>
    %c0_49 = arith.constant 0 : index
    %c0_50 = arith.constant 0 : index
    %103 = vector.load %arg10[%c0_49, %c0_50] : memref<1x192xf32, #tpu.memory_space<vmem>>, vector<1x192xf32>
    %104 = vector.broadcast %103 : vector<1x192xf32> to vector<24x192xf32>
    %105 = arith.addf %102, %104 : vector<24x192xf32>
    %106 = vector.extract_strided_slice %105 {offsets = [0, 0], sizes = [24, 96], strides = [1, 1]} : vector<24x192xf32> to vector<24x96xf32>
    %107 = vector.extract_strided_slice %105 {offsets = [0, 96], sizes = [24, 96], strides = [1, 1]} : vector<24x192xf32> to vector<24x96xf32>
    %108 = vector.extract_strided_slice %106 {offsets = [0, 0], sizes = [24, 32], strides = [1, 1]} : vector<24x96xf32> to vector<24x32xf32>
    %109 = vector.extract_strided_slice %107 {offsets = [0, 0], sizes = [24, 32], strides = [1, 1]} : vector<24x96xf32> to vector<24x32xf32>
    %110 = arith.addf %108, %109 : vector<24x32xf32>
    %111 = arith.negf %110 : vector<24x32xf32>
    %112 = math.exp %111 : vector<24x32xf32>
    %cst_51 = arith.constant 1.000000e+00 : f32
    %113 = vector.broadcast %cst_51 : f32 to vector<24x32xf32>
    %114 = arith.addf %113, %112 : vector<24x32xf32>
    %115 = arith.divf %113, %114 : vector<24x32xf32>
    %116 = vector.extract_strided_slice %106 {offsets = [0, 32], sizes = [24, 32], strides = [1, 1]} : vector<24x96xf32> to vector<24x32xf32>
    %117 = vector.extract_strided_slice %107 {offsets = [0, 32], sizes = [24, 32], strides = [1, 1]} : vector<24x96xf32> to vector<24x32xf32>
    %118 = arith.addf %116, %117 : vector<24x32xf32>
    %119 = arith.negf %118 : vector<24x32xf32>
    %120 = math.exp %119 : vector<24x32xf32>
    %cst_52 = arith.constant 1.000000e+00 : f32
    %121 = vector.broadcast %cst_52 : f32 to vector<24x32xf32>
    %122 = arith.addf %121, %120 : vector<24x32xf32>
    %123 = arith.divf %121, %122 : vector<24x32xf32>
    %124 = vector.extract_strided_slice %106 {offsets = [0, 64], sizes = [24, 32], strides = [1, 1]} : vector<24x96xf32> to vector<24x32xf32>
    %125 = vector.extract_strided_slice %107 {offsets = [0, 64], sizes = [24, 32], strides = [1, 1]} : vector<24x96xf32> to vector<24x32xf32>
    %126 = arith.mulf %115, %125 : vector<24x32xf32>
    %127 = arith.addf %124, %126 : vector<24x32xf32>
    %128 = math.tanh %127 : vector<24x32xf32>
    %cst_53 = arith.constant 1.000000e+00 : f32
    %129 = vector.broadcast %cst_53 : f32 to vector<24x32xf32>
    %130 = arith.subf %129, %123 : vector<24x32xf32>
    %131 = arith.mulf %130, %128 : vector<24x32xf32>
    %132 = arith.mulf %123, %83 : vector<24x32xf32>
    %133 = arith.addf %131, %132 : vector<24x32xf32>
    %c0_54 = arith.constant 0 : index
    %c0_55 = arith.constant 0 : index
    %134 = vector.load %arg2[%c0_54, %c0_55] : memref<48x24xf32, #tpu.memory_space<vmem>>, vector<48x24xf32>
    %cst_56 = arith.constant dense<0.000000e+00> : vector<48x32xf32>
    %135 = tpu.matmul %134, %133, %cst_56 {dimension_numbers = #tpu.dot_dimension_numbers<[1], [0], [0], [1], [0, 0, 1, 1], [], []>} : vector<48x24xf32>, vector<24x32xf32>, vector<48x32xf32> -> vector<48x32xf32>
    %136 = tpu.concatenate %135, %135, %135, %135, %135, %135, %135, %135 in 1 : vector<48x32xf32>, vector<48x32xf32>, vector<48x32xf32>, vector<48x32xf32>, vector<48x32xf32>, vector<48x32xf32>, vector<48x32xf32>, vector<48x32xf32> -> vector<48x256xf32>
    %137 = arith.mulf %33, %136 : vector<48x256xf32>
    %c0_57 = arith.constant 0 : index
    %c0_58 = arith.constant 0 : index
    %138 = vector.load %arg6[%c0_57, %c0_58] : memref<256x32xf32, #tpu.memory_space<vmem>>, vector<256x32xf32>
    %cst_59 = arith.constant dense<0.000000e+00> : vector<48x32xf32>
    %139 = tpu.matmul %137, %138, %cst_59 {dimension_numbers = #tpu.dot_dimension_numbers<[1], [0], [0], [1], [0, 0, 1, 1], [], []>} : vector<48x256xf32>, vector<256x32xf32>, vector<48x32xf32> -> vector<48x32xf32>
    %c0_60 = arith.constant 0 : index
    %c0_61 = arith.constant 0 : index
    %140 = vector.load %arg7[%c0_60, %c0_61] : memref<32x32xf32, #tpu.memory_space<vmem>>, vector<32x32xf32>
    %cst_62 = arith.constant dense<0.000000e+00> : vector<48x32xf32>
    %141 = tpu.matmul %135, %140, %cst_62 {dimension_numbers = #tpu.dot_dimension_numbers<[1], [0], [0], [1], [0, 0, 1, 1], [], []>} : vector<48x32xf32>, vector<32x32xf32>, vector<48x32xf32> -> vector<48x32xf32>
    %142 = arith.addf %139, %141 : vector<48x32xf32>
    %c0_63 = arith.constant 0 : index
    %c0_64 = arith.constant 0 : index
    %143 = vector.load %arg3[%c0_63, %c0_64] : memref<24x48xf32, #tpu.memory_space<vmem>>, vector<24x48xf32>
    %cst_65 = arith.constant dense<0.000000e+00> : vector<24x32xf32>
    %144 = tpu.matmul %143, %142, %cst_65 {dimension_numbers = #tpu.dot_dimension_numbers<[1], [0], [0], [1], [0, 0, 1, 1], [], []>} : vector<24x48xf32>, vector<48x32xf32>, vector<24x32xf32> -> vector<24x32xf32>
    %c0_66 = arith.constant 0 : index
    %c0_67 = arith.constant 0 : index
    %145 = vector.load %arg8[%c0_66, %c0_67] : memref<1x32xf32, #tpu.memory_space<vmem>>, vector<1x32xf32>
    %146 = vector.broadcast %145 : vector<1x32xf32> to vector<24x32xf32>
    %147 = arith.addf %144, %146 : vector<24x32xf32>
    %cst_68 = arith.constant 0.000000e+00 : f32
    %148 = vector.broadcast %cst_68 : f32 to vector<24x32xf32>
    %149 = arith.maximumf %147, %148 : vector<24x32xf32>
    %150 = tpu.concatenate %149, %133 in 1 : vector<24x32xf32>, vector<24x32xf32> -> vector<24x64xf32>
    %c0_69 = arith.constant 0 : index
    %c0_70 = arith.constant 0 : index
    %151 = vector.load %arg9[%c0_69, %c0_70] : memref<64x192xf32, #tpu.memory_space<vmem>>, vector<64x192xf32>
    %cst_71 = arith.constant dense<0.000000e+00> : vector<24x192xf32>
    %152 = tpu.matmul %150, %151, %cst_71 {dimension_numbers = #tpu.dot_dimension_numbers<[1], [0], [0], [1], [0, 0, 1, 1], [], []>} : vector<24x64xf32>, vector<64x192xf32>, vector<24x192xf32> -> vector<24x192xf32>
    %c0_72 = arith.constant 0 : index
    %c0_73 = arith.constant 0 : index
    %153 = vector.load %arg10[%c0_72, %c0_73] : memref<1x192xf32, #tpu.memory_space<vmem>>, vector<1x192xf32>
    %154 = vector.broadcast %153 : vector<1x192xf32> to vector<24x192xf32>
    %155 = arith.addf %152, %154 : vector<24x192xf32>
    %156 = vector.extract_strided_slice %155 {offsets = [0, 0], sizes = [24, 96], strides = [1, 1]} : vector<24x192xf32> to vector<24x96xf32>
    %157 = vector.extract_strided_slice %155 {offsets = [0, 96], sizes = [24, 96], strides = [1, 1]} : vector<24x192xf32> to vector<24x96xf32>
    %158 = vector.extract_strided_slice %156 {offsets = [0, 0], sizes = [24, 32], strides = [1, 1]} : vector<24x96xf32> to vector<24x32xf32>
    %159 = vector.extract_strided_slice %157 {offsets = [0, 0], sizes = [24, 32], strides = [1, 1]} : vector<24x96xf32> to vector<24x32xf32>
    %160 = arith.addf %158, %159 : vector<24x32xf32>
    %161 = arith.negf %160 : vector<24x32xf32>
    %162 = math.exp %161 : vector<24x32xf32>
    %cst_74 = arith.constant 1.000000e+00 : f32
    %163 = vector.broadcast %cst_74 : f32 to vector<24x32xf32>
    %164 = arith.addf %163, %162 : vector<24x32xf32>
    %165 = arith.divf %163, %164 : vector<24x32xf32>
    %166 = vector.extract_strided_slice %156 {offsets = [0, 32], sizes = [24, 32], strides = [1, 1]} : vector<24x96xf32> to vector<24x32xf32>
    %167 = vector.extract_strided_slice %157 {offsets = [0, 32], sizes = [24, 32], strides = [1, 1]} : vector<24x96xf32> to vector<24x32xf32>
    %168 = arith.addf %166, %167 : vector<24x32xf32>
    %169 = arith.negf %168 : vector<24x32xf32>
    %170 = math.exp %169 : vector<24x32xf32>
    %cst_75 = arith.constant 1.000000e+00 : f32
    %171 = vector.broadcast %cst_75 : f32 to vector<24x32xf32>
    %172 = arith.addf %171, %170 : vector<24x32xf32>
    %173 = arith.divf %171, %172 : vector<24x32xf32>
    %174 = vector.extract_strided_slice %156 {offsets = [0, 64], sizes = [24, 32], strides = [1, 1]} : vector<24x96xf32> to vector<24x32xf32>
    %175 = vector.extract_strided_slice %157 {offsets = [0, 64], sizes = [24, 32], strides = [1, 1]} : vector<24x96xf32> to vector<24x32xf32>
    %176 = arith.mulf %165, %175 : vector<24x32xf32>
    %177 = arith.addf %174, %176 : vector<24x32xf32>
    %178 = math.tanh %177 : vector<24x32xf32>
    %cst_76 = arith.constant 1.000000e+00 : f32
    %179 = vector.broadcast %cst_76 : f32 to vector<24x32xf32>
    %180 = arith.subf %179, %173 : vector<24x32xf32>
    %181 = arith.mulf %180, %178 : vector<24x32xf32>
    %182 = arith.mulf %173, %133 : vector<24x32xf32>
    %183 = arith.addf %181, %182 : vector<24x32xf32>
    %184 = tpu.concatenate %7, %183 in 1 : vector<24x32xf32>, vector<24x32xf32> -> vector<24x64xf32>
    %185 = tpu.transpose %184, [1, 0] : vector<24x64xf32> -> vector<64x24xf32>
    %cst_77 = arith.constant 0.000000e+00 : f32
    %186 = vector.broadcast %cst_77 : f32 to vector<1x64xf32>
    %cst_78 = arith.constant 0.000000e+00 : f32
    %187 = vector.broadcast %cst_78 : f32 to vector<1x64xf32>
    %cst_79 = arith.constant 0.000000e+00 : f32
    %188 = vector.broadcast %cst_79 : f32 to vector<1x64xf32>
    %cst_80 = arith.constant 0.000000e+00 : f32
    %189 = vector.broadcast %cst_80 : f32 to vector<1x64xf32>
    %190 = tpu.concatenate %186, %187, %188 in 1 : vector<1x64xf32>, vector<1x64xf32>, vector<1x64xf32> -> vector<1x192xf32>
    %c0_81 = arith.constant 0 : index
    %c0_82 = arith.constant 0 : index
    %191 = vector.load %arg11[%c0_81, %c0_82] : memref<192x256xf32, #tpu.memory_space<vmem>>, vector<192x256xf32>
    %cst_83 = arith.constant dense<0.000000e+00> : vector<1x256xf32>
    %192 = tpu.matmul %190, %191, %cst_83 {dimension_numbers = #tpu.dot_dimension_numbers<[1], [0], [0], [1], [0, 0, 1, 1], [], []>} : vector<1x192xf32>, vector<192x256xf32>, vector<1x256xf32> -> vector<1x256xf32>
    %c0_84 = arith.constant 0 : index
    %c0_85 = arith.constant 0 : index
    %193 = vector.load %arg12[%c0_84, %c0_85] : memref<1x256xf32, #tpu.memory_space<vmem>>, vector<1x256xf32>
    %194 = arith.addf %192, %193 : vector<1x256xf32>
    %195 = vector.extract_strided_slice %194 {offsets = [0, 0], sizes = [1, 64], strides = [1, 1]} : vector<1x256xf32> to vector<1x64xf32>
    %196 = arith.negf %195 : vector<1x64xf32>
    %197 = math.exp %196 : vector<1x64xf32>
    %cst_86 = arith.constant 1.000000e+00 : f32
    %198 = vector.broadcast %cst_86 : f32 to vector<1x64xf32>
    %199 = arith.addf %198, %197 : vector<1x64xf32>
    %200 = arith.divf %198, %199 : vector<1x64xf32>
    %201 = vector.extract_strided_slice %194 {offsets = [0, 64], sizes = [1, 64], strides = [1, 1]} : vector<1x256xf32> to vector<1x64xf32>
    %202 = arith.negf %201 : vector<1x64xf32>
    %203 = math.exp %202 : vector<1x64xf32>
    %cst_87 = arith.constant 1.000000e+00 : f32
    %204 = vector.broadcast %cst_87 : f32 to vector<1x64xf32>
    %205 = arith.addf %204, %203 : vector<1x64xf32>
    %206 = arith.divf %204, %205 : vector<1x64xf32>
    %207 = vector.extract_strided_slice %194 {offsets = [0, 128], sizes = [1, 64], strides = [1, 1]} : vector<1x256xf32> to vector<1x64xf32>
    %208 = math.tanh %207 : vector<1x64xf32>
    %209 = vector.extract_strided_slice %194 {offsets = [0, 192], sizes = [1, 64], strides = [1, 1]} : vector<1x256xf32> to vector<1x64xf32>
    %210 = arith.negf %209 : vector<1x64xf32>
    %211 = math.exp %210 : vector<1x64xf32>
    %cst_88 = arith.constant 1.000000e+00 : f32
    %212 = vector.broadcast %cst_88 : f32 to vector<1x64xf32>
    %213 = arith.addf %212, %211 : vector<1x64xf32>
    %214 = arith.divf %212, %213 : vector<1x64xf32>
    %215 = arith.mulf %206, %189 : vector<1x64xf32>
    %216 = arith.mulf %200, %208 : vector<1x64xf32>
    %217 = arith.addf %215, %216 : vector<1x64xf32>
    %218 = math.tanh %217 : vector<1x64xf32>
    %219 = arith.mulf %214, %218 : vector<1x64xf32>
    %cst_89 = arith.constant dense<0.000000e+00> : vector<1x24xf32>
    %220 = tpu.matmul %219, %185, %cst_89 {dimension_numbers = #tpu.dot_dimension_numbers<[1], [0], [0], [1], [0, 0, 1, 1], [], []>} : vector<1x64xf32>, vector<64x24xf32>, vector<1x24xf32> -> vector<1x24xf32>
    %cst_90 = arith.constant dense<0xFF800000> : vector<1xf32>
    %221 = vector.multi_reduction <maximumf>, %220, %cst_90 [1] : vector<1x24xf32> to vector<1xf32>
    %222 = vector.shape_cast %221 : vector<1xf32> to vector<1x1xf32>
    %223 = vector.broadcast %222 : vector<1x1xf32> to vector<1x24xf32>
    %224 = arith.subf %220, %223 : vector<1x24xf32>
    %225 = math.exp %224 : vector<1x24xf32>
    %cst_91 = arith.constant dense<0.000000e+00> : vector<1xf32>
    %226 = vector.multi_reduction <add>, %225, %cst_91 [1] : vector<1x24xf32> to vector<1xf32>
    %227 = vector.shape_cast %226 : vector<1xf32> to vector<1x1xf32>
    %228 = tpu.reciprocal %227 {approx = true} : vector<1x1xf32> -> vector<1x1xf32>
    %229 = vector.broadcast %228 : vector<1x1xf32> to vector<1x24xf32>
    %230 = arith.mulf %225, %229 : vector<1x24xf32>
    %cst_92 = arith.constant dense<0.000000e+00> : vector<1x64xf32>
    %231 = tpu.matmul %230, %184, %cst_92 {dimension_numbers = #tpu.dot_dimension_numbers<[1], [0], [0], [1], [0, 0, 1, 1], [], []>} : vector<1x24xf32>, vector<24x64xf32>, vector<1x64xf32> -> vector<1x64xf32>
    %232 = tpu.concatenate %219, %231, %219 in 1 : vector<1x64xf32>, vector<1x64xf32>, vector<1x64xf32> -> vector<1x192xf32>
    %c0_93 = arith.constant 0 : index
    %c0_94 = arith.constant 0 : index
    %233 = vector.load %arg11[%c0_93, %c0_94] : memref<192x256xf32, #tpu.memory_space<vmem>>, vector<192x256xf32>
    %cst_95 = arith.constant dense<0.000000e+00> : vector<1x256xf32>
    %234 = tpu.matmul %232, %233, %cst_95 {dimension_numbers = #tpu.dot_dimension_numbers<[1], [0], [0], [1], [0, 0, 1, 1], [], []>} : vector<1x192xf32>, vector<192x256xf32>, vector<1x256xf32> -> vector<1x256xf32>
    %c0_96 = arith.constant 0 : index
    %c0_97 = arith.constant 0 : index
    %235 = vector.load %arg12[%c0_96, %c0_97] : memref<1x256xf32, #tpu.memory_space<vmem>>, vector<1x256xf32>
    %236 = arith.addf %234, %235 : vector<1x256xf32>
    %237 = vector.extract_strided_slice %236 {offsets = [0, 0], sizes = [1, 64], strides = [1, 1]} : vector<1x256xf32> to vector<1x64xf32>
    %238 = arith.negf %237 : vector<1x64xf32>
    %239 = math.exp %238 : vector<1x64xf32>
    %cst_98 = arith.constant 1.000000e+00 : f32
    %240 = vector.broadcast %cst_98 : f32 to vector<1x64xf32>
    %241 = arith.addf %240, %239 : vector<1x64xf32>
    %242 = arith.divf %240, %241 : vector<1x64xf32>
    %243 = vector.extract_strided_slice %236 {offsets = [0, 64], sizes = [1, 64], strides = [1, 1]} : vector<1x256xf32> to vector<1x64xf32>
    %244 = arith.negf %243 : vector<1x64xf32>
    %245 = math.exp %244 : vector<1x64xf32>
    %cst_99 = arith.constant 1.000000e+00 : f32
    %246 = vector.broadcast %cst_99 : f32 to vector<1x64xf32>
    %247 = arith.addf %246, %245 : vector<1x64xf32>
    %248 = arith.divf %246, %247 : vector<1x64xf32>
    %249 = vector.extract_strided_slice %236 {offsets = [0, 128], sizes = [1, 64], strides = [1, 1]} : vector<1x256xf32> to vector<1x64xf32>
    %250 = math.tanh %249 : vector<1x64xf32>
    %251 = vector.extract_strided_slice %236 {offsets = [0, 192], sizes = [1, 64], strides = [1, 1]} : vector<1x256xf32> to vector<1x64xf32>
    %252 = arith.negf %251 : vector<1x64xf32>
    %253 = math.exp %252 : vector<1x64xf32>
    %cst_100 = arith.constant 1.000000e+00 : f32
    %254 = vector.broadcast %cst_100 : f32 to vector<1x64xf32>
    %255 = arith.addf %254, %253 : vector<1x64xf32>
    %256 = arith.divf %254, %255 : vector<1x64xf32>
    %257 = arith.mulf %248, %217 : vector<1x64xf32>
    %258 = arith.mulf %242, %250 : vector<1x64xf32>
    %259 = arith.addf %257, %258 : vector<1x64xf32>
    %260 = math.tanh %259 : vector<1x64xf32>
    %261 = arith.mulf %256, %260 : vector<1x64xf32>
    %cst_101 = arith.constant dense<0.000000e+00> : vector<1x24xf32>
    %262 = tpu.matmul %261, %185, %cst_101 {dimension_numbers = #tpu.dot_dimension_numbers<[1], [0], [0], [1], [0, 0, 1, 1], [], []>} : vector<1x64xf32>, vector<64x24xf32>, vector<1x24xf32> -> vector<1x24xf32>
    %cst_102 = arith.constant dense<0xFF800000> : vector<1xf32>
    %263 = vector.multi_reduction <maximumf>, %262, %cst_102 [1] : vector<1x24xf32> to vector<1xf32>
    %264 = vector.shape_cast %263 : vector<1xf32> to vector<1x1xf32>
    %265 = vector.broadcast %264 : vector<1x1xf32> to vector<1x24xf32>
    %266 = arith.subf %262, %265 : vector<1x24xf32>
    %267 = math.exp %266 : vector<1x24xf32>
    %cst_103 = arith.constant dense<0.000000e+00> : vector<1xf32>
    %268 = vector.multi_reduction <add>, %267, %cst_103 [1] : vector<1x24xf32> to vector<1xf32>
    %269 = vector.shape_cast %268 : vector<1xf32> to vector<1x1xf32>
    %270 = tpu.reciprocal %269 {approx = true} : vector<1x1xf32> -> vector<1x1xf32>
    %271 = vector.broadcast %270 : vector<1x1xf32> to vector<1x24xf32>
    %272 = arith.mulf %267, %271 : vector<1x24xf32>
    %cst_104 = arith.constant dense<0.000000e+00> : vector<1x64xf32>
    %273 = tpu.matmul %272, %184, %cst_104 {dimension_numbers = #tpu.dot_dimension_numbers<[1], [0], [0], [1], [0, 0, 1, 1], [], []>} : vector<1x24xf32>, vector<24x64xf32>, vector<1x64xf32> -> vector<1x64xf32>
    %274 = tpu.concatenate %261, %273, %261 in 1 : vector<1x64xf32>, vector<1x64xf32>, vector<1x64xf32> -> vector<1x192xf32>
    %c0_105 = arith.constant 0 : index
    %c0_106 = arith.constant 0 : index
    %275 = vector.load %arg11[%c0_105, %c0_106] : memref<192x256xf32, #tpu.memory_space<vmem>>, vector<192x256xf32>
    %cst_107 = arith.constant dense<0.000000e+00> : vector<1x256xf32>
    %276 = tpu.matmul %274, %275, %cst_107 {dimension_numbers = #tpu.dot_dimension_numbers<[1], [0], [0], [1], [0, 0, 1, 1], [], []>} : vector<1x192xf32>, vector<192x256xf32>, vector<1x256xf32> -> vector<1x256xf32>
    %c0_108 = arith.constant 0 : index
    %c0_109 = arith.constant 0 : index
    %277 = vector.load %arg12[%c0_108, %c0_109] : memref<1x256xf32, #tpu.memory_space<vmem>>, vector<1x256xf32>
    %278 = arith.addf %276, %277 : vector<1x256xf32>
    %279 = vector.extract_strided_slice %278 {offsets = [0, 0], sizes = [1, 64], strides = [1, 1]} : vector<1x256xf32> to vector<1x64xf32>
    %280 = arith.negf %279 : vector<1x64xf32>
    %281 = math.exp %280 : vector<1x64xf32>
    %cst_110 = arith.constant 1.000000e+00 : f32
    %282 = vector.broadcast %cst_110 : f32 to vector<1x64xf32>
    %283 = arith.addf %282, %281 : vector<1x64xf32>
    %284 = arith.divf %282, %283 : vector<1x64xf32>
    %285 = vector.extract_strided_slice %278 {offsets = [0, 64], sizes = [1, 64], strides = [1, 1]} : vector<1x256xf32> to vector<1x64xf32>
    %286 = arith.negf %285 : vector<1x64xf32>
    %287 = math.exp %286 : vector<1x64xf32>
    %cst_111 = arith.constant 1.000000e+00 : f32
    %288 = vector.broadcast %cst_111 : f32 to vector<1x64xf32>
    %289 = arith.addf %288, %287 : vector<1x64xf32>
    %290 = arith.divf %288, %289 : vector<1x64xf32>
    %291 = vector.extract_strided_slice %278 {offsets = [0, 128], sizes = [1, 64], strides = [1, 1]} : vector<1x256xf32> to vector<1x64xf32>
    %292 = math.tanh %291 : vector<1x64xf32>
    %293 = vector.extract_strided_slice %278 {offsets = [0, 192], sizes = [1, 64], strides = [1, 1]} : vector<1x256xf32> to vector<1x64xf32>
    %294 = arith.negf %293 : vector<1x64xf32>
    %295 = math.exp %294 : vector<1x64xf32>
    %cst_112 = arith.constant 1.000000e+00 : f32
    %296 = vector.broadcast %cst_112 : f32 to vector<1x64xf32>
    %297 = arith.addf %296, %295 : vector<1x64xf32>
    %298 = arith.divf %296, %297 : vector<1x64xf32>
    %299 = arith.mulf %290, %259 : vector<1x64xf32>
    %300 = arith.mulf %284, %292 : vector<1x64xf32>
    %301 = arith.addf %299, %300 : vector<1x64xf32>
    %302 = math.tanh %301 : vector<1x64xf32>
    %303 = arith.mulf %298, %302 : vector<1x64xf32>
    %cst_113 = arith.constant dense<0.000000e+00> : vector<1x24xf32>
    %304 = tpu.matmul %303, %185, %cst_113 {dimension_numbers = #tpu.dot_dimension_numbers<[1], [0], [0], [1], [0, 0, 1, 1], [], []>} : vector<1x64xf32>, vector<64x24xf32>, vector<1x24xf32> -> vector<1x24xf32>
    %cst_114 = arith.constant dense<0xFF800000> : vector<1xf32>
    %305 = vector.multi_reduction <maximumf>, %304, %cst_114 [1] : vector<1x24xf32> to vector<1xf32>
    %306 = vector.shape_cast %305 : vector<1xf32> to vector<1x1xf32>
    %307 = vector.broadcast %306 : vector<1x1xf32> to vector<1x24xf32>
    %308 = arith.subf %304, %307 : vector<1x24xf32>
    %309 = math.exp %308 : vector<1x24xf32>
    %cst_115 = arith.constant dense<0.000000e+00> : vector<1xf32>
    %310 = vector.multi_reduction <add>, %309, %cst_115 [1] : vector<1x24xf32> to vector<1xf32>
    %311 = vector.shape_cast %310 : vector<1xf32> to vector<1x1xf32>
    %312 = tpu.reciprocal %311 {approx = true} : vector<1x1xf32> -> vector<1x1xf32>
    %313 = vector.broadcast %312 : vector<1x1xf32> to vector<1x24xf32>
    %314 = arith.mulf %309, %313 : vector<1x24xf32>
    %cst_116 = arith.constant dense<0.000000e+00> : vector<1x64xf32>
    %315 = tpu.matmul %314, %184, %cst_116 {dimension_numbers = #tpu.dot_dimension_numbers<[1], [0], [0], [1], [0, 0, 1, 1], [], []>} : vector<1x24xf32>, vector<24x64xf32>, vector<1x64xf32> -> vector<1x64xf32>
    %316 = tpu.concatenate %303, %315 in 1 : vector<1x64xf32>, vector<1x64xf32> -> vector<1x128xf32>
    %c0_117 = arith.constant 0 : index
    %c0_118 = arith.constant 0 : index
    %317 = vector.load %arg13[%c0_117, %c0_118] : memref<128x128xf32, #tpu.memory_space<vmem>>, vector<128x128xf32>
    %cst_119 = arith.constant dense<0.000000e+00> : vector<1x128xf32>
    %318 = tpu.matmul %316, %317, %cst_119 {dimension_numbers = #tpu.dot_dimension_numbers<[1], [0], [0], [1], [0, 0, 1, 1], [], []>} : vector<1x128xf32>, vector<128x128xf32>, vector<1x128xf32> -> vector<1x128xf32>
    %c0_120 = arith.constant 0 : index
    %c0_121 = arith.constant 0 : index
    %319 = vector.load %arg14[%c0_120, %c0_121] : memref<1x128xf32, #tpu.memory_space<vmem>>, vector<1x128xf32>
    %320 = arith.addf %318, %319 : vector<1x128xf32>
    %cst_122 = arith.constant 0.000000e+00 : f32
    %321 = vector.broadcast %cst_122 : f32 to vector<1x128xf32>
    %322 = arith.cmpf oge, %320, %321 : vector<1x128xf32>
    %c0_123 = arith.constant 0 : index
    %c0_124 = arith.constant 0 : index
    %323 = vector.load %arg15[%c0_123, %c0_124] : memref<1x1xf32, #tpu.memory_space<vmem>>, vector<1x1xf32>
    %324 = vector.broadcast %323 : vector<1x1xf32> to vector<1x128xf32>
    %325 = arith.mulf %324, %320 : vector<1x128xf32>
    %326 = arith.select %322, %320, %325 : vector<1x128xi1>, vector<1x128xf32>
    %c0_125 = arith.constant 0 : index
    %c0_126 = arith.constant 0 : index
    %327 = vector.load %arg16[%c0_125, %c0_126] : memref<1x128xf32, #tpu.memory_space<vmem>>, vector<1x128xf32>
    tpu.vector_store %arg16[%c0_125, %c0_126], %326 {strides = array<i32>} : memref<1x128xf32, #tpu.memory_space<vmem>>, vector<1x128xf32>,
    return
  }
}

</mosaic_0001>

<bundles_post_ra>
// kernel: mpnn_forward.1
= control target key start
LH: loop header
LB: loop body
LE: loop exit
PB: predicated region body
PF: predicated region fallthrough
CT: control target
= control target key end

     0   :  { %s6920_s0 = inlined_call_operand.vmem [shape: f32[24,16], index: 0, kind: input, shape index: {}]   ;;  %s6921_s1 = inlined_call_operand.vmem [shape: f32[48,8], index: 1, kind: input, shape index: {}]   ;;  %s6922_s2 = inlined_call_operand.vmem [shape: f32[48,24], index: 2, kind: input, shape index: {}]   ;;  %s6923_s3 = inlined_call_operand.hbm [shape: f32[24,48], index: 3, kind: input, shape index: {}]   ;;  %s6924_s4 = inlined_call_operand.hbm [shape: f32[16,32], index: 4, kind: input, shape index: {}]   ;;  %s6925_s5 = inlined_call_operand.vmem [shape: f32[1,32], index: 5, kind: input, shape index: {}]   ;;  %s6926_s6 = inlined_call_operand.vmem [shape: f32[256,32], index: 6, kind: input, shape index: {}]   ;;  %s6927_s7 = inlined_call_operand.hbm [shape: f32[32,32], index: 7, kind: input, shape index: {}]   ;;  %s6928_s8 = inlined_call_operand.hbm [shape: f32[1,32], index: 8, kind: input, shape index: {}]   ;;  %s6929_s9 = inlined_call_operand.hbm [shape: f32[64,192], index: 9, kind: input, shape index: {}]   ;;  %s6930_s10 = inlined_call_operand.hbm [shape: f32[1,192], index: 10, kind: input, shape index: {}]   ;;  %s6931_s11 = inlined_call_operand.vmem [shape: f32[192,256], index: 11, kind: input, shape index: {}]   ;;  %s6932_s12 = inlined_call_operand.hbm [shape: f32[1,256], index: 12, kind: input, shape index: {}]   ;;  %s6933_s13 = inlined_call_operand.vmem [shape: f32[128,128], index: 13, kind: input, shape index: {}]   ;;  %s6934_s14 = inlined_call_operand.hbm [shape: f32[1,128], index: 14, kind: input, shape index: {}]   ;;  %s6935_s15 = inlined_call_operand.<no memory space> [shape: f32[1,1], index: 15, kind: input, shape index: {}]   ;;  %s6936_s16 = inlined_call_operand.hbm [shape: f32[1,128], index: 16, kind: output, shape index: {}]  }
   0x1   :  { %6989 = sst [smem:[#allocation52_spill]] %s6920_s0  ;;  %v21_v0 = vstv %s6935_s15 }
   0x2   :  { %22 = vst [vmem:[#allocation2] sm:$0x1] %v21_v0 }
   0x3   :  { %23 = vsyncpa [#allocation4], 0 }
   0x4   :  { %24 = vsyncpa [#allocation7], 0 }
   0x5   :  { %25 = vsyncpa [#allocation10], 0 }
   0x6   :  { %26 = vsyncpa [#allocation13], 0 }
   0x7   :  { %27 = vsyncpa [#allocation16], 0 }
   0x8   :  { %28 = vsyncpa [#allocation5], 0  ;;  %s5150_s23 = smov [#allocation6]   ;;  %s5151_s25 = smov [#allocation9]  }
   0x9   :  { %s52_s24 = sshll.u32 %s5150_s23, 4  ;;  %s81_s26 = sshll.u32 %s5151_s25, 4  ;;  %s53_s24 = int_to_ptr.vmem [resolvable:$true] %s52_s24  ;;  %s5265_s26 = int_to_ptr.vmem [resolvable:$true] %s81_s26 }
   0xa   :  { %s4940_s29 = scalar_lea.hbm %s6924_s4, 256 }
   0xb   :  { %p4941_p0 = scmp.ne.s32.totalorder %s6924_s4, %s4940_s29  ;;  %p4944_p1 = scmp.lt.u32.totalorder %s4940_s29, %s6924_s4 }
   0xd   :  { %p4946_p2 = pnand %p4944_p1, %p4941_p0 }
   0xf   :  { %4949 = shalt.err (!%p4946_p2)
}
  0x10   :  { %s4950_s18 = scalar_lea.vmem %s53_s24, 256  ;;  %p4955_p4 = scmp.lt.s32.totalorder %s53_s24, %s53_s24 }
  0x11   :  { %p4951_p3 = scmp.ne.s32.totalorder %s53_s24, %s4950_s18  ;;  %p4956_p5 = scmp.lt.s32.totalorder %s4950_s18, %s4950_s18 }
  0x13   :  { %p4957_p6 = por %p4956_p5, %p4955_p4 }
  0x15   :  { %p4958_p7 = pnand %p4957_p6, %p4951_p3 }
  0x17   :  { %4961 = shalt.err (!%p4958_p7)
}
  0x18   :  { %s5152_s19 = smov 128   ;;  %s5153_s20 = smov 8  }
  0x19   :  { %58 = dma.hbm_to_vmem [thread:$0]  %s6924_s4, 256, %s53_s24, [#allocation7], %s5152_s19, %s5152_s19, %s5153_s20  }
  0x1a   :  { %s4962_s27 = scalar_lea.hbm %s6928_s8, 16 }
  0x1b   :  { %p4963_p8 = scmp.ne.s32.totalorder %s6928_s8, %s4962_s27  ;;  %p4966_p9 = scmp.lt.u32.totalorder %s4962_s27, %s6928_s8 }
  0x1d   :  { %p4968_p10 = pnand %p4966_p9, %p4963_p8 }
  0x1f   :  { %4971 = shalt.err (!%p4968_p10)
}
  0x20   :  { %s4972_s0 = scalar_lea.vmem %s5265_s26, 16  ;;  %s4976_s4 = scalar_lea.vmem %s5265_s26, 32 }
  0x21   :  { %p4973_p11 = scmp.ne.s32.totalorder %s5265_s26, %s4972_s0  ;;  %p4977_p12 = scmp.lt.s32.totalorder %s5265_s26, %s5265_s26 }
  0x22   :  { %p4978_p13 = scmp.lt.s32.totalorder %s4976_s4, %s4972_s0 }
  0x24   :  { %p4979_p0 = por %p4978_p13, %p4977_p12 }
  0x26   :  { %p4980_p1 = pnand %p4979_p0, %p4973_p11 }
  0x28   :  { %4983 = shalt.err (!%p4980_p1)
}
  0x29   :  { %84 = dma.hbm_to_vmem [thread:$0]  %s6928_s8, 16, %s5265_s26, [#allocation10]  }
  0x2a   :  { %s5154_s18 = smov [#allocation12]   ;;  %s5155_s22 = smov [#allocation3]  }
  0x2b   :  { %s103_s21 = sshll.u32 %s5154_s18, 4  ;;  %s40_s23 = sshll.u32 %s5155_s22, 4  ;;  %s104_s21 = int_to_ptr.vmem [resolvable:$true] %s103_s21  ;;  %s5300_s23 = int_to_ptr.vmem [resolvable:$true] %s40_s23 }
  0x2c   :  { %s4984_s28 = scalar_lea.hbm %s6930_s10, 32 }
  0x2d   :  { %p4985_p2 = scmp.ne.s32.totalorder %s6930_s10, %s4984_s28  ;;  %p4988_p3 = scmp.lt.u32.totalorder %s4984_s28, %s6930_s10 }
  0x2f   :  { %p4990_p4 = pnand %p4988_p3, %p4985_p2 }
  0x31   :  { %4993 = shalt.err (!%p4990_p4)
}
  0x32   :  { %s4994_s8 = scalar_lea.vmem %s104_s21, 32  ;;  %p4999_p6 = scmp.lt.s32.totalorder %s104_s21, %s104_s21 }
  0x33   :  { %p4995_p5 = scmp.ne.s32.totalorder %s104_s21, %s4994_s8  ;;  %p5000_p7 = scmp.lt.s32.totalorder %s4994_s8, %s4994_s8 }
  0x35   :  { %p5001_p8 = por %p5000_p7, %p4999_p6 }
  0x37   :  { %p5002_p9 = pnand %p5001_p8, %p4995_p5 }
  0x39   :  { %5005 = shalt.err (!%p5002_p9)
}
  0x3a   :  { %106 = dma.hbm_to_vmem [thread:$0]  %s6930_s10, 32, %s104_s21, [#allocation13]  }
  0x3b   :  { %s5006_s18 = scalar_lea.hbm %s6923_s3, 384 }
  0x3c   :  { %p5007_p10 = scmp.ne.s32.totalorder %s6923_s3, %s5006_s18  ;;  %p5010_p11 = scmp.lt.u32.totalorder %s5006_s18, %s6923_s3 }
  0x3e   :  { %p5012_p12 = pnand %p5010_p11, %p5007_p10 }
  0x40   :  { %5015 = shalt.err (!%p5012_p12)
}
  0x41   :  { %s5016_s29 = scalar_lea.vmem %s5300_s23, 384  ;;  %p5021_p0 = scmp.lt.s32.totalorder %s5300_s23, %s5300_s23 }
  0x42   :  { %p5017_p13 = scmp.ne.s32.totalorder %s5300_s23, %s5016_s29  ;;  %p5022_p1 = scmp.lt.s32.totalorder %s5016_s29, %s5016_s29 }
  0x44   :  { %p5023_p2 = por %p5022_p1, %p5021_p0 }
  0x46   :  { %p5024_p3 = pnand %p5023_p2, %p5017_p13 }
  0x48   :  { %5027 = shalt.err (!%p5024_p3)
}
  0x49   :  { %46 = dma.hbm_to_vmem [thread:$0]  %s6923_s3, 384, %s5300_s23, [#allocation4], %s5152_s19, %s5152_s19, %s5153_s20  }
  0x4a   :  { %s5156_s30 = smov [#allocation8]   ;;  %s5157_s0 = smov [#allocation11]  }
  0x4b   :  { %s68_s15 = sshll.u32 %s5156_s30, 4  ;;  %s90_s8 = sshll.u32 %s5157_s0, 4  ;;  %s69_s15 = int_to_ptr.vmem [resolvable:$true] %s68_s15  ;;  %s5334_s8 = int_to_ptr.vmem [resolvable:$true] %s90_s8 }
  0x4c   :  { %s5028_s24 = scalar_lea.hbm %s6927_s7, 512 }
  0x4d   :  { %p5029_p4 = scmp.ne.s32.totalorder %s6927_s7, %s5028_s24  ;;  %p5032_p5 = scmp.lt.u32.totalorder %s5028_s24, %s6927_s7 }
  0x4f   :  { %p5034_p6 = pnand %p5032_p5, %p5029_p4 }
  0x51   :  { %5037 = shalt.err (!%p5034_p6)
}
  0x52   :  { %s5038_s3 = scalar_lea.vmem %s69_s15, 512  ;;  %p5043_p8 = scmp.lt.s32.totalorder %s69_s15, %s69_s15 }
  0x53   :  { %p5039_p7 = scmp.ne.s32.totalorder %s69_s15, %s5038_s3  ;;  %p5044_p9 = scmp.lt.s32.totalorder %s5038_s3, %s5038_s3 }
  0x55   :  { %p5045_p10 = por %p5044_p9, %p5043_p8 }
  0x57   :  { %p5046_p11 = pnand %p5045_p10, %p5039_p7 }
  0x59   :  { %5049 = shalt.err (!%p5046_p11)
}
  0x5a   :  { %74 = dma.hbm_to_vmem [thread:$0]  %s6927_s7, 512, %s69_s15, [#allocation7], %s5152_s19, %s5152_s19, %s5153_s20  }
  0x5b   :  { %s5050_s10 = scalar_lea.hbm %s6929_s9, 2048 }
  0x5c   :  { %p5051_p12 = scmp.ne.s32.totalorder %s6929_s9, %s5050_s10  ;;  %p5054_p13 = scmp.lt.u32.totalorder %s5050_s10, %s6929_s9 }
  0x5e   :  { %p5056_p0 = pnand %p5054_p13, %p5051_p12 }
  0x60   :  { %5059 = shalt.err (!%p5056_p0)
}
  0x61   :  { %s5060_s4 = scalar_lea.vmem %s5334_s8, 2048  ;;  %p5065_p2 = scmp.lt.s32.totalorder %s5334_s8, %s5334_s8 }
  0x62   :  { %p5061_p1 = scmp.ne.s32.totalorder %s5334_s8, %s5060_s4  ;;  %p5066_p3 = scmp.lt.s32.totalorder %s5060_s4, %s5060_s4 }
  0x64   :  { %p5067_p4 = por %p5066_p3, %p5065_p2 }
  0x66   :  { %p5068_p5 = pnand %p5067_p4, %p5061_p1 }
  0x68   :  { %5071 = shalt.err (!%p5068_p5)
}
  0x69   :  { %s5158_s7 = smov 256   ;;  %s5159_s19 = smov 16  }
  0x6a   :  { %96 = dma.hbm_to_vmem [thread:$0]  %s6929_s9, 2048, %s5334_s8, [#allocation10], %s5158_s7, %s5158_s7, %s5159_s19  }
  0x6b   :  { %s5160_s24 = smov [#allocation14]   ;;  %s5161_s18 = smov [#allocation15]  }
  0x6c   :  { %s115_s17 = sshll.u32 %s5160_s24, 4  ;;  %s127_s22 = sshll.u32 %s5161_s18, 4  ;;  %s116_s17 = int_to_ptr.vmem [resolvable:$true] %s115_s17  ;;  %s128_s22 = int_to_ptr.vmem [resolvable:$true] %s127_s22 }
  0x6d   :  { %s5072_s23 = scalar_lea.hbm %s6932_s12, 32 }
  0x6e   :  { %p5073_p6 = scmp.ne.s32.totalorder %s6932_s12, %s5072_s23  ;;  %p5076_p7 = scmp.lt.u32.totalorder %s5072_s23, %s6932_s12 }
  0x70   :  { %p5078_p8 = pnand %p5076_p7, %p5073_p6 }
  0x72   :  { %5081 = shalt.err (!%p5078_p8)
}
  0x73   :  { %s5082_s9 = scalar_lea.vmem %s116_s17, 32  ;;  %p5087_p10 = scmp.lt.s32.totalorder %s116_s17, %s116_s17 }
  0x74   :  { %p5083_p9 = scmp.ne.s32.totalorder %s116_s17, %s5082_s9  ;;  %p5088_p11 = scmp.lt.s32.totalorder %s5082_s9, %s5082_s9 }
  0x76   :  { %p5089_p12 = por %p5088_p11, %p5087_p10 }
  0x78   :  { %p5090_p13 = pnand %p5089_p12, %p5083_p9 }
  0x7a   :  { %5093 = shalt.err (!%p5090_p13)
}
  0x7b   :  { %118 = dma.hbm_to_vmem [thread:$0]  %s6932_s12, 32, %s116_s17, [#allocation13]  }
  0x7c   :  { %s5094_s26 = scalar_lea.hbm %s6934_s14, 16 }
  0x7d   :  { %p5095_p0 = scmp.ne.s32.totalorder %s6934_s14, %s5094_s26  ;;  %p5098_p1 = scmp.lt.u32.totalorder %s5094_s26, %s6934_s14 }
  0x7f   :  { %p5100_p2 = pnand %p5098_p1, %p5095_p0 }
  0x81   :  { %5103 = shalt.err (!%p5100_p2)
}
  0x82   :  { %s5104_s15 = scalar_lea.vmem %s128_s22, 16  ;;  %s5108_s24 = scalar_lea.vmem %s128_s22, 32 }
  0x83   :  { %p5105_p3 = scmp.ne.s32.totalorder %s128_s22, %s5104_s15  ;;  %p5109_p4 = scmp.lt.s32.totalorder %s128_s22, %s128_s22 }
  0x84   :  { %p5110_p5 = scmp.lt.s32.totalorder %s5108_s24, %s5104_s15 }
  0x86   :  { %p5111_p6 = por %p5110_p5, %p5109_p4 }
  0x88   :  { %p5112_p7 = pnand %p5111_p6, %p5105_p3 }
  0x8a   :  { %5115 = shalt.err (!%p5112_p7)
}
  0x8b   :  { %130 = dma.hbm_to_vmem [thread:$0]  %s6934_s14, 16, %s128_s22, [#allocation16]  }
  0x8c   :  { %5138 = dma.done.wait [#allocation4], 384  }
  0x8d   :  { %5139 = vsyncadd [#allocation4], 4294966912 }
  0x8e   :  { %5140 = dma.done.wait [#allocation7], 768  }
  0x8f   :  { %5141 = vsyncadd [#allocation7], 4294966528 }
  0x90   :  { %5142 = dma.done.wait [#allocation10], 2064  }
  0x91   :  { %5143 = vsyncadd [#allocation10], 4294965232 }
  0x92   :  { %5144 = dma.done.wait [#allocation13], 64  }
  0x93   :  { %5145 = vsyncadd [#allocation13], 4294967232 }
  0x94   :  { %5146 = dma.done.wait [#allocation16], 16  }
  0x95   :  { %5147 = vsyncadd [#allocation16], 4294967280  ;;  %v6940_v1 = vmov 0.0|0.0   ;;  %vm5163_vm0 = vmmov 0   ;;  %v6938_v2 = vmov 0.0   ;;  %v160_v3 = vld [vmem:[#allocation6] sm:$0xff] }
  0x96   :  { %4316 = vmatprep.subr.bf16.mxu0 %v6940_v1  ;;  %4059 = vmatprep.mubr.msk.f32.mxu0 %vm5163_vm0, %v6938_v2  ;;  %v161_v4 = vld [vmem:[#allocation6 + $0x8] sm:$0xff]  ;;  %s6990_s22 = sld [smem:[#allocation52_spill]]  ;;  %vm169_vm1 = vcmask 130048   ;;  %vm511_vm2 = vcmask 195584   ;;  %v5165_v11 = vmov 5   ;;  %v5166_v12 = vmov 0  }
  0x97   :  { %4715 = vmatprep.subr.bf16.mxu1 %v6940_v1  ;;  %4065 = vmatprep.mubr.msk.f32.mxu1 %vm5163_vm0, %v6938_v2  ;;  %v4317_v5 = vpack.c.bf16 %v161_v4, %v160_v3  ;;  %v5412_v9 = vld [vmem:[%s6922_s2] sm:$0xff]  ;;  %v5167_v13 = vmov 1   ;;  %v5168_v14 = vmov 2   ;;  %v263_v15 = vld [vmem:[%s6921_s1 + $0x8] sm:$0xff]  ;;  %v5169_v16 = vmov 6   ;;  %v264_v20 = vld [vmem:[%s6921_s1 + $0x10] sm:$0xff] }
  0x98   :  { %6991 = vst [vmem:[#allocation24_spill] sm:$0xff] %v5412_v9  ;;  %v262_v10 = vld [vmem:[%s6921_s1] sm:$0xff]  ;;  %4744 = vset.pattern.permute.xlu0 %v5165_v11  ;;  %4745 = vset.pattern.permute.xlu1 %v5166_v12  ;;  %v5170_v17 = vmov 7   ;;  %v5171_v18 = vmov 4   ;;  %v5172_v19 = vmov 3   ;;  %v265_v21 = vld [vmem:[%s6921_s1 + $0x18] sm:$0xff] }
  0x99   :  { %4318 = vmatpush3.bf16.msra.mxu0 %v4317_v5  ;;  %4716 = vmatpush3.bf16.msra.mxu1 %v4317_v5  ;;  %v5439_v22 = vld [vmem:[%s6921_s1 + $0x20] sm:$0xff]  ;;  %v5446_v23 = vld [vmem:[%s6921_s1 + $0x28] sm:$0xff]  ;;  %v748_v25 = vld [vmem:[#allocation8 + $0x8] sm:$0xff]  ;;  %vm466_vm3 = vcmask 261120   ;;  %s5173_s20 = smov 96   ;;  %s5174_s15 = smov 32  }
  0x9a   :  { %270 = vperm.xlu1 %4745, %v262_v10   ;;  %395 = vperm.xlu0 %4744, %v262_v10   ;;  %v747_v24 = vld [vmem:[#allocation8] sm:$0xff]  ;;  %v749_v26 = vld [vmem:[#allocation8 + $0x10] sm:$0xff]  ;;  %v750_v28 = vld [vmem:[#allocation8 + $0x18] sm:$0xff]  ;;  %vm473_vm4 = vcmask 523264   ;;  %vm480_vm5 = vcmask 785408   ;;  %vm963_vm6 = vcmask 392192  }
  0x9b   :  { %v5457_v27 = vpack.c.bf16 %v748_v25, %v747_v24  ;;  %v5460_v29 = vpack.c.bf16 %v750_v28, %v749_v26  ;;  %v3675_v30 = vld [vmem:[%s6925_s5] ss:$0 sm:$0xff]  ;;  %v5499_v44 = vld [vmem:[%s6922_s2 + $0x8] sm:$0xff]  ;;  %v5505_v45 = vld [vmem:[%s6922_s2 + $0x10] sm:$0xff]  ;;  %vm2948_vm8 = vcmask 188416  }
  0x9c   :  { %v157_v6 = vld [vmem:[%s6990_s22] sm:$0xff]  ;;  %v159_v7 = vld [vmem:[%s6990_s22 + $0x10] sm:$0xff]  ;;  %v158_v8 = vld [vmem:[%s6990_s22 + $0x8] sm:$0xff]  ;;  %6995 = vst [vmem:[#allocation28_spill] sm:$0xff] %v5499_v44 }
  0x9d   :  { %4060 = vmatmul.mubr.msk.f32.vlgmr.msra.gmra.mrb[0].mxu0 %vm169_vm1, %v157_v6  ;;  %4066 = vmatmul.mubr.msk.f32.vlgmr.msra.gmra.mrb[0].mxu1 %vm169_vm1, %v159_v7  ;;  %6996 = vst [vmem:[#allocation29_spill] sm:$0xff] %v5505_v45  ;;  %v5515_v46 = vld [vmem:[%s6922_s2 + $0x18] sm:$0xff]  ;;  %v5521_v47 = vld [vmem:[%s6922_s2 + $0x20] sm:$0xff]  ;;  %v5531_v48 = vld [vmem:[%s6922_s2 + $0x28] sm:$0xff] }
  0x9e   :  { %4062 = vmatprep.mubr.msk.f32.mxu0 %vm5163_vm0, %v6938_v2  ;;  %4074 = vmatprep.mubr.msk.f32.mxu1 %vm511_vm2, %v5412_v9  ;;  %6997 = vst [vmem:[#allocation30_spill] sm:$0xff] %v5515_v46  ;;  %6998 = vst [vmem:[#allocation31_spill] sm:$0xff] %v5521_v47  ;;  %v731_v49 = vld [vmem:[%s6926_s6 + $0x80] sm:$0xff]  ;;  %v732_v50 = vld [vmem:[%s6926_s6 + $0x88] sm:$0xff] }
  0x9f   :  { %4746 = vset.pattern.permute.xlu1 %v5167_v13  ;;  %4748 = vset.pattern.permute.xlu0 %v5168_v14  ;;  %6999 = vst [vmem:[#allocation32_spill] sm:$0xff] %v5531_v48  ;;  %v715_v51 = vld [vmem:[%s6926_s6] sm:$0xff]  ;;  %v5555_v52 = vpack.c.bf16 %v732_v50, %v731_v49  ;;  %v716_v53 = vld [vmem:[%s6926_s6 + $0x8] sm:$0xff]  ;;  %v733_v54 = vld [vmem:[%s6926_s6 + $0x90] sm:$0xff] }
  0xa0   :  { %299 = vperm.xlu1 %4746, %v262_v10   ;;  %323 = vperm.xlu0 %4748, %v262_v10   ;;  %v734_v55 = vld [vmem:[%s6926_s6 + $0x98] sm:$0xff]  ;;  %v5566_v56 = vpack.c.bf16 %v716_v53, %v715_v51  ;;  %v717_v58 = vld [vmem:[%s6926_s6 + $0x10] sm:$0xff]  ;;  %v735_v60 = vld [vmem:[%s6926_s6 + $0xa0] sm:$0xff] }
  0xa1   :  { %4063 = vmatmul.mubr.msk.f32.gmra.mrb[2].mxu0 %vm169_vm1, %v158_v8  ;;  %4324 = vmatprep.subr.bf16.mxu0 %v5457_v27  ;;  %7000 = vst [vmem:[#allocation33_spill] sm:$0xff] %v5555_v52  ;;  %v5568_v57 = vpack.c.bf16 %v734_v55, %v733_v54  ;;  %v718_v59 = vld [vmem:[%s6926_s6 + $0x18] sm:$0xff]  ;;  %v736_v61 = vld [vmem:[%s6926_s6 + $0xa8] sm:$0xff]  ;;  %v719_v0 = vld [vmem:[%s6926_s6 + $0x20] sm:$0xff] }
  0xa2   :  { %4326 = vmatpush3.bf16.msra.mxu0 %v5457_v27  ;;  %7001 = vst [vmem:[#allocation34_spill] sm:$0xff] %v5566_v56  ;;  %v5584_v62 = vpack.c.bf16 %v718_v59, %v717_v58  ;;  %v5587_v63 = vpack.c.bf16 %v736_v61, %v735_v60  ;;  %v720_v3 = vld [vmem:[%s6926_s6 + $0x28] sm:$0xff]  ;;  %v737_v4 = vld [vmem:[%s6926_s6 + $0xb0] sm:$0xff]  ;;  %v738_v5 = vld [vmem:[%s6926_s6 + $0xb8] sm:$0xff] }
  0xa3   :  { %4328 = vmatprep.subr.bf16.mxu0 %v5460_v29  ;;  %7002 = vst [vmem:[#allocation35_spill] sm:$0xff] %v5568_v57  ;;  %v5602_v6 = vpack.c.bf16 %v720_v3, %v719_v0  ;;  %v5605_v7 = vpack.c.bf16 %v738_v5, %v737_v4  ;;  %v721_v8 = vld [vmem:[%s6926_s6 + $0x30] sm:$0xff]  ;;  %v723_v24 = vld [vmem:[%s6926_s6 + $0x40] sm:$0xff]  ;;  %v724_v25 = vld [vmem:[%s6926_s6 + $0x48] sm:$0xff] }
  0xa4   :  { %4747 = vset.pattern.permute.xlu1 %v5169_v16  ;;  %4753 = vset.pattern.permute.xlu0 %v5167_v13  ;;  %7003 = vst [vmem:[#allocation36_spill] sm:$0xff] %v5584_v62  ;;  %7004 = vst [vmem:[#allocation37_spill] sm:$0xff] %v5587_v63  ;;  %v5650_v26 = vpack.c.bf16 %v724_v25, %v723_v24  ;;  %v741_v28 = vld [vmem:[%s6926_s6 + $0xd0] sm:$0xff]  ;;  %v746_v51 = vld [vmem:[%s6926_s6 + $0xf8] sm:$0xff] }
  0xa5   :  { %419 = vperm.xlu1 %4747, %v262_v10   ;;  %303 = vperm.xlu0 %4753, %v263_v15   ;;  %7005 = vst [vmem:[#allocation38_spill] sm:$0xff] %v5602_v6  ;;  %7006 = vst [vmem:[#allocation39_spill] sm:$0xff] %v5605_v7  ;;  %v745_v50 = vld [vmem:[%s6926_s6 + $0xf0] sm:$0xff]  ;;  %v730_v58 = vld [vmem:[%s6926_s6 + $0x78] sm:$0xff] }
  0xa6   :  { %4330 = vmatpush3.bf16.msra.mxu0 %v5460_v29  ;;  %7009 = vst [vmem:[#allocation42_spill] sm:$0xff] %v5650_v26  ;;  %v5700_v54 = vpack.c.bf16 %v746_v51, %v745_v50  ;;  %v729_v55 = vld [vmem:[%s6926_s6 + $0x70] sm:$0xff]  ;;  %vm6714_vm7 = vmpackc.low %vm473_vm4, %vm473_vm4 }
  0xa7   :  { %4363 = vmatprep.subr.bf16.mxu0 %v6940_v1  ;;  %v5710_v60 = vpack.c.bf16 %v730_v58, %v729_v55 }
  0xa8   :  { %7014 = vst [vmem:[#allocation47_spill] sm:$0xff] %v5700_v54 }
  0xa9   :  { %4749 = vset.pattern.permute.xlu1 %v5170_v17  ;;  %4754 = vset.pattern.permute.xlu0 %v5171_v18  ;;  %7015 = vst [vmem:[#allocation48_spill] sm:$0xff] %v5710_v60 }
  0xaa   :  { %443 = vperm.xlu1 %4749, %v262_v10   ;;  %371 = vperm.xlu0 %4754, %v262_v10  }
  0xae   :  { %4750 = vset.pattern.permute.xlu1 %v5172_v19  ;;  %375 = vperm.xlu0 %4754, %v263_v15  }
  0xaf   :  { %347 = vperm.xlu1 %4750, %v262_v10   ;;  %v722_v10 = vld [vmem:[%s6926_s6 + $0x38] sm:$0xff] }
  0xb2   :  { %379 = vperm.xlu0 %4754, %v264_v20  }
  0xb3   :  { %4751 = vset.pattern.permute.xlu1 %v5165_v11 }
  0xb4   :  { %399 = vperm.xlu1 %4751, %v263_v15  }
  0xb6   :  { %383 = vperm.xlu0 %4754, %v265_v21  }
  0xb8   :  { %4752 = vset.pattern.permute.xlu1 %v5166_v12 }
  0xb9   :  { %275 = vperm.xlu1 %4752, %v263_v15  }
  0xba   :  { %387 = vperm.xlu0 %4754, %v5439_v22  }
  0xbd   :  { %4755 = vset.pattern.permute.xlu1 %v5169_v16 }
  0xbe   :  { %423 = vperm.xlu1 %4755, %v263_v15   ;;  %391 = vperm.xlu0 %4754, %v5446_v23  }
  0xc2   :  { %4756 = vset.pattern.permute.xlu1 %v5168_v14  ;;  %4773 = vset.pattern.permute.xlu0 %v5166_v12 }
  0xc3   :  { %327 = vperm.xlu1 %4756, %v263_v15   ;;  %280 = vperm.xlu0 %4773, %v264_v20  }
  0xc7   :  { %4757 = vset.pattern.permute.xlu1 %v5172_v19  ;;  %285 = vperm.xlu0 %4773, %v265_v21  }
  0xc8   :  { %351 = vperm.xlu1 %4757, %v263_v15  }
  0xcb   :  { %290 = vperm.xlu0 %4773, %v5439_v22  }
  0xcc   :  { %4758 = vset.pattern.permute.xlu1 %v5165_v11 }
  0xcd   :  { %403 = vperm.xlu1 %4758, %v264_v20  }
  0xcf   :  { %295 = vperm.xlu0 %4773, %v5446_v23  }
  0xd1   :  { %4759 = vset.pattern.permute.xlu1 %v5167_v13 }
  0xd2   :  { %307 = vperm.xlu1 %4759, %v264_v20  }
  0xd3   :  { %4775 = vset.pattern.permute.xlu0 %v5170_v17 }
  0xd4   :  { %447 = vperm.xlu0 %4775, %v263_v15  }
  0xd6   :  { %4760 = vset.pattern.permute.xlu1 %v5169_v16 }
  0xd7   :  { %427 = vperm.xlu1 %4760, %v264_v20  }
  0xd8   :  { %451 = vperm.xlu0 %4775, %v264_v20  }
  0xdb   :  { %4761 = vset.pattern.permute.xlu1 %v5168_v14 }
  0xdc   :  { %331 = vperm.xlu1 %4761, %v264_v20   ;;  %455 = vperm.xlu0 %4775, %v265_v21  }
  0xe0   :  { %4762 = vset.pattern.permute.xlu1 %v5172_v19  ;;  %459 = vperm.xlu0 %4775, %v5439_v22  }
  0xe1   :  { %355 = vperm.xlu1 %4762, %v264_v20   ;;  %v739_v20 = vld [vmem:[%s6926_s6 + $0xc0] sm:$0xff] }
  0xe4   :  { %463 = vperm.xlu0 %4775, %v5446_v23  }
  0xe5   :  { %4763 = vset.pattern.permute.xlu1 %v5165_v11 }
  0xe6   :  { %407 = vperm.xlu1 %4763, %v265_v21  }
  0xe8   :  { %4791 = vset.pattern.permute.xlu0 %v5166_v12 }
  0xea   :  { %4764 = vset.pattern.permute.xlu1 %v5167_v13 }
  0xeb   :  { %311 = vperm.xlu1 %4764, %v265_v21  }
  0xef   :  { %4765 = vset.pattern.permute.xlu1 %v5169_v16 }
  0xf0   :  { %431 = vperm.xlu1 %4765, %v265_v21  }
  0xf4   :  { %4766 = vset.pattern.permute.xlu1 %v5168_v14 }
  0xf5   :  { %335 = vperm.xlu1 %4766, %v265_v21  }
  0xf9   :  { %4767 = vset.pattern.permute.xlu1 %v5172_v19 }
  0xfa   :  { %359 = vperm.xlu1 %4767, %v265_v21   ;;  %v740_v21 = vld [vmem:[%s6926_s6 + $0xc8] sm:$0xff] }
  0xfe   :  { %4768 = vset.pattern.permute.xlu1 %v5165_v11 }
  0xff   :  { %411 = vperm.xlu1 %4768, %v5439_v22  }
 0x103   :  { %4769 = vset.pattern.permute.xlu1 %v5167_v13 }
 0x104   :  { %315 = vperm.xlu1 %4769, %v5439_v22  }
 0x108   :  { %4770 = vset.pattern.permute.xlu1 %v5169_v16 }
 0x109   :  { %435 = vperm.xlu1 %4770, %v5439_v22  }
 0x10d   :  { %4771 = vset.pattern.permute.xlu1 %v5168_v14 }
 0x10e   :  { %339 = vperm.xlu1 %4771, %v5439_v22  }
 0x112   :  { %4772 = vset.pattern.permute.xlu1 %v5172_v19 }
 0x113   :  { %363 = vperm.xlu1 %4772, %v5439_v22  }
 0x117   :  { %4774 = vset.pattern.permute.xlu1 %v5165_v11  ;;  %v5614_v11 = vpack.c.bf16 %v722_v10, %v721_v8 }
 0x118   :  { %415 = vperm.xlu1 %4774, %v5446_v23  }
 0x119   :  { %7007 = vst [vmem:[#allocation40_spill] sm:$0xff] %v5614_v11 }
 0x11c   :  { %4776 = vset.pattern.permute.xlu1 %v5167_v13 }
 0x11d   :  { %319 = vperm.xlu1 %4776, %v5446_v23  }
 0x121   :  { %4777 = vset.pattern.permute.xlu1 %v5169_v16 }
 0x122   :  { %439 = vperm.xlu1 %4777, %v5446_v23  }
 0x126   :  { %4778 = vset.pattern.permute.xlu1 %v5168_v14 }
 0x127   :  { %343 = vperm.xlu1 %4778, %v5446_v23  }
 0x12b   :  { %4779 = vset.pattern.permute.xlu1 %v5172_v19 }
 0x12c   :  { %367 = vperm.xlu1 %4779, %v5446_v23   ;;  %v5642_v23 = vpack.c.bf16 %v740_v21, %v739_v20  ;;  %v396_v21 = vpop.permute.xlu0 %395 }
 0x12e   :  { %7008 = vst [vmem:[#allocation41_spill] sm:$0xff] %v5642_v23 }
 0x130   :  { %4790 = vset.pattern.permute.xlu1 %v5166_v12  ;;  %v5618_v12 = vpop.permute.xlu1 %270  ;;  %v324_v25 = vpop.permute.xlu0 %323 }
 0x134   :  { %v5620_v13 = vpop.permute.xlu1 %299 }
 0x138   :  { %v5622_v14 = vpop.permute.xlu1 %419 }
 0x13c   :  { %v5624_v15 = vpop.permute.xlu1 %443 }
 0x140   :  { %v5626_v16 = vpop.permute.xlu1 %347 }
 0x144   :  { %v5628_v17 = vpop.permute.xlu1 %399 }
 0x148   :  { %v5630_v18 = vpop.permute.xlu1 %275 }
 0x14c   :  { %v5632_v19 = vpop.permute.xlu1 %423 }
 0x150   :  { %v5640_v22 = vpop.permute.xlu1 %327 }
 0x170   :  { %v245_v31 = vpop.f32.mrb[0].mxu0  ;;  %v255_v32 = vpop.f32.mrb[0].mxu1 }
 0x171   :  { %v4061_v33 = vpop.f32.mrb[1].mxu0  ;;  %v4067_v34 = vpop.f32.mrb[1].mxu1  ;;  %v246_v35 = vadd.f32 %v3675_v30, %v245_v31  ;;  %v256_v39 = vadd.f32 %v3675_v30, %v255_v32  ;;  %v725_v32 = vld [vmem:[%s6926_s6 + $0x50] sm:$0xff] }
 0x172   :  { %v726_v33 = vld [vmem:[%s6926_s6 + $0x58] sm:$0xff] }
 0x173   :  { %v5484_v40 = vmax.f32 %v246_v35, 0.0  ;;  %v5489_v42 = vmax.f32 %v256_v39, 0.0  ;;  %v5668_v34 = vpack.c.bf16 %v726_v33, %v725_v32  ;;  %v5670_v35 = vpop.permute.xlu1 %351  ;;  %v727_v39 = vld [vmem:[%s6926_s6 + $0x60] sm:$0xff] }
 0x174   :  { %v250_v36 = vpop.f32.mrb[2].mxu0 }
 0x175   :  { %v251_v37 = vadd.f32 %v3675_v30, %v250_v36  ;;  %v4064_v38 = vpop.f32.mrb[3].mxu0  ;;  %6992 = vst [vmem:[#allocation25_spill] sm:$0xff] %v5484_v40  ;;  %6994 = vst [vmem:[#allocation27_spill] sm:$0xff] %v5489_v42  ;;  %v742_v30 = vld [vmem:[%s6926_s6 + $0xd8] sm:$0xff]  ;;  %v743_v36 = vld [vmem:[%s6926_s6 + $0xe0] sm:$0xff] }
 0x176   :  { %v5660_v31 = vpack.c.bf16 %v742_v30, %v741_v28  ;;  %7011 = vst [vmem:[#allocation44_spill] sm:$0xff] %v5668_v34  ;;  %v304_v30 = vpop.permute.xlu0 %303 }
 0x177   :  { %v5486_v41 = vmax.f32 %v251_v37, 0.0  ;;  %v744_v37 = vld [vmem:[%s6926_s6 + $0xe8] sm:$0xff]  ;;  %v5698_v53 = vpop.permute.xlu1 %403 }
 0x178   :  { %7010 = vst [vmem:[#allocation43_spill] sm:$0xff] %v5660_v31  ;;  %v5680_v38 = vpack.c.bf16 %v744_v37, %v743_v36 }
 0x179   :  { %6993 = vst [vmem:[#allocation26_spill] sm:$0xff] %v5486_v41  ;;  %v4319_v43 = vpack.c.bf16 %v5486_v41, %v5484_v40 }
 0x17a   :  { %7012 = vst [vmem:[#allocation45_spill] sm:$0xff] %v5680_v38  ;;  %v372_v33 = vpop.permute.xlu0 %371 }
 0x17b   :  { %4320 = vmatprep.subr.bf16.mxu1 %v4319_v43  ;;  %v5731_v3 = vpop.permute.xlu1 %307 }
 0x17c   :  { %4322 = vmatpush3.bf16.msra.mxu1 %v4319_v43  ;;  %v728_v43 = vld [vmem:[%s6926_s6 + $0x68] sm:$0xff]  ;;  %s5175_s6 = smov 64  }
 0x17d   :  { %4072 = vmatprep.subr.mxu1 %v5489_v42  ;;  %v5688_v49 = vpack.c.bf16 %v728_v43, %v727_v39 }
 0x17e   :  { %v376_v37 = vpop.permute.xlu0 %375 }
 0x17f   :  { %7013 = vst [vmem:[#allocation46_spill] sm:$0xff] %v5688_v49  ;;  %v5749_v10 = vpop.permute.xlu1 %427 }
 0x180   :  { %4073 = vmatpush3.msra.mxu1 %v5489_v42 }
 0x181   :  { %4075 = vmatmul.mubr.msk.f32.vlgmr.msra.gmra.mrb[2].mxu1 %vm511_vm2, %v5499_v44  ;;  %4332 = vmatprep.subr.bf16.mxu1 %v5555_v52  ;;  %v488_v44 = vsel %vm466_vm3, %v376_v37, %v5628_v17 }
 0x182   :  { %4077 = vmatprep.mubr.msk.f32.mxu1 %vm511_vm2, %v5505_v45  ;;  %4334 = vmatpush3.bf16.msra.mxu1 %v5566_v56  ;;  %v5797_v43 = vpop.permute.xlu0 %379  ;;  %v487_v56 = vsel %vm466_vm3, %v372_v33, %v396_v21  ;;  %v467_v45 = vsel %vm466_vm3, %v5618_v12, %v5620_v13  ;;  %v494_v17 = vsel %vm473_vm4, %v488_v44, %v5632_v19 }
 0x183   :  { %4336 = vmatprep.subr.bf16.mxu1 %v5568_v57  ;;  %v5759_v20 = vpop.permute.xlu1 %331 }
 0x185   :  { %4078 = vmatmul.mubr.msk.f32.gmra.mrb[4].mxu1 %vm511_vm2, %v5515_v46 }
 0x186   :  { %4080 = vmatprep.mubr.msk.f32.mxu1 %vm511_vm2, %v5521_v47  ;;  %4338 = vmatpush3.bf16.msra.mxu1 %v5584_v62  ;;  %v5801_v51 = vpop.permute.xlu0 %383 }
 0x187   :  { %4340 = vmatprep.subr.bf16.mxu1 %v5587_v63  ;;  %v5769_v24 = vpop.permute.xlu1 %355 }
 0x189   :  { %4081 = vmatmul.mubr.msk.f32.gmra.mrb[6].mxu1 %vm511_vm2, %v5531_v48 }
 0x18a   :  { %4342 = vmatpush3.bf16.msra.mxu1 %v5602_v6  ;;  %v5805_v58 = vpop.permute.xlu0 %387 }
 0x18b   :  { %4344 = vmatprep.subr.bf16.mxu1 %v5605_v7  ;;  %v5775_v28 = vpop.permute.xlu1 %407 }
 0x18e   :  { %4346 = vmatpush3.bf16.msra.mxu1 %v5614_v11  ;;  %v5809_v1 = vpop.permute.xlu0 %391 }
 0x18f   :  { %4348 = vmatprep.subr.bf16.mxu1 %v5642_v23  ;;  %v5783_v32 = vpop.permute.xlu1 %311 }
 0x192   :  { %4350 = vmatpush3.bf16.msra.mxu1 %v5650_v26 }
 0x193   :  { %4352 = vmatprep.subr.bf16.mxu1 %v5660_v31  ;;  %v5787_v36 = vpop.permute.xlu1 %431 }
 0x196   :  { %4354 = vmatpush3.bf16.msra.mxu1 %v5668_v34 }
 0x197   :  { %4356 = vmatprep.subr.bf16.mxu1 %v5680_v38  ;;  %v5793_v39 = vpop.permute.xlu1 %335 }
 0x19a   :  { %4358 = vmatpush3.bf16.msra.mxu1 %v5688_v49 }
 0x19b   :  { %4360 = vmatprep.subr.bf16.mxu1 %v5700_v54  ;;  %v5799_v50 = vpop.permute.xlu1 %359 }
 0x19e   :  { %4362 = vmatpush3.bf16.msra.mxu1 %v5710_v60 }
 0x19f   :  { %4393 = vmatprep.subr.bf16.mxu1 %v5457_v27  ;;  %v5803_v55 = vpop.permute.xlu1 %411 }
 0x254   :  { %v5708_v59 = vpop.f32.mrb[2].mxu1 }
 0x255   :  { %669 = vrot.lane.b32.xlu0 %v5708_v59, %s5173_s20  ;;  %633 = vrot.lane.b32.xlu1 %v5708_v59, %s5174_s15  ;;  %v5716_v61 = vpop.f32.mrb[3].mxu1 }
 0x256   :  { %4091 = vmatprep.mubr.msk.f32.mxu0 %vm466_vm3, %v5716_v61 }
 0x257   :  { %4092 = vmatmul.mubr.msk.f32.vlgmr.msra.gmra.mrb[4].mxu0 %vm466_vm3, %v5708_v59 }
 0x258   :  { %v5724_v0 = vpop.f32.mrb[4].mxu1 }
 0x259   :  { %651 = vrot.lane.b32.xlu1 %v5708_v59, %s5175_s6  ;;  %667 = vrot.lane.b32.xlu0 %v5716_v61, %s5173_s20  ;;  %v5733_v4 = vpop.f32.mrb[5].mxu1 }
 0x25a   :  { %4094 = vmatprep.mubr.msk.f32.mxu0 %vm466_vm3, %v5733_v4 }
 0x25b   :  { %4095 = vmatmul.mubr.msk.f32.gmra.mrb[6].mxu0 %vm466_vm3, %v5724_v0 }
 0x25c   :  { %v5739_v5 = vpop.f32.mrb[6].mxu1 }
 0x25d   :  { %7016 = vst [vmem:[#allocation49_spill] sm:$0xff] %v5739_v5  ;;  %631 = vrot.lane.b32.xlu1 %v5716_v61, %s5174_s15  ;;  %673 = vrot.lane.b32.xlu0 %v5724_v0, %s5173_s20  ;;  %v5745_v8 = vpop.f32.mrb[7].mxu1 }
 0x25e   :  { %4097 = vmatprep.mubr.msk.f32.mxu0 %vm466_vm3, %v5745_v8 }
 0x25f   :  { %4098 = vmatmul.mubr.msk.f32.gmra.mrb[8].mxu0 %vm466_vm3, %v5739_v5 }
 0x260   :  { %4112 = vmatprep.mubr.msk.f32.mxu0 %vm5163_vm0, %v6938_v2  ;;  %v5807_v2 = vpop.permute.xlu1 %315 }
 0x261   :  { %649 = vrot.lane.b32.xlu1 %v5716_v61, %s5175_s6  ;;  %671 = vrot.lane.b32.xlu0 %v5733_v4, %s5173_s20 }
 0x265   :  { %637 = vrot.lane.b32.xlu1 %v5724_v0, %s5174_s15  ;;  %657 = vrot.lane.b32.xlu0 %v5745_v8, %s5175_s6 }
 0x269   :  { %655 = vrot.lane.b32.xlu1 %v5724_v0, %s5175_s6  ;;  %641 = vrot.lane.b32.xlu0 %v5739_v5, %s5174_s15 }
 0x26d   :  { %635 = vrot.lane.b32.xlu1 %v5733_v4, %s5174_s15  ;;  %677 = vrot.lane.b32.xlu0 %v5739_v5, %s5173_s20 }
 0x271   :  { %653 = vrot.lane.b32.xlu1 %v5733_v4, %s5175_s6  ;;  %1061 = vrot.lane.b32.xlu0 %v5486_v41, %s5174_s15  ;;  %v5811_v41 = vpop.permute.xlu1 %435 }
 0x275   :  { %639 = vrot.lane.b32.xlu1 %v5745_v8, %s5174_s15  ;;  %v5813_v60 = vpop.permute.xlu1 %339 }
 0x279   :  { %675 = vrot.lane.b32.xlu1 %v5745_v8, %s5173_s20  ;;  %v5817_v54 = vpop.permute.xlu1 %363 }
 0x27d   :  { %659 = vrot.lane.b32.xlu1 %v5739_v5, %s5175_s6  ;;  %v5821_v38 = vpop.permute.xlu1 %415  ;;  %v468_v5 = vsel %vm466_vm3, %v5630_v18, %v304_v30 }
 0x27e   :  { %v475_v18 = vsel %vm473_vm4, %v468_v5, %v5640_v22  ;;  %v490_v5 = vsel %vm466_vm3, %v5801_v51, %v5775_v28 }
 0x27f   :  { %v496_v28 = vsel %vm473_vm4, %v490_v5, %v5787_v36 }
 0x281   :  { %1059 = vrot.lane.b32.xlu1 %v5484_v40, %s5174_s15  ;;  %v281_v40 = vpop.permute.xlu0 %280  ;;  %v5825_v31 = vpop.permute.xlu1 %319 }
 0x285   :  { %1063 = vrot.lane.b32.xlu1 %v5489_v42, %s5174_s15  ;;  %v5815_v42 = vpop.permute.xlu0 %285  ;;  %v5827_v23 = vpop.permute.xlu1 %439 }
 0x289   :  { %v5819_v49 = vpop.permute.xlu0 %290  ;;  %v5831_v7 = vpop.permute.xlu1 %343 }
 0x28d   :  { %v5823_v34 = vpop.permute.xlu0 %295  ;;  %v5837_v63 = vpop.permute.xlu1 %367 }
 0x28e   :  { %7017 = vst [vmem:[#allocation50_spill] sm:$0xff] %v5837_v63  ;;  %v493_v63 = vsel %vm473_vm4, %v487_v56, %v5622_v14 }
 0x28f   :  { %v5862_v56 = vsel %vm480_vm5, %v493_v63, %v5624_v15 }
 0x291   :  { %v448_v26 = vpop.permute.xlu0 %447 }
 0x292   :  { %v5873_v44 = vsel %vm480_vm5, %v494_v17, %v448_v26  ;;  %v489_v26 = vsel %vm466_vm3, %v5797_v43, %v5698_v53  ;;  %v470_v43 = vsel %vm466_vm3, %v5815_v42, %v5783_v32  ;;  %v491_v42 = vsel %vm466_vm3, %v5805_v58, %v5803_v55 }
 0x293   :  { %v495_v30 = vsel %vm473_vm4, %v489_v26, %v5749_v10  ;;  %v497_v58 = vsel %vm473_vm4, %v491_v42, %v5811_v41 }
 0x295   :  { %v5829_v11 = vpop.permute.xlu0 %451 }
 0x296   :  { %v5912_v10 = vsel %vm480_vm5, %v495_v30, %v5829_v11  ;;  %v477_v11 = vsel %vm473_vm4, %v470_v43, %v5793_v39 }
 0x297   :  { %v5941_v39 = vsel %vm480_vm5, %v477_v11, %v5799_v50 }
 0x299   :  { %v5833_v6 = vpop.permute.xlu0 %455 }
 0x29d   :  { %v5835_v48 = vpop.permute.xlu0 %459 }
 0x29e   :  { %v5955_v50 = vsel %vm480_vm5, %v497_v58, %v5835_v48 }
 0x2a1   :  { %v5839_v47 = vpop.permute.xlu0 %463 }
 0x2a2   :  { %7018 = vst [vmem:[#allocation51_spill] sm:$0xff] %v5839_v47  ;;  %v474_v47 = vsel %vm473_vm4, %v467_v45, %v324_v25 }
 0x2c7   :  { %v634_v62 = vpop.permute.xlu1 %633  ;;  %v670_v57 = vpop.permute.xlu0 %669 }
 0x2c8   :  { %v686_v9 = vsel %vm466_vm3, %v5708_v59, %v634_v62 }
 0x2cb   :  { %v652_v46 = vpop.permute.xlu1 %651  ;;  %v668_v33 = vpop.permute.xlu0 %667 }
 0x2cc   :  { %v692_v21 = vsel %vm473_vm4, %v686_v9, %v652_v46  ;;  %v5866_v9 = vsel %vm480_vm5, %v474_v47, %v5626_v16 }
 0x2cd   :  { %v698_v45 = vsel %vm480_vm5, %v692_v21, %v670_v57  ;;  %v5880_v57 = vsel %vm480_vm5, %v475_v18, %v5670_v35  ;;  %v469_v35 = vsel %vm466_vm3, %v281_v40, %v5731_v3 }
 0x2ce   :  { %v706_v47 = vmul.f32 %v698_v45, %v5873_v44  ;;  %v705_v19 = vmul.f32 %v698_v45, %v5880_v57  ;;  %v476_v37 = vsel %vm473_vm4, %v469_v35, %v5759_v20 }
 0x2cf   :  { %v632_v52 = vpop.permute.xlu1 %631  ;;  %v674_v15 = vpop.permute.xlu0 %673  ;;  %v5916_v20 = vsel %vm480_vm5, %v476_v37, %v5769_v24  ;;  %v471_v24 = vsel %vm466_vm3, %v5819_v49, %v5807_v2  ;;  %v492_v2 = vsel %vm466_vm3, %v5809_v1, %v5821_v38  ;;  %v472_v49 = vsel %vm466_vm3, %v5823_v34, %v5825_v31  ;;  %v7020_v38 = vld [vmem:[#allocation49_spill] sm:$0xff] }
 0x2d0   :  { %v685_v12 = vsel %vm466_vm3, %v5716_v61, %v632_v52  ;;  %v7019_v61 = vmov 0.0|0.0   ;;  %v498_v31 = vsel %vm473_vm4, %v492_v2, %v5827_v23  ;;  %v479_v34 = vsel %vm473_vm4, %v472_v49, %v5831_v7 }
 0x2d3   :  { %v650_v13 = vpop.permute.xlu1 %649  ;;  %v672_v22 = vpop.permute.xlu0 %671 }
 0x2d4   :  { %v691_v62 = vsel %vm473_vm4, %v685_v12, %v650_v13 }
 0x2d5   :  { %v697_v46 = vsel %vm480_vm5, %v691_v62, %v668_v33  ;;  %v5929_v33 = vsel %vm480_vm5, %v496_v28, %v5833_v6  ;;  %v478_v6 = vsel %vm473_vm4, %v471_v24, %v5813_v60 }
 0x2d6   :  { %v703_v52 = vmul.f32 %v697_v46, %v5866_v9  ;;  %v704_v14 = vmul.f32 %v697_v46, %v5862_v56  ;;  %v5961_v1 = vsel %vm480_vm5, %v478_v6, %v5817_v54 }
 0x2d7   :  { %v638_v63 = vpop.permute.xlu1 %637 }
 0x2d8   :  { %922 = vmatprep.mubr.f32.mxu1 %v704_v14  ;;  %v688_v25 = vsel %vm466_vm3, %v5724_v0, %v638_v63  ;;  %v658_v0 = vpop.permute.xlu0 %657  ;;  %v7021_v63 = vld [vmem:[#allocation51_spill] sm:$0xff] }
 0x2d9   :  { %923 = vmatmul.mubr.f32.vlgmr.msra.gmra.mrb[8].mxu1 %v703_v52  ;;  %v5973_v54 = vsel %vm480_vm5, %v498_v31, %v7021_v63  ;;  %v1073_v31 = vld [vmem:[#allocation11 + $0x10] sm:$0xff] }
 0x2da   :  { %927 = vmatprep.mubr.f32.mxu1 %v706_v47  ;;  %4395 = vmatpush3.bf16.msra.mxu1 %v5457_v27  ;;  %v1077_v63 = vld [vmem:[#allocation11 + $0x30] sm:$0xff] }
 0x2db   :  { %v656_v16 = vpop.permute.xlu1 %655  ;;  %4397 = vmatprep.subr.bf16.mxu1 %v5460_v29 }
 0x2dc   :  { %v694_v53 = vsel %vm473_vm4, %v688_v25, %v656_v16  ;;  %v642_v17 = vpop.permute.xlu0 %641 }
 0x2dd   :  { %928 = vmatmul.mubr.f32.gmra.mrb[10].mxu1 %v705_v19  ;;  %v690_v46 = vsel %vm466_vm3, %v7020_v38, %v642_v17  ;;  %v1076_v38 = vld [vmem:[#allocation11 + $0x28] sm:$0xff] }
 0x2de   :  { %4399 = vmatpush3.bf16.msra.mxu1 %v5460_v29 }
 0x2df   :  { %v636_v59 = vpop.permute.xlu1 %635  ;;  %4432 = vmatprep.subr.bf16.mxu1 %v7019_v61 }
 0x2e0   :  { %v687_v40 = vsel %vm466_vm3, %v5733_v4, %v636_v59  ;;  %v700_v4 = vsel %vm480_vm5, %v694_v53, %v674_v15  ;;  %v678_v14 = vpop.permute.xlu0 %677  ;;  %v7022_v15 = vld [vmem:[#allocation50_spill] sm:$0xff] }
 0x2e1   :  { %v710_v55 = vmul.f32 %v700_v4, %v5929_v33  ;;  %v709_v62 = vmul.f32 %v700_v4, %v5941_v39  ;;  %v5977_v23 = vsel %vm480_vm5, %v479_v34, %v7022_v15  ;;  %v1080_v15 = vld [vmem:[#allocation11 + $0x48] sm:$0xff] }
 0x2e2   :  { %7023 = vst [vmem:[#allocation49_spill] sm:$0xff] %v5977_v23 }
 0x2e3   :  { %v654_v3 = vpop.permute.xlu1 %653 }
 0x2e4   :  { %v693_v51 = vsel %vm473_vm4, %v687_v40, %v654_v3 }
 0x2e5   :  { %v699_v21 = vsel %vm480_vm5, %v693_v51, %v672_v22 }
 0x2e6   :  { %v708_v32 = vmul.f32 %v699_v21, %v5912_v10  ;;  %v707_v36 = vmul.f32 %v699_v21, %v5916_v20 }
 0x2e7   :  { %v640_v12 = vpop.permute.xlu1 %639 }
 0x2e8   :  { %v689_v13 = vsel %vm466_vm3, %v5745_v8, %v640_v12  ;;  %932 = vmatprep.mubr.f32.mxu1 %v708_v32 }
 0x2e9   :  { %933 = vmatmul.mubr.f32.gmra.mrb[12].mxu1 %v707_v36  ;;  %v695_v41 = vsel %vm473_vm4, %v689_v13, %v658_v0 }
 0x2ea   :  { %937 = vmatprep.mubr.f32.mxu1 %v710_v55 }
 0x2eb   :  { %v676_v8 = vpop.permute.xlu1 %675 }
 0x2ec   :  { %v701_v60 = vsel %vm480_vm5, %v695_v41, %v676_v8  ;;  %v1072_v41 = vld [vmem:[#allocation11 + $0x8] sm:$0xff]  ;;  %v1074_v8 = vld [vmem:[#allocation11 + $0x18] sm:$0xff] }
 0x2ed   :  { %v712_v45 = vmul.f32 %v701_v60, %v5955_v50  ;;  %938 = vmatmul.mubr.f32.gmra.mrb[14].mxu1 %v709_v62  ;;  %v711_v48 = vmul.f32 %v701_v60, %v5961_v1  ;;  %v5984_v60 = vpack.c.bf16 %v1074_v8, %v1072_v41  ;;  %v7025_v41 = vld [vmem:[#allocation24_spill] sm:$0xff]  ;;  %v1089_v8 = vlaneseq }
 0x2ef   :  { %942 = vmatprep.mubr.f32.mxu1 %v712_v45  ;;  %v660_v52 = vpop.permute.xlu1 %659  ;;  %v1071_v45 = vld [vmem:[#allocation11] sm:$0xff] }
 0x2f0   :  { %v696_v18 = vsel %vm473_vm4, %v690_v46, %v660_v52  ;;  %v1078_v46 = vld [vmem:[#allocation11 + $0x38] sm:$0xff]  ;;  %v5988_v52 = vpack.c.bf16 %v1073_v31, %v1071_v45  ;;  %v1087_v31 = vld [vmem:[#allocation12] sm:$0x3] }
 0x2f1   :  { %v702_v7 = vsel %vm480_vm5, %v696_v18, %v678_v14  ;;  %943 = vmatmul.mubr.f32.gmra.mrb[16].mxu1 %v711_v48  ;;  %v5986_v48 = vld [vmem:[#allocation3] sm:$0xff]  ;;  %v5991_v14 = vpack.c.bf16 %v1078_v46, %v1076_v38  ;;  %v1075_v18 = vld [vmem:[#allocation11 + $0x20] sm:$0xff] }
 0x2f2   :  { %v714_v47 = vmul.f32 %v702_v7, %v5973_v54  ;;  %v713_v16 = vmul.f32 %v702_v7, %v5977_v23  ;;  %v1082_v7 = vld [vmem:[#allocation11 + $0x58] sm:$0xff] }
 0x2f4   :  { %947 = vmatprep.mubr.f32.mxu1 %v714_v47  ;;  %v7024_v47 = vmov 0.0  }
 0x2f5   :  { %948 = vmatmul.mubr.f32.gmra.mrb[18].mxu1 %v713_v16  ;;  %v5997_v16 = vld [vmem:[#allocation3 + $0x8] sm:$0xff] }
 0x32a   :  { %v4093_v19 = vpop.f32.mrb[4].mxu0 }
 0x32b   :  { %v829_v22 = vpop.f32.mrb[5].mxu0 }
 0x32e   :  { %v4096_v26 = vpop.f32.mrb[6].mxu0 }
 0x32f   :  { %v839_v35 = vpop.f32.mrb[7].mxu0 }
 0x332   :  { %v4099_v59 = vpop.f32.mrb[8].mxu0 }
 0x333   :  { %v849_v5 = vpop.f32.mrb[9].mxu0 }
 0x3ac   :  { %v3831_v25 = vpop.f32.mrb[8].mxu1 }
 0x3ad   :  { %v3832_v30 = vpop.f32.mrb[9].mxu1 }
 0x3ae   :  { %v3833_v37 = vadd.f32 %v3832_v30, %v3831_v25  ;;  %v1084_v25 = vld [vmem:[#allocation11 + $0x68] sm:$0xff]  ;;  %v1086_v30 = vld [vmem:[#allocation11 + $0x78] sm:$0xff] }
 0x3b0   :  { %v925_v53 = vadd.f32 %v3833_v37, %v829_v22  ;;  %v3834_v40 = vpop.f32.mrb[10].mxu1  ;;  %v6003_v22 = vpack.c.bf16 %v1082_v7, %v1080_v15  ;;  %v6019_v37 = vpack.c.bf16 %v1086_v30, %v1084_v25 }
 0x3b1   :  { %v3835_v3 = vpop.f32.mrb[11].mxu1 }
 0x3b2   :  { %v3836_v43 = vadd.f32 %v3835_v3, %v3834_v40  ;;  %v1085_v40 = vld [vmem:[#allocation11 + $0x70] sm:$0xff] }
 0x3b4   :  { %v930_v28 = vadd.f32 %v4093_v19, %v3836_v43  ;;  %v6000_v19 = vpack.c.bf16 %v1077_v63, %v1075_v18  ;;  %v6025_v43 = vld [vmem:[#allocation9] ss:$0 sm:$0xff] }
 0x3b6   :  { %v4364_v0 = vpack.c.bf16 %v930_v28, %v925_v53  ;;  %v1083_v53 = vld [vmem:[#allocation11 + $0x60] sm:$0xff] }
 0x3b7   :  { %v6021_v3 = vpack.c.bf16 %v1085_v40, %v1083_v53 }
 0x3b8   :  { %4365 = vmatpush3.bf16.msra.mxu0 %v4364_v0 }
 0x3b9   :  { %4366 = vmatprep.subr.bf16.mxu0 %v7019_v61 }
 0x3bc   :  { %v3837_v51 = vpop.f32.mrb[12].mxu1 }
 0x3bd   :  { %v3838_v4 = vpop.f32.mrb[13].mxu1 }
 0x3be   :  { %v3839_v21 = vadd.f32 %v3838_v4, %v3837_v51 }
 0x3c0   :  { %v935_v42 = vadd.f32 %v3839_v21, %v839_v35  ;;  %v3840_v32 = vpop.f32.mrb[14].mxu1  ;;  %v1081_v35 = vld [vmem:[#allocation11 + $0x50] sm:$0xff]  ;;  %v6028_v21 = vpop.permute.xlu1 %1059 }
 0x3c1   :  { %v3841_v36 = vpop.f32.mrb[15].mxu1 }
 0x3c2   :  { %v3842_v11 = vadd.f32 %v3841_v36, %v3840_v32 }
 0x3c4   :  { %v940_v24 = vadd.f32 %v4096_v26, %v3842_v11  ;;  %v3843_v12 = vpop.f32.mrb[16].mxu1  ;;  %v1079_v26 = vld [vmem:[#allocation11 + $0x40] sm:$0xff] }
 0x3c5   :  { %v3844_v13 = vpop.f32.mrb[17].mxu1 }
 0x3c6   :  { %v4367_v55 = vpack.c.bf16 %v940_v24, %v935_v42  ;;  %v3845_v58 = vadd.f32 %v3844_v13, %v3843_v12  ;;  %v6035_v12 = vpop.permute.xlu0 %1061 }
 0x3c8   :  { %v945_v6 = vadd.f32 %v3845_v58, %v849_v5  ;;  %v3846_v17 = vpop.f32.mrb[18].mxu1  ;;  %4368 = vmatpush3.bf16.msra.mxu0 %v4367_v55  ;;  %v6012_v5 = vpack.c.bf16 %v1081_v35, %v1079_v26 }
 0x3c9   :  { %v3847_v2 = vpop.f32.mrb[19].mxu1  ;;  %4369 = vmatprep.subr.bf16.mxu0 %v7019_v61 }
 0x3ca   :  { %v3848_v49 = vadd.f32 %v3847_v2, %v3846_v17  ;;  %v6042_v2 = vpop.permute.xlu1 %1063 }
 0x3cc   :  { %v950_v62 = vadd.f32 %v4099_v59, %v3848_v49  ;;  %v6009_v59 = vld [vmem:[#allocation3 + $0x10] sm:$0xff] }
 0x3ce   :  { %v4370_v34 = vpack.c.bf16 %v950_v62, %v945_v6  ;;  %v6049_v62 = vshrl.u32 %v1089_v8, 7 }
 0x3d0   :  { %4371 = vmatpush3.bf16.msra.mxu0 %v4370_v34  ;;  %7026 = vst [vmem:[#allocation51_spill] sm:$0xff] %v6049_v62  ;;  %v6052_v45 = vsub.s32 0, %v6049_v62  ;;  %v6984_v18 = vsub.s32 1, %v6049_v62 }
 0x3d1   :  { %4373 = vmatprep.subr.bf16.mxu0 %v5984_v60 }
 0x3d2   :  { %7027 = vst [vmem:[#allocation50_spill] sm:$0xff] %v6052_v45  ;;  %v6055_v34 = vrot.slane %v1087_v31, %v6052_v45  ;;  %v6065_v7 = vrot.slane %v1087_v31, %v6984_v18 }
 0x3d3   :  { %4113 = vmatmul.mubr.msk.f32.vlgmr.msra.gmra.mrb[10].mxu0 %vm963_vm6, %v5986_v48 }
 0x3d4   :  { %4115 = vmatprep.mubr.msk.f32.mxu0 %vm5163_vm0, %v7024_v47  ;;  %4375 = vmatpush1.bf16.msra.mxu0 %v5988_v52 }
 0x3d5   :  { %4377 = vmatprep.subr.bf16.mxu0 %v5991_v14 }
 0x3d7   :  { %4116 = vmatmul.mubr.msk.f32.gmra.mrb[12].mxu0 %vm963_vm6, %v5997_v16 }
 0x3d8   :  { %4118 = vmatprep.mubr.msk.f32.mxu0 %vm5163_vm0, %v7024_v47  ;;  %4379 = vmatpush1.bf16.msra.mxu0 %v6000_v19 }
 0x3d9   :  { %4381 = vmatprep.subr.bf16.mxu0 %v6003_v22 }
 0x3db   :  { %4119 = vmatmul.mubr.msk.f32.gmra.mrb[14].mxu0 %vm963_vm6, %v6009_v59 }
 0x3dc   :  { %4383 = vmatpush1.bf16.msra.mxu0 %v6012_v5  ;;  %1172 = vmatprep.mubr.f32.mxu0 %v7024_v47 }
 0x3dd   :  { %4385 = vmatprep.subr.bf16.mxu0 %v6019_v37 }
 0x3e0   :  { %4387 = vmatpush1.bf16.msra.mxu0 %v6021_v3 }
 0x4a6   :  { %v1039_v28 = vpop.f32.mrb[10].mxu0 }
 0x4a7   :  { %v1040_v0 = vadd.f32 %v6025_v43, %v1039_v28  ;;  %v4114_v51 = vpop.f32.mrb[11].mxu0 }
 0x4a9   :  { %v1053_v4 = vmax.f32 %v1040_v0, 0.0 }
 0x4aa   :  { %v1044_v42 = vpop.f32.mrb[12].mxu0 }
 0x4ab   :  { %v1068_v32 = vsel %vm466_vm3, %v1053_v4, %v6028_v21  ;;  %v1045_v36 = vadd.f32 %v6025_v43, %v1044_v42  ;;  %v4117_v11 = vpop.f32.mrb[13].mxu0 }
 0x4ac   :  { %3695 = vmatmul.mubr.msk.f32.vlgmr.msra.gmra.mrb[16].mxu0 %vm473_vm4, %v1068_v32 }
 0x4ad   :  { %v1054_v24 = vmax.f32 %v1045_v36, 0.0  ;;  %1178 = vmatprep.mubr.f32.mxu0 %v7024_v47 }
 0x4ae   :  { %v1049_v13 = vpop.f32.mrb[14].mxu0 }
 0x4af   :  { %v1050_v55 = vadd.f32 %v6025_v43, %v1049_v13  ;;  %v1069_v58 = vsel %vm466_vm3, %v1054_v24, %v6035_v12  ;;  %v4120_v6 = vpop.f32.mrb[15].mxu0 }
 0x4b0   :  { %3696 = vmatmul.mubr.msk.f32.gmra.mrb[18].mxu0 %vm473_vm4, %v1069_v58 }
 0x4b1   :  { %v1055_v17 = vmax.f32 %v1050_v55, 0.0  ;;  %1184 = vmatprep.mubr.f32.mxu0 %v7024_v47 }
 0x4b3   :  { %v1070_v49 = vsel %vm466_vm3, %v1055_v17, %v6042_v2 }
 0x4b4   :  { %3697 = vmatmul.mubr.msk.f32.gmra.mrb[20].mxu0 %vm473_vm4, %v1070_v49 }
 0x4b5   :  { %4127 = vmatprep.mubr.msk.f32.mxu0 %vm511_vm2, %v7025_v41 }
 0x57f   :  { %v1174_v38 = vpop.f32.mrb[16].mxu0 }
 0x580   :  { %v6058_v46 = vadd.f32 %v1174_v38, %v6055_v34  ;;  %v1176_v63 = vpop.f32.mrb[17].mxu0 }
 0x581   :  { %v1177_v30 = vadd.f32 %v1176_v63, %v6065_v7 }
 0x582   :  { %1194 = vrot.lane.b32.xlu0 %v6058_v46, %s5174_s15 }
 0x583   :  { %v1180_v15 = vpop.f32.mrb[18].mxu0 }
 0x584   :  { %v6068_v26 = vadd.f32 %v1180_v15, %v6055_v34  ;;  %v1182_v35 = vpop.f32.mrb[19].mxu0 }
 0x585   :  { %v1183_v28 = vadd.f32 %v1182_v35, %v6065_v7 }
 0x586   :  { %1196 = vrot.lane.b32.xlu1 %v6068_v26, %s5174_s15 }
 0x587   :  { %v1186_v25 = vpop.f32.mrb[20].mxu0 }
 0x588   :  { %v6074_v53 = vadd.f32 %v1186_v25, %v6055_v34  ;;  %v1188_v40 = vpop.f32.mrb[21].mxu0 }
 0x589   :  { %v1189_v0 = vadd.f32 %v1188_v40, %v6065_v7 }
 0x58a   :  { %1257 = vrot.lane.b32.xlu1 %v1177_v30, %s5173_s20  ;;  %1198 = vrot.lane.b32.xlu0 %v6074_v53, %s5174_s15 }
 0x58e   :  { %1261 = vrot.lane.b32.xlu1 %v1189_v0, %s5173_s20  ;;  %1259 = vrot.lane.b32.xlu0 %v1183_v28, %s5173_s20 }
 0x5f4   :  { %v1195_v51 = vpop.permute.xlu0 %1194 }
 0x5f5   :  { %v1203_v4 = vadd.f32 %v1195_v51, %v6058_v46 }
 0x5f7   :  { %v3698_v42 = vmul.f32 -1.442695, %v1203_v4 }
 0x5f8   :  { %v1197_v32 = vpop.permute.xlu1 %1196 }
 0x5f9   :  { %4792 = vpow2.f32 %v3698_v42  ;;  %v1204_v36 = vadd.f32 %v1197_v32, %v6068_v26 }
 0x5fb   :  { %v3699_v11 = vmul.f32 -1.442695, %v1204_v36 }
 0x5fc   :  { %v1199_v24 = vpop.permute.xlu0 %1198  ;;  %v1258_v38 = vpop.permute.xlu1 %1257 }
 0x5fd   :  { %4794 = vpow2.f32 %v3699_v11  ;;  %v1205_v13 = vadd.f32 %v1199_v24, %v6074_v53 }
 0x5ff   :  { %v3700_v55 = vmul.f32 -1.442695, %v1205_v13 }
 0x600   :  { %v1260_v35 = vpop.permute.xlu0 %1259  ;;  %v1262_v51 = vpop.permute.xlu1 %1261 }
 0x601   :  { %4796 = vpow2.f32 %v3700_v55 }
 0x603   :  { %v4793_v58 = vpop.eup %4792 }
 0x604   :  { %v1215_v6 = vadd.f32 1.0, %v4793_v58 }
 0x606   :  { %4798 = vrcp.f32 %v1215_v6 }
 0x607   :  { %v4795_v17 = vpop.eup %4794 }
 0x608   :  { %v1216_v49 = vadd.f32 1.0, %v4795_v17 }
 0x60a   :  { %4800 = vrcp.f32 %v1216_v49 }
 0x60b   :  { %v4797_v41 = vpop.eup %4796 }
 0x60c   :  { %v1217_v8 = vadd.f32 1.0, %v4797_v41 }
 0x60e   :  { %4802 = vrcp.f32 %v1217_v8 }
 0x610   :  { %v4799_v31 = vpop.eup %4798 }
 0x611   :  { %v1266_v63 = vmul.f32 %v4799_v31, %v1258_v38 }
 0x613   :  { %1272 = vrot.lane.b32.xlu0 %v1266_v63, %s5175_s6 }
 0x614   :  { %v4801_v15 = vpop.eup %4800 }
 0x615   :  { %v1267_v25 = vmul.f32 %v4801_v15, %v1260_v35 }
 0x617   :  { %1274 = vrot.lane.b32.xlu1 %v1267_v25, %s5175_s6 }
 0x618   :  { %v4803_v40 = vpop.eup %4802 }
 0x619   :  { %v1268_v4 = vmul.f32 %v4803_v40, %v1262_v51 }
 0x61b   :  { %1276 = vrot.lane.b32.xlu0 %v1268_v4, %s5175_s6  ;;  %1227 = vrot.lane.b32.xlu1 %v1177_v30, %s5174_s15 }
 0x61f   :  { %1229 = vrot.lane.b32.xlu0 %v1183_v28, %s5174_s15  ;;  %1231 = vrot.lane.b32.xlu1 %v1189_v0, %s5174_s15 }
 0x685   :  { %v1273_v42 = vpop.permute.xlu0 %1272 }
 0x686   :  { %v1281_v32 = vadd.f32 %v1273_v42, %v6058_v46 }
 0x688   :  { %4804 = vtanh.f32 %v1281_v32 }
 0x689   :  { %v1275_v36 = vpop.permute.xlu1 %1274 }
 0x68a   :  { %v1282_v11 = vadd.f32 %v1275_v36, %v6068_v26 }
 0x68c   :  { %4806 = vtanh.f32 %v1282_v11 }
 0x68d   :  { %v1277_v24 = vpop.permute.xlu0 %1276  ;;  %v1228_v0 = vpop.permute.xlu1 %1227 }
 0x68e   :  { %v1283_v13 = vadd.f32 %v1277_v24, %v6074_v53  ;;  %v1236_v6 = vadd.f32 %v1228_v0, %v6058_v46 }
 0x690   :  { %4808 = vtanh.f32 %v1283_v13  ;;  %v3701_v41 = vmul.f32 -1.442695, %v1236_v6 }
 0x691   :  { %v1230_v58 = vpop.permute.xlu0 %1229  ;;  %v1232_v49 = vpop.permute.xlu1 %1231 }
 0x692   :  { %v4805_v55 = vpop.eup %4804  ;;  %v1237_v17 = vadd.f32 %v1230_v58, %v6068_v26  ;;  %v1238_v8 = vadd.f32 %v1232_v49, %v6074_v53  ;;  %4810 = vpow2.f32 %v3701_v41 }
 0x693   :  { %1293 = vrot.lane.b32.xlu0 %v4805_v55, %s5173_s20 }
 0x694   :  { %v3702_v31 = vmul.f32 -1.442695, %v1237_v17  ;;  %v3703_v38 = vmul.f32 -1.442695, %v1238_v8 }
 0x696   :  { %v4807_v30 = vpop.eup %4806  ;;  %4812 = vpow2.f32 %v3702_v31 }
 0x697   :  { %1295 = vrot.lane.b32.xlu1 %v4807_v30, %s5173_s20  ;;  %4814 = vpow2.f32 %v3703_v38 }
 0x69a   :  { %v4809_v28 = vpop.eup %4808 }
 0x69b   :  { %1297 = vrot.lane.b32.xlu0 %v4809_v28, %s5173_s20 }
 0x69c   :  { %v4811_v63 = vpop.eup %4810 }
 0x69d   :  { %v1248_v35 = vadd.f32 1.0, %v4811_v63  ;;  %v7028_v63 = vld [vmem:[#allocation28_spill] sm:$0xff] }
 0x69f   :  { %4816 = vrcp.f32 %v1248_v35  ;;  %v7031_v35 = vld [vmem:[#allocation34_spill] sm:$0xff] }
 0x6a0   :  { %v4813_v15 = vpop.eup %4812 }
 0x6a1   :  { %v1249_v25 = vadd.f32 1.0, %v4813_v15  ;;  %v4815_v40 = vpop.eup %4814  ;;  %v7030_v15 = vld [vmem:[#allocation29_spill] sm:$0xff] }
 0x6a2   :  { %v1250_v51 = vadd.f32 1.0, %v4815_v40  ;;  %v7033_v40 = vld [vmem:[#allocation30_spill] sm:$0xff] }
 0x6a3   :  { %4818 = vrcp.f32 %v1249_v25  ;;  %v7032_v25 = vld [vmem:[#allocation35_spill] sm:$0xff] }
 0x6a4   :  { %4820 = vrcp.f32 %v1250_v51  ;;  %v7034_v51 = vld [vmem:[#allocation31_spill] sm:$0xff] }
 0x6a9   :  { %v4817_v46 = vpop.eup %4816 }
 0x6aa   :  { %v1287_v42 = vsub.f32 1.0, %v4817_v46  ;;  %v1305_v24 = vmul.f32 %v4817_v46, %v6028_v21  ;;  %v7035_v46 = vld [vmem:[#allocation36_spill] sm:$0xff] }
 0x6ad   :  { %v4819_v26 = vpop.eup %4818 }
 0x6ae   :  { %v1288_v53 = vsub.f32 1.0, %v4819_v26  ;;  %v4821_v36 = vpop.eup %4820  ;;  %v1306_v55 = vmul.f32 %v4819_v26, %v6035_v12  ;;  %v7036_v26 = vld [vmem:[#allocation37_spill] sm:$0xff] }
 0x6af   :  { %v1289_v0 = vsub.f32 1.0, %v4821_v36  ;;  %v1307_v17 = vmul.f32 %v4821_v36, %v6042_v2  ;;  %v7029_v2 = vld [vmem:[#allocation33_spill] sm:$0xff] }
 0x6b0   :  { %v7041_v36 = vld [vmem:[#allocation41_spill] sm:$0xff] }
 0x705   :  { %v1294_v4 = vpop.permute.xlu0 %1293 }
 0x706   :  { %v1302_v32 = vmul.f32 %v1294_v4, %v1287_v42  ;;  %v7037_v4 = vld [vmem:[#allocation32_spill] sm:$0xff]  ;;  %v7038_v42 = vld [vmem:[#allocation38_spill] sm:$0xff] }
 0x708   :  { %v6103_v30 = vadd.f32 %v1305_v24, %v1302_v32  ;;  %v7039_v32 = vld [vmem:[#allocation39_spill] sm:$0xff] }
 0x709   :  { %v1296_v11 = vpop.permute.xlu1 %1295  ;;  %v7043_v24 = vld [vmem:[#allocation43_spill] sm:$0xff] }
 0x70a   :  { %v1303_v13 = vmul.f32 %v1296_v11, %v1288_v53  ;;  %v7040_v53 = vld [vmem:[#allocation40_spill] sm:$0xff]  ;;  %v7042_v11 = vld [vmem:[#allocation42_spill] sm:$0xff] }
 0x70c   :  { %v6105_v28 = vadd.f32 %v1306_v55, %v1303_v13  ;;  %v7044_v13 = vld [vmem:[#allocation44_spill] sm:$0xff]  ;;  %v7045_v55 = vld [vmem:[#allocation45_spill] sm:$0xff] }
 0x70d   :  { %v1298_v58 = vpop.permute.xlu0 %1297 }
 0x70e   :  { %v4780_v6 = vpack.i.bf16 %v6105_v28, %v6103_v30  ;;  %v1304_v49 = vmul.f32 %v1298_v58, %v1289_v0  ;;  %v7046_v0 = vld [vmem:[#allocation46_spill] sm:$0xff]  ;;  %v7047_v58 = vld [vmem:[#allocation47_spill] sm:$0xff] }
 0x710   :  { %v6110_v41 = vadd.f32 %v1307_v17, %v1304_v49  ;;  %4781 = vrot.lane.b32.xlu1 %v4780_v6, %s5173_s20  ;;  %v7048_v6 = vld [vmem:[#allocation48_spill] sm:$0xff] }
 0x712   :  { %1318 = vrot.lane.b32.xlu0 %v6110_v41, %s5173_s20 }
 0x782   :  { %v4782_v21 = vpop.permute.xlu1 %4781 }
 0x783   :  { %v4784_v12 = vunpack.i.h.bf16 %v4782_v21  ;;  %v4783_v8 = vunpack.i.l.bf16 %v4782_v21 }
 0x784   :  { %v1319_v38 = vpop.permute.xlu0 %1318 }
 0x785   :  { %v4388_v31 = vpack.c.bf16 %v4784_v12, %v4783_v8 }
 0x787   :  { %4389 = vmatprep.subr.bf16.mxu0 %v4388_v31 }
 0x788   :  { %4391 = vmatpush3.bf16.msra.mxu0 %v4388_v31 }
 0x789   :  { %4125 = vmatprep.subr.mxu0 %v1319_v38 }
 0x78c   :  { %4126 = vmatpush3.msra.mxu0 %v1319_v38 }
 0x78d   :  { %4128 = vmatmul.mubr.msk.f32.vlgmr.msra.gmra.mrb[22].mxu0 %vm511_vm2, %v7028_v63  ;;  %4401 = vmatprep.subr.bf16.mxu0 %v7029_v2 }
 0x78e   :  { %4130 = vmatprep.mubr.msk.f32.mxu0 %vm511_vm2, %v7030_v15  ;;  %4403 = vmatpush3.bf16.msra.mxu0 %v7031_v35 }
 0x78f   :  { %4405 = vmatprep.subr.bf16.mxu0 %v7032_v25 }
 0x791   :  { %4131 = vmatmul.mubr.msk.f32.gmra.mrb[24].mxu0 %vm511_vm2, %v7033_v40 }
 0x792   :  { %4133 = vmatprep.mubr.msk.f32.mxu0 %vm511_vm2, %v7034_v51  ;;  %4407 = vmatpush3.bf16.msra.mxu0 %v7035_v46 }
 0x793   :  { %4409 = vmatprep.subr.bf16.mxu0 %v7036_v26 }
 0x795   :  { %4134 = vmatmul.mubr.msk.f32.gmra.mrb[26].mxu0 %vm511_vm2, %v7037_v4 }
 0x796   :  { %4411 = vmatpush3.bf16.msra.mxu0 %v7038_v42 }
 0x797   :  { %4413 = vmatprep.subr.bf16.mxu0 %v7039_v32 }
 0x79a   :  { %4415 = vmatpush3.bf16.msra.mxu0 %v7040_v53 }
 0x79b   :  { %4417 = vmatprep.subr.bf16.mxu0 %v7041_v36 }
 0x79e   :  { %4419 = vmatpush3.bf16.msra.mxu0 %v7042_v11 }
 0x79f   :  { %4421 = vmatprep.subr.bf16.mxu0 %v7043_v24 }
 0x7a2   :  { %4423 = vmatpush3.bf16.msra.mxu0 %v7044_v13 }
 0x7a3   :  { %4425 = vmatprep.subr.bf16.mxu0 %v7045_v55 }
 0x7a6   :  { %4427 = vmatpush3.bf16.msra.mxu0 %v7046_v0 }
 0x7a7   :  { %4429 = vmatprep.subr.bf16.mxu0 %v7047_v58 }
 0x7aa   :  { %4431 = vmatpush3.bf16.msra.mxu0 %v7048_v6 }
 0x7ab   :  { %4462 = vmatprep.subr.bf16.mxu0 %v5457_v27 }
 0x860   :  { %v4129_v17 = vpop.f32.mrb[22].mxu0 }
 0x861   :  { %1444 = vrot.lane.b32.xlu1 %v4129_v17, %s5175_s6  ;;  %1426 = vrot.lane.b32.xlu0 %v4129_v17, %s5174_s15  ;;  %v1389_v49 = vpop.f32.mrb[23].mxu0 }
 0x862   :  { %4144 = vmatprep.mubr.msk.f32.mxu1 %vm466_vm3, %v1389_v49 }
 0x863   :  { %4145 = vmatmul.mubr.msk.f32.vlgmr.msra.gmra.mrb[20].mxu1 %vm466_vm3, %v4129_v17 }
 0x864   :  { %v4132_v21 = vpop.f32.mrb[24].mxu0 }
 0x865   :  { %1462 = vrot.lane.b32.xlu0 %v4129_v17, %s5173_s20  ;;  %1424 = vrot.lane.b32.xlu1 %v1389_v49, %s5174_s15  ;;  %v1399_v12 = vpop.f32.mrb[25].mxu0 }
 0x866   :  { %4147 = vmatprep.mubr.msk.f32.mxu1 %vm466_vm3, %v1399_v12 }
 0x867   :  { %4148 = vmatmul.mubr.msk.f32.gmra.mrb[22].mxu1 %vm466_vm3, %v4132_v21 }
 0x868   :  { %v6150_v8 = vpop.f32.mrb[26].mxu0 }
 0x869   :  { %1442 = vrot.lane.b32.xlu0 %v1389_v49, %s5175_s6  ;;  %1460 = vrot.lane.b32.xlu1 %v1389_v49, %s5173_s20  ;;  %v1409_v31 = vpop.f32.mrb[27].mxu0 }
 0x86a   :  { %4150 = vmatprep.mubr.msk.f32.mxu1 %vm466_vm3, %v1409_v31 }
 0x86b   :  { %4151 = vmatmul.mubr.msk.f32.gmra.mrb[24].mxu1 %vm466_vm3, %v6150_v8 }
 0x86c   :  { %4165 = vmatprep.mubr.msk.f32.mxu1 %vm5163_vm0, %v7024_v47 }
 0x86d   :  { %1448 = vrot.lane.b32.xlu1 %v4132_v21, %s5175_s6  ;;  %1430 = vrot.lane.b32.xlu0 %v4132_v21, %s5174_s15 }
 0x871   :  { %1446 = vrot.lane.b32.xlu0 %v1399_v12, %s5175_s6  ;;  %1428 = vrot.lane.b32.xlu1 %v1399_v12, %s5174_s15 }
 0x875   :  { %1466 = vrot.lane.b32.xlu0 %v4132_v21, %s5173_s20  ;;  %1464 = vrot.lane.b32.xlu1 %v1399_v12, %s5173_s20 }
 0x879   :  { %1450 = vrot.lane.b32.xlu0 %v1409_v31, %s5175_s6  ;;  %1432 = vrot.lane.b32.xlu1 %v1409_v31, %s5174_s15 }
 0x87d   :  { %1434 = vrot.lane.b32.xlu0 %v6150_v8, %s5174_s15  ;;  %1468 = vrot.lane.b32.xlu1 %v1409_v31, %s5173_s20 }
 0x881   :  { %1470 = vrot.lane.b32.xlu0 %v6150_v8, %s5173_s20  ;;  %1452 = vrot.lane.b32.xlu1 %v6150_v8, %s5175_s6 }
 0x8d3   :  { %v1445_v38 = vpop.permute.xlu1 %1444  ;;  %v1427_v63 = vpop.permute.xlu0 %1426 }
 0x8d4   :  { %v1479_v51 = vsel %vm466_vm3, %v4129_v17, %v1427_v63 }
 0x8d5   :  { %v1485_v45 = vsel %vm473_vm4, %v1479_v51, %v1445_v38 }
 0x8d7   :  { %v1463_v15 = vpop.permute.xlu0 %1462  ;;  %v1425_v40 = vpop.permute.xlu1 %1424 }
 0x8d8   :  { %v1478_v4 = vsel %vm466_vm3, %v1389_v49, %v1425_v40  ;;  %v1491_v58 = vsel %vm480_vm5, %v1485_v45, %v1463_v15 }
 0x8d9   :  { %v1499_v17 = vmul.f32 %v1491_v58, %v5873_v44  ;;  %v1498_v49 = vmul.f32 %v1491_v58, %v5880_v57 }
 0x8db   :  { %v1443_v18 = vpop.permute.xlu0 %1442  ;;  %v1461_v62 = vpop.permute.xlu1 %1460 }
 0x8dc   :  { %v1484_v6 = vsel %vm473_vm4, %v1478_v4, %v1443_v18 }
 0x8dd   :  { %v1490_v0 = vsel %vm480_vm5, %v1484_v6, %v1461_v62 }
 0x8de   :  { %v1496_v55 = vmul.f32 %v1490_v0, %v5866_v9  ;;  %v1497_v13 = vmul.f32 %v1490_v0, %v5862_v56 }
 0x8df   :  { %v1449_v24 = vpop.permute.xlu1 %1448  ;;  %v1431_v11 = vpop.permute.xlu0 %1430 }
 0x8e0   :  { %1679 = vmatprep.mubr.f32.mxu0 %v1497_v13  ;;  %v1481_v62 = vsel %vm466_vm3, %v4132_v21, %v1431_v11 }
 0x8e1   :  { %1680 = vmatmul.mubr.f32.vlgmr.msra.gmra.mrb[28].mxu0 %v1496_v55  ;;  %v1487_v0 = vsel %vm473_vm4, %v1481_v62, %v1449_v24 }
 0x8e2   :  { %1684 = vmatprep.mubr.f32.mxu0 %v1499_v17  ;;  %4464 = vmatpush3.bf16.msra.mxu0 %v5457_v27 }
 0x8e3   :  { %v1447_v18 = vpop.permute.xlu0 %1446  ;;  %v1429_v38 = vpop.permute.xlu1 %1428  ;;  %4466 = vmatprep.subr.bf16.mxu0 %v5460_v29 }
 0x8e4   :  { %v1480_v45 = vsel %vm466_vm3, %v1399_v12, %v1429_v38 }
 0x8e5   :  { %1685 = vmatmul.mubr.f32.gmra.mrb[30].mxu0 %v1498_v49  ;;  %v1486_v55 = vsel %vm473_vm4, %v1480_v45, %v1447_v18 }
 0x8e6   :  { %4468 = vmatpush3.bf16.msra.mxu0 %v5460_v29 }
 0x8e7   :  { %v1467_v13 = vpop.permute.xlu0 %1466  ;;  %v1465_v6 = vpop.permute.xlu1 %1464  ;;  %4501 = vmatprep.subr.bf16.mxu0 %v7019_v61 }
 0x8e8   :  { %v1493_v27 = vsel %vm480_vm5, %v1487_v0, %v1467_v13  ;;  %v1492_v58 = vsel %vm480_vm5, %v1486_v55, %v1465_v6 }
 0x8e9   :  { %v1500_v63 = vmul.f32 %v1492_v58, %v5916_v20  ;;  %v1501_v11 = vmul.f32 %v1492_v58, %v5912_v10  ;;  %v1503_v21 = vmul.f32 %v1493_v27, %v5929_v33  ;;  %v1502_v15 = vmul.f32 %v1493_v27, %v5941_v39 }
 0x8eb   :  { %1689 = vmatprep.mubr.f32.mxu0 %v1501_v11  ;;  %v1451_v29 = vpop.permute.xlu0 %1450  ;;  %v1433_v12 = vpop.permute.xlu1 %1432 }
 0x8ec   :  { %v1482_v24 = vsel %vm466_vm3, %v1409_v31, %v1433_v12  ;;  %1690 = vmatmul.mubr.f32.gmra.mrb[32].mxu0 %v1500_v63 }
 0x8ed   :  { %1694 = vmatprep.mubr.f32.mxu0 %v1503_v21  ;;  %v1488_v51 = vsel %vm473_vm4, %v1482_v24, %v1451_v29 }
 0x8ef   :  { %v1435_v40 = vpop.permute.xlu0 %1434  ;;  %v1469_v4 = vpop.permute.xlu1 %1468 }
 0x8f0   :  { %v1494_v17 = vsel %vm480_vm5, %v1488_v51, %v1469_v4  ;;  %1695 = vmatmul.mubr.f32.gmra.mrb[34].mxu0 %v1502_v15  ;;  %v1483_v38 = vsel %vm466_vm3, %v6150_v8, %v1435_v40 }
 0x8f1   :  { %v1504_v49 = vmul.f32 %v1494_v17, %v5961_v1  ;;  %v1505_v18 = vmul.f32 %v1494_v17, %v5955_v50 }
 0x8f3   :  { %v1471_v62 = vpop.permute.xlu0 %1470  ;;  %1699 = vmatprep.mubr.f32.mxu0 %v1505_v18  ;;  %v1453_v31 = vpop.permute.xlu1 %1452 }
 0x8f4   :  { %v1489_v45 = vsel %vm473_vm4, %v1483_v38, %v1453_v31  ;;  %1700 = vmatmul.mubr.f32.gmra.mrb[36].mxu0 %v1504_v49 }
 0x8f5   :  { %v1495_v0 = vsel %vm480_vm5, %v1489_v45, %v1471_v62 }
 0x8f6   :  { %v1507_v13 = vmul.f32 %v1495_v0, %v5973_v54  ;;  %v1506_v55 = vmul.f32 %v1495_v0, %v5977_v23 }
 0x8f8   :  { %1704 = vmatprep.mubr.f32.mxu0 %v1507_v13 }
 0x8f9   :  { %1705 = vmatmul.mubr.f32.gmra.mrb[38].mxu0 %v1506_v55 }
 0x936   :  { %v4146_v6 = vpop.f32.mrb[20].mxu1 }
 0x937   :  { %v1586_v27 = vpop.f32.mrb[21].mxu1 }
 0x93a   :  { %v4149_v58 = vpop.f32.mrb[22].mxu1 }
 0x93b   :  { %v1596_v63 = vpop.f32.mrb[23].mxu1 }
 0x93e   :  { %v4152_v11 = vpop.f32.mrb[24].mxu1 }
 0x93f   :  { %v1606_v8 = vpop.f32.mrb[25].mxu1 }
 0x9b4   :  { %v3909_v21 = vpop.f32.mrb[28].mxu0 }
 0x9b5   :  { %v3910_v29 = vpop.f32.mrb[29].mxu0 }
 0x9b6   :  { %v3911_v12 = vadd.f32 %v3910_v29, %v3909_v21 }
 0x9b8   :  { %v1682_v24 = vadd.f32 %v3911_v12, %v1586_v27  ;;  %v3912_v15 = vpop.f32.mrb[30].mxu0 }
 0x9b9   :  { %v3913_v40 = vpop.f32.mrb[31].mxu0 }
 0x9ba   :  { %v3914_v51 = vadd.f32 %v3913_v40, %v3912_v15 }
 0x9bc   :  { %v1687_v4 = vadd.f32 %v4146_v6, %v3914_v51 }
 0x9be   :  { %v4433_v17 = vpack.c.bf16 %v1687_v4, %v1682_v24 }
 0x9bf   :  { %v3915_v49 = vpop.f32.mrb[32].mxu0 }
 0x9c0   :  { %v3916_v18 = vpop.f32.mrb[33].mxu0  ;;  %4434 = vmatpush3.bf16.msra.mxu1 %v4433_v17 }
 0x9c1   :  { %v3917_v38 = vadd.f32 %v3916_v18, %v3915_v49  ;;  %4435 = vmatprep.subr.bf16.mxu1 %v7019_v61 }
 0x9c3   :  { %v1692_v62 = vadd.f32 %v3917_v38, %v1596_v63  ;;  %v3918_v31 = vpop.f32.mrb[34].mxu0 }
 0x9c4   :  { %v3919_v45 = vpop.f32.mrb[35].mxu0 }
 0x9c5   :  { %v3920_v0 = vadd.f32 %v3919_v45, %v3918_v31  ;;  %v4930_v31 = vld [vmem:[%s6922_s2] sm:$0xff] }
 0x9c7   :  { %v1697_v13 = vadd.f32 %v4149_v58, %v3920_v0  ;;  %v3921_v55 = vpop.f32.mrb[36].mxu0 }
 0x9c8   :  { %v3922_v23 = vpop.f32.mrb[37].mxu0 }
 0x9c9   :  { %v4436_v21 = vpack.c.bf16 %v1697_v13, %v1692_v62  ;;  %v3923_v27 = vadd.f32 %v3922_v23, %v3921_v55 }
 0x9cb   :  { %v1702_v29 = vadd.f32 %v3923_v27, %v1606_v8  ;;  %4437 = vmatpush3.bf16.msra.mxu1 %v4436_v21 }
 0x9cc   :  { %v3924_v12 = vpop.f32.mrb[38].mxu0  ;;  %4438 = vmatprep.subr.bf16.mxu1 %v7019_v61 }
 0x9cd   :  { %v3925_v6 = vpop.f32.mrb[39].mxu0 }
 0x9ce   :  { %v3926_v24 = vadd.f32 %v3925_v6, %v3924_v12 }
 0x9d0   :  { %v1707_v15 = vadd.f32 %v4152_v11, %v3926_v24 }
 0x9d2   :  { %v4439_v40 = vpack.c.bf16 %v1707_v15, %v1702_v29 }
 0x9d4   :  { %4440 = vmatpush3.bf16.msra.mxu1 %v4439_v40 }
 0x9d5   :  { %4442 = vmatprep.subr.bf16.mxu1 %v5984_v60 }
 0x9d7   :  { %4166 = vmatmul.mubr.msk.f32.vlgmr.msra.gmra.mrb[26].mxu1 %vm963_vm6, %v5986_v48 }
 0x9d8   :  { %4168 = vmatprep.mubr.msk.f32.mxu1 %vm5163_vm0, %v7024_v47  ;;  %4444 = vmatpush1.bf16.msra.mxu1 %v5988_v52 }
 0x9d9   :  { %4446 = vmatprep.subr.bf16.mxu1 %v5991_v14 }
 0x9db   :  { %4169 = vmatmul.mubr.msk.f32.gmra.mrb[28].mxu1 %vm963_vm6, %v5997_v16 }
 0x9dc   :  { %4171 = vmatprep.mubr.msk.f32.mxu1 %vm5163_vm0, %v7024_v47  ;;  %4448 = vmatpush1.bf16.msra.mxu1 %v6000_v19 }
 0x9dd   :  { %4450 = vmatprep.subr.bf16.mxu1 %v6003_v22 }
 0x9df   :  { %4172 = vmatmul.mubr.msk.f32.gmra.mrb[30].mxu1 %vm963_vm6, %v6009_v59 }
 0x9e0   :  { %4452 = vmatpush1.bf16.msra.mxu1 %v6012_v5  ;;  %1869 = vmatprep.mubr.f32.mxu1 %v7024_v47 }
 0x9e1   :  { %4454 = vmatprep.subr.bf16.mxu1 %v6019_v37 }
 0x9e4   :  { %4456 = vmatpush1.bf16.msra.mxu1 %v6021_v3 }
 0xaaa   :  { %v1776_v23 = vpop.f32.mrb[26].mxu1 }
 0xaab   :  { %v1777_v48 = vadd.f32 %v6025_v43, %v1776_v23  ;;  %v4167_v16 = vpop.f32.mrb[27].mxu1 }
 0xaad   :  { %v1790_v58 = vmax.f32 %v1777_v48, 0.0 }
 0xaae   :  { %v1781_v63 = vpop.f32.mrb[28].mxu1 }
 0xaaf   :  { %v1793_v11 = vsel %vm466_vm3, %v1790_v58, %v6103_v30  ;;  %v1782_v8 = vadd.f32 %v6025_v43, %v1781_v63  ;;  %v4170_v59 = vpop.f32.mrb[29].mxu1 }
 0xab0   :  { %3719 = vmatmul.mubr.msk.f32.vlgmr.msra.gmra.mrb[32].mxu1 %vm473_vm4, %v1793_v11 }
 0xab1   :  { %v1791_v51 = vmax.f32 %v1782_v8, 0.0  ;;  %1875 = vmatprep.mubr.f32.mxu1 %v7024_v47 }
 0xab2   :  { %v1786_v4 = vpop.f32.mrb[30].mxu1 }
 0xab3   :  { %v1787_v17 = vadd.f32 %v6025_v43, %v1786_v4  ;;  %v1794_v49 = vsel %vm466_vm3, %v1791_v51, %v6105_v28  ;;  %v4173_v18 = vpop.f32.mrb[31].mxu1 }
 0xab4   :  { %3720 = vmatmul.mubr.msk.f32.gmra.mrb[34].mxu1 %vm473_vm4, %v1794_v49 }
 0xab5   :  { %v1792_v38 = vmax.f32 %v1787_v17, 0.0  ;;  %1881 = vmatprep.mubr.f32.mxu1 %v7024_v47 }
 0xab7   :  { %v1795_v62 = vsel %vm466_vm3, %v1792_v38, %v6110_v41 }
 0xab8   :  { %3721 = vmatmul.mubr.msk.f32.gmra.mrb[36].mxu1 %vm473_vm4, %v1795_v62 }
 0xab9   :  { %4180 = vmatprep.mubr.msk.f32.mxu1 %vm511_vm2, %v4930_v31 }
 0xb83   :  { %v1871_v43 = vpop.f32.mrb[32].mxu1 }
 0xb84   :  { %v6249_v45 = vadd.f32 %v1871_v43, %v6055_v34  ;;  %v1873_v0 = vpop.f32.mrb[33].mxu1 }
 0xb85   :  { %v1874_v29 = vadd.f32 %v1873_v0, %v6065_v7 }
 0xb86   :  { %1891 = vrot.lane.b32.xlu1 %v6249_v45, %s5174_s15 }
 0xb87   :  { %v1877_v13 = vpop.f32.mrb[34].mxu1 }
 0xb88   :  { %v6254_v55 = vadd.f32 %v1877_v13, %v6055_v34  ;;  %v1879_v21 = vpop.f32.mrb[35].mxu1 }
 0xb89   :  { %v1880_v24 = vadd.f32 %v1879_v21, %v6065_v7 }
 0xb8a   :  { %1893 = vrot.lane.b32.xlu0 %v6254_v55, %s5174_s15 }
 0xb8b   :  { %v1883_v27 = vpop.f32.mrb[36].mxu1 }
 0xb8c   :  { %v6260_v12 = vadd.f32 %v1883_v27, %v6055_v34  ;;  %v1885_v6 = vpop.f32.mrb[37].mxu1 }
 0xb8d   :  { %v1886_v15 = vadd.f32 %v1885_v6, %v6065_v7 }
 0xb8e   :  { %1954 = vrot.lane.b32.xlu0 %v1874_v29, %s5173_s20  ;;  %1895 = vrot.lane.b32.xlu1 %v6260_v12, %s5174_s15 }
 0xb92   :  { %1958 = vrot.lane.b32.xlu0 %v1886_v15, %s5173_s20  ;;  %1956 = vrot.lane.b32.xlu1 %v1880_v24, %s5173_s20 }
 0xbf8   :  { %v1892_v40 = vpop.permute.xlu1 %1891 }
 0xbf9   :  { %v1900_v23 = vadd.f32 %v1892_v40, %v6249_v45 }
 0xbfb   :  { %v3722_v48 = vmul.f32 -1.442695, %v1900_v23 }
 0xbfc   :  { %v1894_v16 = vpop.permute.xlu0 %1893 }
 0xbfd   :  { %4822 = vpow2.f32 %v3722_v48  ;;  %v1901_v58 = vadd.f32 %v1894_v16, %v6254_v55 }
 0xbff   :  { %v3723_v63 = vmul.f32 -1.442695, %v1901_v58 }
 0xc00   :  { %v1896_v11 = vpop.permute.xlu1 %1895  ;;  %v1955_v31 = vpop.permute.xlu0 %1954 }
 0xc01   :  { %4824 = vpow2.f32 %v3723_v63  ;;  %v1902_v8 = vadd.f32 %v1896_v11, %v6260_v12 }
 0xc03   :  { %v3724_v59 = vmul.f32 -1.442695, %v1902_v8 }
 0xc04   :  { %v1957_v13 = vpop.permute.xlu1 %1956  ;;  %v1959_v6 = vpop.permute.xlu0 %1958 }
 0xc05   :  { %4826 = vpow2.f32 %v3724_v59 }
 0xc07   :  { %v4823_v51 = vpop.eup %4822 }
 0xc08   :  { %v1912_v4 = vadd.f32 1.0, %v4823_v51 }
 0xc0a   :  { %4828 = vrcp.f32 %v1912_v4 }
 0xc0b   :  { %v4825_v17 = vpop.eup %4824 }
 0xc0c   :  { %v1913_v49 = vadd.f32 1.0, %v4825_v17 }
 0xc0e   :  { %4830 = vrcp.f32 %v1913_v49 }
 0xc0f   :  { %v4827_v18 = vpop.eup %4826 }
 0xc10   :  { %v1914_v38 = vadd.f32 1.0, %v4827_v18 }
 0xc12   :  { %4832 = vrcp.f32 %v1914_v38 }
 0xc14   :  { %v4829_v62 = vpop.eup %4828 }
 0xc15   :  { %v1963_v43 = vmul.f32 %v4829_v62, %v1955_v31 }
 0xc17   :  { %1969 = vrot.lane.b32.xlu1 %v1963_v43, %s5175_s6 }
 0xc18   :  { %v4831_v0 = vpop.eup %4830 }
 0xc19   :  { %v1964_v21 = vmul.f32 %v4831_v0, %v1957_v13 }
 0xc1b   :  { %1971 = vrot.lane.b32.xlu0 %v1964_v21, %s5175_s6 }
 0xc1c   :  { %v4833_v27 = vpop.eup %4832 }
 0xc1d   :  { %v1965_v40 = vmul.f32 %v4833_v27, %v1959_v6 }
 0xc1f   :  { %1973 = vrot.lane.b32.xlu1 %v1965_v40, %s5175_s6  ;;  %1924 = vrot.lane.b32.xlu0 %v1874_v29, %s5174_s15 }
 0xc23   :  { %1926 = vrot.lane.b32.xlu1 %v1880_v24, %s5174_s15  ;;  %1928 = vrot.lane.b32.xlu0 %v1886_v15, %s5174_s15 }
 0xc89   :  { %v1970_v23 = vpop.permute.xlu1 %1969 }
 0xc8a   :  { %v1978_v48 = vadd.f32 %v1970_v23, %v6249_v45 }
 0xc8c   :  { %4834 = vtanh.f32 %v1978_v48 }
 0xc8d   :  { %v1972_v16 = vpop.permute.xlu0 %1971 }
 0xc8e   :  { %v1979_v58 = vadd.f32 %v1972_v16, %v6254_v55 }
 0xc90   :  { %4836 = vtanh.f32 %v1979_v58 }
 0xc91   :  { %v1974_v63 = vpop.permute.xlu1 %1973  ;;  %v1925_v15 = vpop.permute.xlu0 %1924 }
 0xc92   :  { %v1980_v11 = vadd.f32 %v1974_v63, %v6260_v12  ;;  %v1933_v51 = vadd.f32 %v1925_v15, %v6249_v45 }
 0xc94   :  { %4838 = vtanh.f32 %v1980_v11  ;;  %v3725_v49 = vmul.f32 -1.442695, %v1933_v51 }
 0xc95   :  { %v1927_v59 = vpop.permute.xlu1 %1926  ;;  %v1929_v17 = vpop.permute.xlu0 %1928 }
 0xc96   :  { %v4835_v8 = vpop.eup %4834  ;;  %v1934_v4 = vadd.f32 %v1927_v59, %v6254_v55  ;;  %v1935_v18 = vadd.f32 %v1929_v17, %v6260_v12  ;;  %4840 = vpow2.f32 %v3725_v49 }
 0xc97   :  { %1990 = vrot.lane.b32.xlu1 %v4835_v8, %s5173_s20 }
 0xc98   :  { %v3726_v38 = vmul.f32 -1.442695, %v1934_v4  ;;  %v3727_v62 = vmul.f32 -1.442695, %v1935_v18 }
 0xc9a   :  { %v4837_v29 = vpop.eup %4836  ;;  %4842 = vpow2.f32 %v3726_v38 }
 0xc9b   :  { %1992 = vrot.lane.b32.xlu0 %v4837_v29, %s5173_s20  ;;  %4844 = vpow2.f32 %v3727_v62  ;;  %v4932_v62 = vld [vmem:[%s6922_s2 + $0x10] sm:$0xff] }
 0xc9e   :  { %v4839_v24 = vpop.eup %4838 }
 0xc9f   :  { %1994 = vrot.lane.b32.xlu1 %v4839_v24, %s5173_s20 }
 0xca0   :  { %v4841_v31 = vpop.eup %4840 }
 0xca1   :  { %v1945_v0 = vadd.f32 1.0, %v4841_v31  ;;  %v4933_v31 = vld [vmem:[%s6922_s2 + $0x18] sm:$0xff] }
 0xca3   :  { %4846 = vrcp.f32 %v1945_v0  ;;  %v7053_v0 = vld [vmem:[#allocation46_spill] sm:$0xff] }
 0xca4   :  { %v4843_v43 = vpop.eup %4842 }
 0xca5   :  { %v1946_v13 = vadd.f32 1.0, %v4843_v43  ;;  %v4845_v21 = vpop.eup %4844  ;;  %v7050_v43 = vld [vmem:[#allocation43_spill] sm:$0xff] }
 0xca6   :  { %v1947_v27 = vadd.f32 1.0, %v4845_v21  ;;  %v7055_v21 = vld [vmem:[#allocation48_spill] sm:$0xff] }
 0xca7   :  { %4848 = vrcp.f32 %v1946_v13  ;;  %v7054_v13 = vld [vmem:[#allocation47_spill] sm:$0xff] }
 0xca8   :  { %4850 = vrcp.f32 %v1947_v27 }
 0xcad   :  { %v4847_v45 = vpop.eup %4846 }
 0xcae   :  { %v1984_v40 = vsub.f32 1.0, %v4847_v45  ;;  %v2002_v58 = vmul.f32 %v4847_v45, %v6103_v30 }
 0xcb1   :  { %v4849_v55 = vpop.eup %4848 }
 0xcb2   :  { %v1985_v12 = vsub.f32 1.0, %v4849_v55  ;;  %v4851_v48 = vpop.eup %4850  ;;  %v2003_v11 = vmul.f32 %v4849_v55, %v6105_v28 }
 0xcb3   :  { %v1986_v24 = vsub.f32 1.0, %v4851_v48  ;;  %v2004_v51 = vmul.f32 %v4851_v48, %v6110_v41  ;;  %v4931_v41 = vld [vmem:[%s6922_s2 + $0x8] sm:$0xff] }
 0xd09   :  { %v1991_v6 = vpop.permute.xlu1 %1990 }
 0xd0a   :  { %v1999_v23 = vmul.f32 %v1991_v6, %v1984_v40 }
 0xd0c   :  { %v6289_v8 = vadd.f32 %v2002_v58, %v1999_v23 }
 0xd0d   :  { %v1993_v16 = vpop.permute.xlu0 %1992 }
 0xd0e   :  { %v2000_v63 = vmul.f32 %v1993_v16, %v1985_v12 }
 0xd10   :  { %v6291_v29 = vadd.f32 %v2003_v11, %v2000_v63 }
 0xd11   :  { %v1995_v15 = vpop.permute.xlu1 %1994 }
 0xd12   :  { %v4785_v59 = vpack.i.bf16 %v6291_v29, %v6289_v8  ;;  %v2001_v4 = vmul.f32 %v1995_v15, %v1986_v24 }
 0xd14   :  { %v6296_v17 = vadd.f32 %v2004_v51, %v2001_v4  ;;  %4786 = vrot.lane.b32.xlu0 %v4785_v59, %s5173_s20 }
 0xd16   :  { %2015 = vrot.lane.b32.xlu1 %v6296_v17, %s5173_s20 }
 0xd86   :  { %v4787_v30 = vpop.permute.xlu0 %4786 }
 0xd87   :  { %v4789_v28 = vunpack.i.h.bf16 %v4787_v30  ;;  %v4788_v49 = vunpack.i.l.bf16 %v4787_v30 }
 0xd88   :  { %v2016_v38 = vpop.permute.xlu1 %2015 }
 0xd89   :  { %v4457_v18 = vpack.c.bf16 %v4789_v28, %v4788_v49 }
 0xd8b   :  { %4458 = vmatprep.subr.bf16.mxu1 %v4457_v18 }
 0xd8c   :  { %4460 = vmatpush3.bf16.msra.mxu1 %v4457_v18 }
 0xd8d   :  { %4178 = vmatprep.subr.mxu1 %v2016_v38 }
 0xd90   :  { %4179 = vmatpush3.msra.mxu1 %v2016_v38 }
 0xd91   :  { %4181 = vmatmul.mubr.msk.f32.vlgmr.msra.gmra.mrb[38].mxu1 %vm511_vm2, %v4931_v41  ;;  %4470 = vmatprep.subr.bf16.mxu1 %v7029_v2  ;;  %v4934_v2 = vld [vmem:[%s6922_s2 + $0x20] sm:$0xff] }
 0xd92   :  { %4183 = vmatprep.mubr.msk.f32.mxu1 %vm511_vm2, %v4932_v62  ;;  %4472 = vmatpush3.bf16.msra.mxu1 %v7031_v35  ;;  %v4935_v35 = vld [vmem:[%s6922_s2 + $0x28] sm:$0xff] }
 0xd93   :  { %4474 = vmatprep.subr.bf16.mxu1 %v7032_v25  ;;  %v7049_v25 = vld [vmem:[#allocation42_spill] sm:$0xff] }
 0xd95   :  { %4184 = vmatmul.mubr.msk.f32.gmra.mrb[40].mxu1 %vm511_vm2, %v4933_v31 }
 0xd96   :  { %4186 = vmatprep.mubr.msk.f32.mxu1 %vm511_vm2, %v4934_v2  ;;  %4476 = vmatpush3.bf16.msra.mxu1 %v7035_v46  ;;  %v7051_v46 = vld [vmem:[#allocation44_spill] sm:$0xff] }
 0xd97   :  { %4478 = vmatprep.subr.bf16.mxu1 %v7036_v26  ;;  %v7052_v26 = vld [vmem:[#allocation45_spill] sm:$0xff] }
 0xd99   :  { %4187 = vmatmul.mubr.msk.f32.gmra.mrb[42].mxu1 %vm511_vm2, %v4935_v35 }
 0xd9a   :  { %4480 = vmatpush3.bf16.msra.mxu1 %v7038_v42 }
 0xd9b   :  { %4482 = vmatprep.subr.bf16.mxu1 %v7039_v32 }
 0xd9e   :  { %4484 = vmatpush3.bf16.msra.mxu1 %v7040_v53 }
 0xd9f   :  { %4486 = vmatprep.subr.bf16.mxu1 %v7041_v36 }
 0xda2   :  { %4488 = vmatpush3.bf16.msra.mxu1 %v7049_v25 }
 0xda3   :  { %4490 = vmatprep.subr.bf16.mxu1 %v7050_v43 }
 0xda6   :  { %4492 = vmatpush3.bf16.msra.mxu1 %v7051_v46 }
 0xda7   :  { %4494 = vmatprep.subr.bf16.mxu1 %v7052_v26 }
 0xdaa   :  { %4496 = vmatpush3.bf16.msra.mxu1 %v7053_v0 }
 0xdab   :  { %4498 = vmatprep.subr.bf16.mxu1 %v7054_v13 }
 0xdae   :  { %4500 = vmatpush3.bf16.msra.mxu1 %v7055_v21 }
 0xe64   :  { %v4182_v42 = vpop.f32.mrb[38].mxu1 }
 0xe65   :  { %2141 = vrot.lane.b32.xlu0 %v4182_v42, %s5175_s6  ;;  %2123 = vrot.lane.b32.xlu1 %v4182_v42, %s5174_s15  ;;  %v2086_v32 = vpop.f32.mrb[39].mxu1 }
 0xe66   :  { %4197 = vmatprep.mubr.msk.f32.mxu0 %vm466_vm3, %v2086_v32 }
 0xe67   :  { %4198 = vmatmul.mubr.msk.f32.vlgmr.msra.gmra.mrb[40].mxu0 %vm466_vm3, %v4182_v42 }
 0xe68   :  { %v4185_v53 = vpop.f32.mrb[40].mxu1 }
 0xe69   :  { %2159 = vrot.lane.b32.xlu1 %v4182_v42, %s5173_s20  ;;  %2121 = vrot.lane.b32.xlu0 %v2086_v32, %s5174_s15  ;;  %v2096_v36 = vpop.f32.mrb[41].mxu1 }
 0xe6a   :  { %4200 = vmatprep.mubr.msk.f32.mxu0 %vm466_vm3, %v2096_v36 }
 0xe6b   :  { %4201 = vmatmul.mubr.msk.f32.gmra.mrb[42].mxu0 %vm466_vm3, %v4185_v53 }
 0xe6c   :  { %v6345_v27 = vpop.f32.mrb[42].mxu1 }
 0xe6d   :  { %2139 = vrot.lane.b32.xlu1 %v2086_v32, %s5175_s6  ;;  %2157 = vrot.lane.b32.xlu0 %v2086_v32, %s5173_s20  ;;  %v2106_v45 = vpop.f32.mrb[43].mxu1 }
 0xe6e   :  { %4203 = vmatprep.mubr.msk.f32.mxu0 %vm466_vm3, %v2106_v45 }
 0xe6f   :  { %4204 = vmatmul.mubr.msk.f32.gmra.mrb[44].mxu0 %vm466_vm3, %v6345_v27 }
 0xe70   :  { %4218 = vmatprep.mubr.msk.f32.mxu0 %vm5163_vm0, %v7024_v47 }
 0xe71   :  { %2145 = vrot.lane.b32.xlu0 %v4185_v53, %s5175_s6  ;;  %2127 = vrot.lane.b32.xlu1 %v4185_v53, %s5174_s15 }
 0xe75   :  { %2143 = vrot.lane.b32.xlu1 %v2096_v36, %s5175_s6  ;;  %2125 = vrot.lane.b32.xlu0 %v2096_v36, %s5174_s15 }
 0xe79   :  { %2163 = vrot.lane.b32.xlu1 %v4185_v53, %s5173_s20  ;;  %2161 = vrot.lane.b32.xlu0 %v2096_v36, %s5173_s20 }
 0xe7d   :  { %2147 = vrot.lane.b32.xlu1 %v2106_v45, %s5175_s6  ;;  %2129 = vrot.lane.b32.xlu0 %v2106_v45, %s5174_s15 }
 0xe81   :  { %2131 = vrot.lane.b32.xlu1 %v6345_v27, %s5174_s15  ;;  %2165 = vrot.lane.b32.xlu0 %v2106_v45, %s5173_s20 }
 0xe85   :  { %2167 = vrot.lane.b32.xlu1 %v6345_v27, %s5173_s20  ;;  %2149 = vrot.lane.b32.xlu0 %v6345_v27, %s5175_s6 }
 0xed7   :  { %v2142_v55 = vpop.permute.xlu0 %2141  ;;  %v2124_v6 = vpop.permute.xlu1 %2123 }
 0xed8   :  { %v2176_v12 = vsel %vm466_vm3, %v4182_v42, %v2124_v6 }
 0xed9   :  { %v2182_v63 = vsel %vm473_vm4, %v2176_v12, %v2142_v55 }
 0xedb   :  { %v2160_v40 = vpop.permute.xlu1 %2159  ;;  %v2122_v23 = vpop.permute.xlu0 %2121 }
 0xedc   :  { %v2175_v48 = vsel %vm466_vm3, %v2086_v32, %v2122_v23  ;;  %v2188_v24 = vsel %vm480_vm5, %v2182_v63, %v2160_v40  ;;  %v7056_v40 = vld [vmem:[#allocation49_spill] sm:$0xff] }
 0xedd   :  { %v2196_v28 = vmul.f32 %v2188_v24, %v5873_v44  ;;  %v2195_v49 = vmul.f32 %v2188_v24, %v5880_v57 }
 0xedf   :  { %v2140_v16 = vpop.permute.xlu1 %2139  ;;  %v2158_v58 = vpop.permute.xlu0 %2157 }
 0xee0   :  { %v2181_v11 = vsel %vm473_vm4, %v2175_v48, %v2140_v16 }
 0xee1   :  { %v2187_v15 = vsel %vm480_vm5, %v2181_v11, %v2158_v58 }
 0xee2   :  { %v2193_v59 = vmul.f32 %v2187_v15, %v5866_v9  ;;  %v2194_v51 = vmul.f32 %v2187_v15, %v5862_v56 }
 0xee3   :  { %v2146_v4 = vpop.permute.xlu0 %2145  ;;  %v2128_v30 = vpop.permute.xlu1 %2127 }
 0xee4   :  { %2376 = vmatprep.mubr.f32.mxu1 %v2194_v51  ;;  %v2178_v41 = vsel %vm466_vm3, %v4185_v53, %v2128_v30 }
 0xee5   :  { %2377 = vmatmul.mubr.f32.vlgmr.msra.gmra.mrb[44].mxu1 %v2193_v59  ;;  %v2184_v9 = vsel %vm473_vm4, %v2178_v41, %v2146_v4 }
 0xee6   :  { %2381 = vmatprep.mubr.f32.mxu1 %v2196_v28 }
 0xee7   :  { %v2144_v18 = vpop.permute.xlu1 %2143  ;;  %v2126_v38 = vpop.permute.xlu0 %2125 }
 0xee8   :  { %v2177_v62 = vsel %vm466_vm3, %v2096_v36, %v2126_v38 }
 0xee9   :  { %2382 = vmatmul.mubr.f32.gmra.mrb[46].mxu1 %v2195_v49  ;;  %v2183_v56 = vsel %vm473_vm4, %v2177_v62, %v2144_v18 }
 0xeeb   :  { %v2164_v31 = vpop.permute.xlu1 %2163  ;;  %v2162_v2 = vpop.permute.xlu0 %2161 }
 0xeec   :  { %v2190_v44 = vsel %vm480_vm5, %v2184_v9, %v2164_v31  ;;  %v2189_v35 = vsel %vm480_vm5, %v2183_v56, %v2162_v2 }
 0xeed   :  { %v2197_v25 = vmul.f32 %v2189_v35, %v5916_v20  ;;  %v2198_v57 = vmul.f32 %v2189_v35, %v5912_v10  ;;  %v2200_v43 = vmul.f32 %v2190_v44, %v5929_v33  ;;  %v2199_v13 = vmul.f32 %v2190_v44, %v5941_v39 }
 0xeef   :  { %2386 = vmatprep.mubr.f32.mxu1 %v2198_v57  ;;  %v2148_v46 = vpop.permute.xlu1 %2147  ;;  %v2130_v26 = vpop.permute.xlu0 %2129 }
 0xef0   :  { %v2179_v0 = vsel %vm466_vm3, %v2106_v45, %v2130_v26  ;;  %2387 = vmatmul.mubr.f32.gmra.mrb[48].mxu1 %v2197_v25 }
 0xef1   :  { %2391 = vmatprep.mubr.f32.mxu1 %v2200_v43  ;;  %v2185_v42 = vsel %vm473_vm4, %v2179_v0, %v2148_v46  ;;  %v4936_v0 = vld [vmem:[#allocation3] sm:$0xff] }
 0xef3   :  { %v2132_v21 = vpop.permute.xlu1 %2131  ;;  %v2166_v32 = vpop.permute.xlu0 %2165 }
 0xef4   :  { %v2191_v53 = vsel %vm480_vm5, %v2185_v42, %v2166_v32  ;;  %2392 = vmatmul.mubr.f32.gmra.mrb[50].mxu1 %v2199_v13  ;;  %v2180_v33 = vsel %vm466_vm3, %v6345_v27, %v2132_v21  ;;  %v4937_v13 = vld [vmem:[#allocation3 + $0x8] sm:$0xff]  ;;  %v2712_v32 = vld [vmem:[%s6931_s11 + $0x20] sm:$0xff] }
 0xef5   :  { %v2201_v10 = vmul.f32 %v2191_v53, %v5961_v1  ;;  %v2202_v20 = vmul.f32 %v2191_v53, %v5955_v50  ;;  %v2714_v53 = vld [vmem:[%s6931_s11 + $0x30] sm:$0xff] }
 0xef7   :  { %v2168_v36 = vpop.permute.xlu1 %2167  ;;  %2396 = vmatprep.mubr.f32.mxu1 %v2202_v20  ;;  %v2150_v45 = vpop.permute.xlu0 %2149  ;;  %v2719_v20 = vld [vmem:[%s6931_s11 + $0x58] sm:$0xff] }
 0xef8   :  { %v2186_v55 = vsel %vm473_vm4, %v2180_v33, %v2150_v45  ;;  %2397 = vmatmul.mubr.f32.gmra.mrb[52].mxu1 %v2201_v10  ;;  %v2717_v10 = vld [vmem:[%s6931_s11 + $0x48] sm:$0xff]  ;;  %v6458_v33 = vpack.c.bf16 %v2714_v53, %v2712_v32  ;;  %v2716_v45 = vld [vmem:[%s6931_s11 + $0x40] sm:$0xff]  ;;  %v2750_v53 = vld [vmem:[%s6931_s11 + $0x150] sm:$0xff] }
 0xef9   :  { %v2192_v39 = vsel %vm480_vm5, %v2186_v55, %v2168_v36  ;;  %v6461_v36 = vpack.c.bf16 %v2719_v20, %v2717_v10  ;;  %v2718_v55 = vld [vmem:[%s6931_s11 + $0x50] sm:$0xff]  ;;  %v2748_v32 = vld [vmem:[%s6931_s11 + $0x140] sm:$0xff]  ;;  %v2753_v10 = vld [vmem:[%s6931_s11 + $0x168] sm:$0xff] }
 0xefa   :  { %v2204_v6 = vmul.f32 %v2192_v39, %v5973_v54  ;;  %v2203_v23 = vmul.f32 %v2192_v39, %v7056_v40  ;;  %v2721_v39 = vld [vmem:[%s6931_s11 + $0x68] sm:$0xff]  ;;  %v6476_v40 = vpack.c.bf16 %v2718_v55, %v2716_v45  ;;  %v2755_v20 = vld [vmem:[%s6931_s11 + $0x178] sm:$0xff]  ;;  %v6620_v45 = vpack.c.bf16 %v2750_v53, %v2748_v32 }
 0xefb   :  { %v6623_v55 = vpack.c.bf16 %v2755_v20, %v2753_v10 }
 0xefc   :  { %2401 = vmatprep.mubr.f32.mxu1 %v2204_v6  ;;  %v2723_v6 = vld [vmem:[%s6931_s11 + $0x78] sm:$0xff] }
 0xefd   :  { %2402 = vmatmul.mubr.f32.gmra.mrb[54].mxu1 %v2203_v23  ;;  %v6479_v23 = vpack.c.bf16 %v2723_v6, %v2721_v39  ;;  %v2752_v39 = vld [vmem:[%s6931_s11 + $0x160] sm:$0xff]  ;;  %v2754_v6 = vld [vmem:[%s6931_s11 + $0x170] sm:$0xff] }
 0xefe   :  { %2835 = vmatprep.mubr.f32.mxu1 %v7024_v47 }
 0xf3a   :  { %v4199_v50 = vpop.f32.mrb[40].mxu0 }
 0xf3b   :  { %v2283_v1 = vpop.f32.mrb[41].mxu0 }
 0xf3e   :  { %v4202_v12 = vpop.f32.mrb[42].mxu0 }
 0xf3f   :  { %v2293_v27 = vpop.f32.mrb[43].mxu0 }
 0xf42   :  { %v4205_v48 = vpop.f32.mrb[44].mxu0 }
 0xf43   :  { %v2303_v16 = vpop.f32.mrb[45].mxu0 }
 0xfb8   :  { %v3987_v58 = vpop.f32.mrb[44].mxu1 }
 0xfb9   :  { %v3988_v63 = vpop.f32.mrb[45].mxu1 }
 0xfba   :  { %v3989_v11 = vadd.f32 %v3988_v63, %v3987_v58  ;;  %v2724_v58 = vld [vmem:[%s6931_s11 + $0x80] sm:$0xff]  ;;  %v2726_v63 = vld [vmem:[%s6931_s11 + $0x90] sm:$0xff] }
 0xfbc   :  { %v2379_v24 = vadd.f32 %v3989_v11, %v2283_v1  ;;  %v3990_v15 = vpop.f32.mrb[46].mxu1  ;;  %v2722_v1 = vld [vmem:[%s6931_s11 + $0x70] sm:$0xff]  ;;  %v2729_v11 = vld [vmem:[%s6931_s11 + $0xa8] sm:$0xff] }
 0xfbd   :  { %v3991_v59 = vpop.f32.mrb[47].mxu1 }
 0xfbe   :  { %v3992_v51 = vadd.f32 %v3991_v59, %v3990_v15  ;;  %v6512_v15 = vpack.c.bf16 %v2726_v63, %v2724_v58 }
 0xfc0   :  { %v2384_v54 = vadd.f32 %v4199_v50, %v3992_v51  ;;  %v2720_v50 = vld [vmem:[%s6931_s11 + $0x60] sm:$0xff] }
 0xfc1   :  { %v2728_v51 = vld [vmem:[%s6931_s11 + $0xa0] sm:$0xff] }
 0xfc2   :  { %v4502_v4 = vpack.c.bf16 %v2384_v54, %v2379_v24  ;;  %v2731_v24 = vld [vmem:[%s6931_s11 + $0xb8] sm:$0xff]  ;;  %v2730_v54 = vld [vmem:[%s6931_s11 + $0xb0] sm:$0xff] }
 0xfc3   :  { %v3993_v30 = vpop.f32.mrb[48].mxu1  ;;  %v6515_v59 = vpack.c.bf16 %v2731_v24, %v2729_v11 }
 0xfc4   :  { %v3994_v28 = vpop.f32.mrb[49].mxu1  ;;  %4503 = vmatpush3.bf16.msra.mxu0 %v4502_v4  ;;  %v2733_v4 = vld [vmem:[%s6931_s11 + $0xc8] sm:$0xff] }
 0xfc5   :  { %v3995_v49 = vadd.f32 %v3994_v28, %v3993_v30  ;;  %4504 = vmatprep.subr.bf16.mxu0 %v7019_v61  ;;  %v2735_v30 = vld [vmem:[%s6931_s11 + $0xd8] sm:$0xff]  ;;  %v6530_v28 = vpack.c.bf16 %v2730_v54, %v2728_v51 }
 0xfc7   :  { %v2389_v18 = vadd.f32 %v3995_v49, %v2293_v27  ;;  %v3996_v38 = vpop.f32.mrb[50].mxu1  ;;  %v2727_v27 = vld [vmem:[%s6931_s11 + $0x98] sm:$0xff]  ;;  %v6533_v49 = vpack.c.bf16 %v2735_v30, %v2733_v4 }
 0xfc8   :  { %v3997_v41 = vpop.f32.mrb[51].mxu1 }
 0xfc9   :  { %v3998_v62 = vadd.f32 %v3997_v41, %v3996_v38  ;;  %v2734_v38 = vld [vmem:[%s6931_s11 + $0xd0] sm:$0xff]  ;;  %v2737_v41 = vld [vmem:[%s6931_s11 + $0xe8] sm:$0xff] }
 0xfcb   :  { %v2394_v9 = vadd.f32 %v4202_v12, %v3998_v62  ;;  %v3999_v31 = vpop.f32.mrb[52].mxu1  ;;  %v2725_v12 = vld [vmem:[%s6931_s11 + $0x88] sm:$0xff]  ;;  %v2739_v62 = vld [vmem:[%s6931_s11 + $0xf8] sm:$0xff] }
 0xfcc   :  { %v4000_v56 = vpop.f32.mrb[53].mxu1 }
 0xfcd   :  { %v4505_v2 = vpack.c.bf16 %v2394_v9, %v2389_v18  ;;  %v4001_v44 = vadd.f32 %v4000_v56, %v3999_v31  ;;  %v2732_v18 = vld [vmem:[%s6931_s11 + $0xc0] sm:$0xff]  ;;  %v6551_v31 = vpack.c.bf16 %v2739_v62, %v2737_v41 }
 0xfce   :  { %v6548_v9 = vpack.c.bf16 %v2734_v38, %v2732_v18  ;;  %v2736_v56 = vld [vmem:[%s6931_s11 + $0xe0] sm:$0xff] }
 0xfcf   :  { %v2399_v35 = vadd.f32 %v4001_v44, %v2303_v16  ;;  %4506 = vmatpush3.bf16.msra.mxu0 %v4505_v2  ;;  %v6497_v16 = vpack.c.bf16 %v2727_v27, %v2725_v12  ;;  %v2738_v2 = vld [vmem:[%s6931_s11 + $0xf0] sm:$0xff]  ;;  %v2741_v44 = vld [vmem:[%s6931_s11 + $0x108] sm:$0xff] }
 0xfd0   :  { %v4002_v25 = vpop.f32.mrb[54].mxu1  ;;  %4507 = vmatprep.subr.bf16.mxu0 %v7019_v61  ;;  %v4939_v12 = vld [vmem:[#allocation9] ss:$0 sm:$0xff] }
 0xfd1   :  { %v4003_v57 = vpop.f32.mrb[55].mxu1 }
 0xfd2   :  { %v4004_v43 = vadd.f32 %v4003_v57, %v4002_v25  ;;  %v6566_v25 = vpack.c.bf16 %v2738_v2, %v2736_v56  ;;  %v2756_v2 = vld [vmem:[#allocation14] sm:$0x3] }
 0xfd4   :  { %v2404_v46 = vadd.f32 %v4205_v48, %v4004_v43  ;;  %v6494_v48 = vpack.c.bf16 %v2722_v1, %v2720_v50  ;;  %v2740_v43 = vld [vmem:[%s6931_s11 + $0x100] sm:$0xff]  ;;  %v6632_v50 = vpack.c.bf16 %v2754_v6, %v2752_v39  ;;  %v7058_v6 = vld [vmem:[#allocation51_spill] sm:$0xff] }
 0xfd6   :  { %v4508_v26 = vpack.c.bf16 %v2404_v46, %v2399_v35  ;;  %v2743_v35 = vld [vmem:[%s6931_s11 + $0x118] sm:$0xff]  ;;  %v2742_v46 = vld [vmem:[%s6931_s11 + $0x110] sm:$0xff] }
 0xfd7   :  { %v6569_v57 = vpack.c.bf16 %v2743_v35, %v2741_v44  ;;  %v7057_v44 = vld [vmem:[#allocation50_spill] sm:$0xff] }
 0xfd8   :  { %4509 = vmatpush3.bf16.msra.mxu0 %v4508_v26  ;;  %v2745_v26 = vld [vmem:[%s6931_s11 + $0x128] sm:$0xff]  ;;  %v6654_v35 = vrot.slane %v2756_v2, %v7057_v44 }
 0xfd9   :  { %4511 = vmatprep.subr.bf16.mxu0 %v5984_v60  ;;  %v4938_v60 = vld [vmem:[#allocation3 + $0x10] sm:$0xff] }
 0xfdb   :  { %4219 = vmatmul.mubr.msk.f32.vlgmr.msra.gmra.mrb[46].mxu0 %vm963_vm6, %v4936_v0  ;;  %v2747_v0 = vld [vmem:[%s6931_s11 + $0x138] sm:$0xff] }
 0xfdc   :  { %4221 = vmatprep.mubr.msk.f32.mxu0 %vm5163_vm0, %v7024_v47  ;;  %4513 = vmatpush1.bf16.msra.mxu0 %v5988_v52  ;;  %v2709_v52 = vld [vmem:[%s6931_s11 + $0x8] sm:$0xff] }
 0xfdd   :  { %4515 = vmatprep.subr.bf16.mxu0 %v5991_v14  ;;  %v2711_v14 = vld [vmem:[%s6931_s11 + $0x18] sm:$0xff] }
 0xfdf   :  { %4222 = vmatmul.mubr.msk.f32.gmra.mrb[48].mxu0 %vm963_vm6, %v4937_v13  ;;  %v6584_v13 = vpack.c.bf16 %v2742_v46, %v2740_v43 }
 0xfe0   :  { %4224 = vmatprep.mubr.msk.f32.mxu0 %vm5163_vm0, %v7024_v47  ;;  %4517 = vmatpush1.bf16.msra.mxu0 %v6000_v19  ;;  %v2708_v19 = vld [vmem:[%s6931_s11] sm:$0xff] }
 0xfe1   :  { %4519 = vmatprep.subr.bf16.mxu0 %v6003_v22  ;;  %v6429_v22 = vpack.c.bf16 %v2711_v14, %v2709_v52  ;;  %v2744_v52 = vld [vmem:[%s6931_s11 + $0x120] sm:$0xff]  ;;  %v2746_v14 = vld [vmem:[%s6931_s11 + $0x130] sm:$0xff] }
 0xfe3   :  { %4225 = vmatmul.mubr.msk.f32.gmra.mrb[50].mxu0 %vm963_vm6, %v4938_v60  ;;  %4527 = vmatprep.subr.bf16.mxu1 %v6429_v22  ;;  %v6587_v60 = vpack.c.bf16 %v2747_v0, %v2745_v26 }
 0xfe4   :  { %4521 = vmatpush1.bf16.msra.mxu0 %v6012_v5  ;;  %2566 = vmatprep.mubr.f32.mxu0 %v7024_v47  ;;  %v2710_v5 = vld [vmem:[%s6931_s11 + $0x10] sm:$0xff] }
 0xfe5   :  { %4523 = vmatprep.subr.bf16.mxu0 %v6019_v37  ;;  %v2713_v37 = vld [vmem:[%s6931_s11 + $0x28] sm:$0xff]  ;;  %v6440_v21 = vpack.c.bf16 %v2710_v5, %v2708_v19  ;;  %v2751_v5 = vld [vmem:[%s6931_s11 + $0x158] sm:$0xff] }
 0xfe6   :  { %v2749_v19 = vld [vmem:[%s6931_s11 + $0x148] sm:$0xff] }
 0xfe7   :  { %4529 = vmatpush1.bf16.msra.mxu1 %v6440_v21 }
 0xfe8   :  { %4525 = vmatpush1.bf16.msra.mxu0 %v6021_v3  ;;  %v2715_v3 = vld [vmem:[%s6931_s11 + $0x38] sm:$0xff] }
 0xfe9   :  { %4574 = vmatprep.subr.bf16.mxu0 %v7019_v61  ;;  %v6442_v42 = vpack.c.bf16 %v2715_v3, %v2713_v37  ;;  %v6602_v37 = vpack.c.bf16 %v2746_v14, %v2744_v52  ;;  %v6605_v3 = vpack.c.bf16 %v2751_v5, %v2749_v19 }
 0xfeb   :  { %4531 = vmatprep.subr.bf16.mxu1 %v6442_v42 }
 0xfec   :  { %4533 = vmatpush1.bf16.msra.mxu1 %v6458_v33 }
 0xfed   :  { %4535 = vmatprep.subr.bf16.mxu1 %v6461_v36 }
 0xff0   :  { %4537 = vmatpush1.bf16.msra.mxu1 %v6476_v40 }
 0xff1   :  { %4539 = vmatprep.subr.bf16.mxu1 %v6479_v23 }
 0xff4   :  { %4541 = vmatpush1.bf16.msra.mxu1 %v6494_v48 }
 0xff5   :  { %4543 = vmatprep.subr.bf16.mxu1 %v6497_v16 }
 0xff8   :  { %4545 = vmatpush1.bf16.msra.mxu1 %v6512_v15 }
 0xff9   :  { %4547 = vmatprep.subr.bf16.mxu1 %v6515_v59 }
 0xffc   :  { %4549 = vmatpush1.bf16.msra.mxu1 %v6530_v28 }
 0xffd   :  { %4551 = vmatprep.subr.bf16.mxu1 %v6533_v49 }
0x1000   :  { %4553 = vmatpush1.bf16.msra.mxu1 %v6548_v9 }
0x1001   :  { %4555 = vmatprep.subr.bf16.mxu1 %v6551_v31 }
0x1004   :  { %4557 = vmatpush1.bf16.msra.mxu1 %v6566_v25 }
0x1005   :  { %4559 = vmatprep.subr.bf16.mxu1 %v6569_v57 }
0x1008   :  { %4561 = vmatpush1.bf16.msra.mxu1 %v6584_v13 }
0x1009   :  { %4563 = vmatprep.subr.bf16.mxu1 %v6587_v60 }
0x100c   :  { %4565 = vmatpush1.bf16.msra.mxu1 %v6602_v37 }
0x100d   :  { %4567 = vmatprep.subr.bf16.mxu1 %v6605_v3 }
0x1010   :  { %4569 = vmatpush1.bf16.msra.mxu1 %v6620_v45 }
0x1011   :  { %4571 = vmatprep.subr.bf16.mxu1 %v6623_v55 }
0x1014   :  { %4573 = vmatpush1.bf16.msra.mxu1 %v6632_v50 }
0x1015   :  { %4629 = vmatprep.subr.bf16.mxu1 %v7019_v61 }
0x1017   :  { %2836 = vmatmul.mubr.f32.vlgmr.msra.gmra.mrb[56].mxu1 %v7024_v47 }
0x1018   :  { %4251 = vmatprep.mubr.msk.f32.mxu1 %vm5163_vm0, %v7024_v47 }
0x10ae   :  { %v2473_v1 = vpop.f32.mrb[46].mxu0 }
0x10af   :  { %v2474_v27 = vadd.f32 %v4939_v12, %v2473_v1  ;;  %v4220_v58 = vpop.f32.mrb[47].mxu0  ;;  %v7059_v1 = vsub.s32 1, %v7058_v6 }
0x10b1   :  { %v2487_v63 = vmax.f32 %v2474_v27, 0.0 }
0x10b2   :  { %v2478_v11 = vpop.f32.mrb[48].mxu0 }
0x10b3   :  { %v2490_v24 = vsel %vm466_vm3, %v2487_v63, %v6289_v8  ;;  %v2479_v51 = vadd.f32 %v4939_v12, %v2478_v11  ;;  %v4223_v54 = vpop.f32.mrb[49].mxu0 }
0x10b4   :  { %3743 = vmatmul.mubr.msk.f32.vlgmr.msra.gmra.mrb[52].mxu0 %vm473_vm4, %v2490_v24 }
0x10b5   :  { %v2488_v4 = vmax.f32 %v2479_v51, 0.0  ;;  %2572 = vmatprep.mubr.f32.mxu0 %v7024_v47 }
0x10b6   :  { %v2483_v30 = vpop.f32.mrb[50].mxu0 }
0x10b7   :  { %v2484_v18 = vadd.f32 %v4939_v12, %v2483_v30  ;;  %v2491_v38 = vsel %vm466_vm3, %v2488_v4, %v6291_v29  ;;  %v4226_v41 = vpop.f32.mrb[51].mxu0  ;;  %v6673_v12 = vrot.slane %v2756_v2, %v7059_v1 }
0x10b8   :  { %3744 = vmatmul.mubr.msk.f32.gmra.mrb[54].mxu0 %vm473_vm4, %v2491_v38 }
0x10b9   :  { %v2489_v62 = vmax.f32 %v2484_v18, 0.0  ;;  %2578 = vmatprep.mubr.f32.mxu0 %v7024_v47 }
0x10bb   :  { %v2492_v56 = vsel %vm466_vm3, %v2489_v62, %v6296_v17 }
0x10bc   :  { %3745 = vmatmul.mubr.msk.f32.gmra.mrb[56].mxu0 %vm473_vm4, %v2492_v56 }
0x10bd   :  { %4233 = vmatprep.mubr.msk.f32.mxu0 %vm5163_vm0, %v7024_v47 }
0x10ea   :  { %v2837_v43 = vpop.f32.mrb[56].mxu1 }
0x10eb   :  { %v2838_v46 = vadd.f32 %v2837_v43, %v6654_v35  ;;  %v2839_v58 = vpop.f32.mrb[57].mxu1 }
0x10ec   :  { %v2840_v11 = vadd.f32 %v2839_v58, %v6673_v12 }
0x10ed   :  { %v3752_v26 = vmul.f32 -1.442695, %v2838_v46 }
0x10ef   :  { %4852 = vpow2.f32 %v3752_v26 }
0x10f9   :  { %v4853_v27 = vpop.eup %4852 }
0x10fa   :  { %v2845_v63 = vadd.f32 1.0, %v4853_v27 }
0x10fc   :  { %4854 = vrcp.f32 %v2845_v63 }
0x10fd   :  { %4856 = vtanh.f32 %v2840_v11 }
0x1106   :  { %v4855_v51 = vpop.eup %4854 }
0x1107   :  { %v4857_v54 = vpop.eup %4856 }
0x1108   :  { %v2856_v4 = vmul.f32 %v4857_v54, %v4855_v51 }
0x1187   :  { %v2568_v0 = vpop.f32.mrb[52].mxu0 }
0x1188   :  { %v6658_v52 = vadd.f32 %v2568_v0, %v6055_v34  ;;  %v2570_v14 = vpop.f32.mrb[53].mxu0 }
0x1189   :  { %v2571_v10 = vadd.f32 %v2570_v14, %v6065_v7 }
0x118a   :  { %2588 = vrot.lane.b32.xlu0 %v6658_v52, %s5174_s15 }
0x118b   :  { %v2574_v19 = vpop.f32.mrb[54].mxu0 }
0x118c   :  { %v6663_v5 = vadd.f32 %v2574_v19, %v6055_v34  ;;  %v2576_v32 = vpop.f32.mrb[55].mxu0 }
0x118d   :  { %v2577_v24 = vadd.f32 %v2576_v32, %v6065_v7 }
0x118e   :  { %2590 = vrot.lane.b32.xlu1 %v6663_v5, %s5174_s15 }
0x118f   :  { %v2580_v53 = vpop.f32.mrb[56].mxu0 }
0x1190   :  { %v6669_v20 = vadd.f32 %v2580_v53, %v6055_v34  ;;  %v2582_v39 = vpop.f32.mrb[57].mxu0 }
0x1191   :  { %v2583_v34 = vadd.f32 %v2582_v39, %v6065_v7 }
0x1192   :  { %2651 = vrot.lane.b32.xlu1 %v2571_v10, %s5173_s20  ;;  %2592 = vrot.lane.b32.xlu0 %v6669_v20, %s5174_s15 }
0x1196   :  { %2655 = vrot.lane.b32.xlu1 %v2583_v34, %s5173_s20  ;;  %2653 = vrot.lane.b32.xlu0 %v2577_v24, %s5173_s20 }
0x11fc   :  { %v2589_v30 = vpop.permute.xlu0 %2588 }
0x11fd   :  { %v2597_v18 = vadd.f32 %v2589_v30, %v6658_v52 }
0x11ff   :  { %v3746_v38 = vmul.f32 -1.442695, %v2597_v18  ;;  %v3753_v18 = vmul.f32 -1.442695, %v2840_v11 }
0x1200   :  { %v2591_v41 = vpop.permute.xlu1 %2590 }
0x1201   :  { %4858 = vpow2.f32 %v3746_v38  ;;  %v2598_v62 = vadd.f32 %v2591_v41, %v6663_v5 }
0x1203   :  { %v3747_v56 = vmul.f32 -1.442695, %v2598_v62 }
0x1204   :  { %v2593_v2 = vpop.permute.xlu0 %2592  ;;  %v2652_v39 = vpop.permute.xlu1 %2651 }
0x1205   :  { %4860 = vpow2.f32 %v3747_v56  ;;  %v2599_v7 = vadd.f32 %v2593_v2, %v6669_v20 }
0x1207   :  { %v3748_v43 = vmul.f32 -1.442695, %v2599_v7 }
0x1208   :  { %v2654_v27 = vpop.permute.xlu0 %2653  ;;  %v2656_v54 = vpop.permute.xlu1 %2655 }
0x1209   :  { %4862 = vpow2.f32 %v3748_v43  ;;  %v2855_v43 = vmul.f32 0.0, %v4855_v51 }
0x120b   :  { %v4859_v46 = vpop.eup %4858 }
0x120c   :  { %v2609_v26 = vadd.f32 1.0, %v4859_v46 }
0x120e   :  { %4864 = vrcp.f32 %v2609_v26 }
0x120f   :  { %v4861_v0 = vpop.eup %4860 }
0x1210   :  { %v2610_v14 = vadd.f32 1.0, %v4861_v0 }
0x1212   :  { %4866 = vrcp.f32 %v2610_v14 }
0x1213   :  { %v4863_v19 = vpop.eup %4862 }
0x1214   :  { %v2611_v32 = vadd.f32 1.0, %v4863_v19 }
0x1216   :  { %4868 = vrcp.f32 %v2611_v32 }
0x1217   :  { %4870 = vpow2.f32 %v3753_v18 }
0x1218   :  { %v4865_v53 = vpop.eup %4864 }
0x1219   :  { %v2660_v6 = vmul.f32 %v4865_v53, %v2652_v39 }
0x121b   :  { %2666 = vrot.lane.b32.xlu0 %v2660_v6, %s5175_s6 }
0x121c   :  { %v4867_v1 = vpop.eup %4866 }
0x121d   :  { %v2661_v58 = vmul.f32 %v4867_v1, %v2654_v27 }
0x121f   :  { %2668 = vrot.lane.b32.xlu1 %v2661_v58, %s5175_s6 }
0x1220   :  { %v4869_v63 = vpop.eup %4868 }
0x1221   :  { %v2662_v30 = vmul.f32 %v4869_v63, %v2656_v54  ;;  %v4871_v62 = vpop.eup %4870 }
0x1222   :  { %v2852_v7 = vadd.f32 1.0, %v4871_v62 }
0x1223   :  { %2670 = vrot.lane.b32.xlu0 %v2662_v30, %s5175_s6  ;;  %2858 = vrot.lane.b32.xlu1 %v2856_v4, %s5175_s6 }
0x1227   :  { %2621 = vrot.lane.b32.xlu0 %v2571_v10, %s5174_s15  ;;  %2623 = vrot.lane.b32.xlu1 %v2577_v24, %s5174_s15 }
0x122b   :  { %2625 = vrot.lane.b32.xlu0 %v2583_v34, %s5174_s15 }
0x128d   :  { %v2667_v38 = vpop.permute.xlu0 %2666 }
0x128e   :  { %v2675_v41 = vadd.f32 %v2667_v38, %v6658_v52 }
0x1290   :  { %4872 = vtanh.f32 %v2675_v41 }
0x1291   :  { %v2669_v56 = vpop.permute.xlu1 %2668 }
0x1292   :  { %v2676_v2 = vadd.f32 %v2669_v56, %v6663_v5 }
0x1294   :  { %4874 = vtanh.f32 %v2676_v2 }
0x1295   :  { %v2859_v4 = vpop.permute.xlu1 %2858  ;;  %v2671_v46 = vpop.permute.xlu0 %2670  ;;  %4876 = vrcp.f32 %v2852_v7 }
0x1296   :  { %v6695_v10 = vadd.f32 %v2859_v4, %v2855_v43  ;;  %v2677_v24 = vadd.f32 %v2671_v46, %v6669_v20 }
0x1298   :  { %4878 = vtanh.f32 %v6695_v10 }
0x1299   :  { %4880 = vtanh.f32 %v2677_v24  ;;  %v2622_v19 = vpop.permute.xlu0 %2621  ;;  %v2624_v53 = vpop.permute.xlu1 %2623 }
0x129a   :  { %v4873_v11 = vpop.eup %4872  ;;  %v2630_v32 = vadd.f32 %v2622_v19, %v6658_v52  ;;  %v2631_v39 = vadd.f32 %v2624_v53, %v6663_v5 }
0x129b   :  { %2687 = vrot.lane.b32.xlu1 %v4873_v11, %s5173_s20 }
0x129c   :  { %v3749_v6 = vmul.f32 -1.442695, %v2630_v32  ;;  %v3750_v27 = vmul.f32 -1.442695, %v2631_v39 }
0x129d   :  { %v2626_v1 = vpop.permute.xlu0 %2625 }
0x129e   :  { %v4875_v34 = vpop.eup %4874  ;;  %4882 = vpow2.f32 %v3749_v6  ;;  %v2632_v58 = vadd.f32 %v2626_v1, %v6669_v20 }
0x129f   :  { %2689 = vrot.lane.b32.xlu0 %v4875_v34, %s5173_s20  ;;  %v4877_v26 = vpop.eup %4876  ;;  %4884 = vpow2.f32 %v3750_v27  ;;  %v7064_v27 = vld [vmem:[#allocation27_spill] sm:$0xff] }
0x12a0   :  { %v3751_v63 = vmul.f32 -1.442695, %v2632_v58 }
0x12a2   :  { %v4879_v0 = vpop.eup %4878  ;;  %4886 = vpow2.f32 %v3751_v63 }
0x12a3   :  { %v4881_v14 = vpop.eup %4880  ;;  %v2863_v51 = vmul.f32 %v4879_v0, %v4877_v26  ;;  %v7060_v0 = vld [vmem:[#allocation25_spill] sm:$0xff] }
0x12a4   :  { %2691 = vrot.lane.b32.xlu1 %v4881_v14, %s5173_s20 }
0x12a5   :  { %2865 = vrot.lane.b32.xlu0 %v2863_v51, %s5175_s6  ;;  %v7061_v51 = vld [vmem:[#allocation26_spill] sm:$0xff] }
0x12a8   :  { %v4883_v54 = vpop.eup %4882 }
0x12a9   :  { %v2642_v30 = vadd.f32 1.0, %v4883_v54  ;;  %v4885_v18 = vpop.eup %4884 }
0x12aa   :  { %v2643_v38 = vadd.f32 1.0, %v4885_v18 }
0x12ab   :  { %4888 = vrcp.f32 %v2642_v30 }
0x12ac   :  { %v4887_v41 = vpop.eup %4886  ;;  %4890 = vrcp.f32 %v2643_v38 }
0x12ad   :  { %v2644_v52 = vadd.f32 1.0, %v4887_v41 }
0x12af   :  { %4892 = vrcp.f32 %v2644_v52 }
0x12b5   :  { %v4889_v62 = vpop.eup %4888 }
0x12b6   :  { %v2681_v5 = vsub.f32 1.0, %v4889_v62  ;;  %v4891_v56 = vpop.eup %4890  ;;  %v2699_v43 = vmul.f32 %v4889_v62, %v6289_v8 }
0x12b7   :  { %v2682_v20 = vsub.f32 1.0, %v4891_v56  ;;  %v2700_v24 = vmul.f32 %v4891_v56, %v6291_v29 }
0x12b9   :  { %v4893_v34 = vpop.eup %4892 }
0x12ba   :  { %v2683_v53 = vsub.f32 1.0, %v4893_v34  ;;  %v2701_v6 = vmul.f32 %v4893_v34, %v6296_v17 }
0x130d   :  { %v2688_v2 = vpop.permute.xlu1 %2687 }
0x130e   :  { %v2696_v7 = vmul.f32 %v2688_v2, %v2681_v5 }
0x1310   :  { %v2702_v46 = vadd.f32 %v2699_v43, %v2696_v7 }
0x1311   :  { %v2690_v4 = vpop.permute.xlu0 %2689 }
0x1312   :  { %v2697_v11 = vmul.f32 %v2690_v4, %v2682_v20  ;;  %v2705_v14 = vsel %vm466_vm3, %v7060_v0, %v2702_v46 }
0x1314   :  { %v2703_v26 = vadd.f32 %v2700_v24, %v2697_v11 }
0x1316   :  { %v2706_v19 = vsel %vm466_vm3, %v7061_v51, %v2703_v26  ;;  %v2692_v32 = vpop.permute.xlu1 %2691 }
0x1317   :  { %v6718_v39 = vpack.c.bf16 %v2706_v19, %v2705_v14  ;;  %v2698_v29 = vmul.f32 %v2692_v32, %v2683_v53  ;;  %v2866_v17 = vpop.permute.xlu0 %2865 }
0x1319   :  { %4577 = vmatpush3.bf16.xpose.msk.msra.mxu0 %vm6714_vm7, %v6718_v39  ;;  %4632 = vmatpush3.bf16.xpose.msk.msra.mxu1 %vm6714_vm7, %v6718_v39  ;;  %v2704_v1 = vadd.f32 %v2701_v6, %v2698_v29 }
0x131a   :  { %4231 = vmatprep.subr.mxu0 %v7024_v47  ;;  %4249 = vmatprep.subr.mxu1 %v7024_v47 }
0x131b   :  { %v6731_v58 = vsel %vm466_vm3, %v7064_v27, %v2704_v1 }
0x1321   :  { %4232 = vmatpush3.xpose.msk.msra.mxu0 %vm473_vm4, %v6731_v58  ;;  %4250 = vmatpush3.xpose.msk.msra.mxu1 %vm473_vm4, %v6731_v58 }
0x1322   :  { %4578 = vmatprep.subr.bf16.mxu0 %v7019_v61  ;;  %4633 = vmatprep.subr.bf16.mxu1 %v7019_v61 }
0x1324   :  { %4234 = vmatmul.mubr.msk.f32.vlgmr.msra.gmra.mrb[58].mxu0 %vm473_vm4, %v2866_v17 }
0x1325   :  { %4580 = vmatpush3.bf16.msra.mxu0 %v6718_v39  ;;  %4242 = vmatprep.mubr.msk.f32.mxu0 %vm5163_vm0, %v7024_v47 }
0x1326   :  { %4240 = vmatprep.subr.mxu0 %v7024_v47 }
0x1329   :  { %4241 = vmatpush3.msra.mxu0 %v6731_v58 }
0x132a   :  { %4582 = vmatprep.subr.bf16.mxu0 %v6429_v22 }
0x13f7   :  { %v2944_v63 = vpop.f32.mrb[58].mxu0 }
0x13f8   :  { %v4235_v54 = vpop.f32.mrb[59].mxu0  ;;  %v2949_v30 = vsel %vm2948_vm8, %v2944_v63, -inf }
0x13f9   :  { %2950 = vmax.xlane.f32.xlu1 %v2949_v30 }
0x1486   :  { %v2951_v18 = vpop.xlane.xlu1 %2950 }
0x1487   :  { %v2952_v38 = vsub.f32 %v2944_v63, %v2951_v18 }
0x1489   :  { %v2953_v41 = vmul.f32 1.442695, %v2952_v38 }
0x148b   :  { %4894 = vpow2.f32 %v2953_v41 }
0x1495   :  { %v4895_v52 = vpop.eup %4894 }
0x1496   :  { %v2955_v62 = vsel %vm2948_vm8, %v4895_v52, 0.0 }
0x1497   :  { %2956 = vadd.xlane.f32.xlu0 %v2955_v62 }
0x1524   :  { %v2957_v5 = vpop.xlane.xlu0 %2956 }
0x1525   :  { %4896 = vrcp.f32 %v2957_v5 }
0x152f   :  { %v4897_v56 = vpop.eup %4896 }
0x1530   :  { %v2959_v2 = vmul.f32 %v4897_v56, %v4895_v52 }
0x1532   :  { %4243 = vmatmul.mubr.msk.f32.vlgmr.msra.gmra.mrb[60].mxu0 %vm511_vm2, %v2959_v2 }
0x1533   :  { %3759 = vmatprep.mubr.msk.f32.mxu0 %vm473_vm4, %v2866_v17  ;;  %4584 = vmatpush1.bf16.msra.mxu0 %v6440_v21 }
0x1534   :  { %4586 = vmatprep.subr.bf16.mxu0 %v6442_v42 }
0x1537   :  { %4588 = vmatpush1.bf16.msra.mxu0 %v6458_v33 }
0x1538   :  { %4590 = vmatprep.subr.bf16.mxu0 %v6461_v36 }
0x153b   :  { %4592 = vmatpush1.bf16.msra.mxu0 %v6476_v40 }
0x153c   :  { %4594 = vmatprep.subr.bf16.mxu0 %v6479_v23 }
0x153f   :  { %4596 = vmatpush1.bf16.msra.mxu0 %v6494_v48 }
0x1540   :  { %4598 = vmatprep.subr.bf16.mxu0 %v6497_v16 }
0x1543   :  { %4600 = vmatpush1.bf16.msra.mxu0 %v6512_v15 }
0x1544   :  { %4602 = vmatprep.subr.bf16.mxu0 %v6515_v59 }
0x1547   :  { %4604 = vmatpush1.bf16.msra.mxu0 %v6530_v28 }
0x1548   :  { %4606 = vmatprep.subr.bf16.mxu0 %v6533_v49 }
0x154b   :  { %4608 = vmatpush1.bf16.msra.mxu0 %v6548_v9 }
0x154c   :  { %4610 = vmatprep.subr.bf16.mxu0 %v6551_v31 }
0x154f   :  { %4612 = vmatpush1.bf16.msra.mxu0 %v6566_v25 }
0x1550   :  { %4614 = vmatprep.subr.bf16.mxu0 %v6569_v57 }
0x1553   :  { %4616 = vmatpush1.bf16.msra.mxu0 %v6584_v13 }
0x1554   :  { %4618 = vmatprep.subr.bf16.mxu0 %v6587_v60 }
0x1557   :  { %4620 = vmatpush1.bf16.msra.mxu0 %v6602_v37 }
0x1558   :  { %4622 = vmatprep.subr.bf16.mxu0 %v6605_v3 }
0x155b   :  { %4624 = vmatpush1.bf16.msra.mxu0 %v6620_v45 }
0x155c   :  { %4626 = vmatprep.subr.bf16.mxu0 %v6623_v55 }
0x155f   :  { %4628 = vmatpush1.bf16.msra.mxu0 %v6632_v50 }
0x1560   :  { %4684 = vmatprep.subr.bf16.mxu0 %v7019_v61 }
0x1605   :  { %v3029_v7 = vpop.f32.mrb[60].mxu0 }
0x1606   :  { %3035 = vrot.lane.b32.xlu0 %v3029_v7, %s5175_s6  ;;  %v4244_v43 = vpop.f32.mrb[61].mxu0 }
0x1678   :  { %v3036_v20 = vpop.permute.xlu0 %3035 }
0x1679   :  { %v3038_v4 = vsel %vm473_vm4, %v2866_v17, %v3036_v20 }
0x167a   :  { %3104 = vmatmul.mubr.f32.vlgmr.msra.gmra.mrb[62].mxu0 %v3038_v4 }
0x167b   :  { %4687 = vmatpush3.bf16.xpose.msk.msra.mxu0 %vm6714_vm7, %v6718_v39  ;;  %4269 = vmatprep.mubr.msk.f32.mxu0 %vm5163_vm0, %v7024_v47 }
0x167c   :  { %4267 = vmatprep.subr.mxu0 %v7024_v47 }
0x1683   :  { %4268 = vmatpush3.xpose.msk.msra.mxu0 %vm473_vm4, %v6731_v58 }
0x1684   :  { %4688 = vmatprep.subr.bf16.mxu0 %v7019_v61 }
0x174d   :  { %v3105_v46 = vpop.f32.mrb[62].mxu0 }
0x174e   :  { %v3106_v24 = vadd.f32 %v3105_v46, %v6654_v35  ;;  %v3107_v11 = vpop.f32.mrb[63].mxu0 }
0x174f   :  { %v3108_v26 = vadd.f32 %v3107_v11, %v6673_v12 }
0x1750   :  { %v3760_v34 = vmul.f32 -1.442695, %v3106_v24 }
0x1751   :  { %v3761_v53 = vmul.f32 -1.442695, %v3108_v26 }
0x1752   :  { %4898 = vpow2.f32 %v3760_v34 }
0x1753   :  { %4900 = vtanh.f32 %v3108_v26 }
0x175c   :  { %v4899_v0 = vpop.eup %4898 }
0x175d   :  { %v3113_v14 = vadd.f32 1.0, %v4899_v0  ;;  %v4901_v51 = vpop.eup %4900 }
0x175f   :  { %4902 = vrcp.f32 %v3113_v14  ;;  %v3556_v14 = vld [vmem:[%s6933_s13 + $0x8] sm:$0xff] }
0x1760   :  { %4904 = vpow2.f32 %v3761_v53 }
0x1769   :  { %v4903_v19 = vpop.eup %4902 }
0x176a   :  { %v3124_v32 = vmul.f32 %v4903_v19, %v4901_v51  ;;  %v4905_v8 = vpop.eup %4904  ;;  %v3123_v6 = vmul.f32 %v4903_v19, %v6695_v10  ;;  %v3557_v51 = vld [vmem:[%s6933_s13 + $0x10] sm:$0xff] }
0x176b   :  { %v3120_v29 = vadd.f32 1.0, %v4905_v8  ;;  %v3560_v8 = vld [vmem:[%s6933_s13 + $0x28] sm:$0xff] }
0x176c   :  { %3126 = vrot.lane.b32.xlu1 %v3124_v32, %s5175_s6  ;;  %v3558_v32 = vld [vmem:[%s6933_s13 + $0x18] sm:$0xff] }
0x176d   :  { %4906 = vrcp.f32 %v3120_v29  ;;  %v4695_v53 = vpack.c.bf16 %v3558_v32, %v3557_v51 }
0x1777   :  { %v4907_v17 = vpop.eup %4906 }
0x17de   :  { %v3127_v1 = vpop.permute.xlu1 %3126 }
0x17df   :  { %v6789_v27 = vadd.f32 %v3127_v1, %v3123_v6  ;;  %v3561_v6 = vld [vmem:[%s6933_s13 + $0x30] sm:$0xff]  ;;  %v3562_v1 = vld [vmem:[%s6933_s13 + $0x38] sm:$0xff] }
0x17e1   :  { %4908 = vtanh.f32 %v6789_v27 }
0x17eb   :  { %v4909_v63 = vpop.eup %4908 }
0x17ec   :  { %v3131_v54 = vmul.f32 %v4909_v63, %v4907_v17  ;;  %v3563_v17 = vld [vmem:[%s6933_s13 + $0x40] sm:$0xff]  ;;  %v3564_v63 = vld [vmem:[%s6933_s13 + $0x48] sm:$0xff] }
0x17ee   :  { %3133 = vrot.lane.b32.xlu1 %v3131_v54, %s5175_s6  ;;  %v4704_v54 = vpack.c.bf16 %v3564_v63, %v3563_v17 }
0x1860   :  { %v3134_v30 = vpop.permute.xlu1 %3133 }
0x1861   :  { %4252 = vmatmul.mubr.msk.f32.vlgmr.msra.gmra.mrb[58].mxu1 %vm473_vm4, %v3134_v30 }
0x1862   :  { %4635 = vmatpush3.bf16.msra.mxu1 %v6718_v39  ;;  %4260 = vmatprep.mubr.msk.f32.mxu1 %vm5163_vm0, %v7024_v47 }
0x1863   :  { %4258 = vmatprep.subr.mxu1 %v7024_v47 }
0x1866   :  { %4259 = vmatpush3.msra.mxu1 %v6731_v58 }
0x1867   :  { %4637 = vmatprep.subr.bf16.mxu1 %v6429_v22 }
0x1934   :  { %v3203_v10 = vpop.f32.mrb[58].mxu1 }
0x1935   :  { %v4253_v18 = vpop.f32.mrb[59].mxu1  ;;  %v3207_v38 = vsel %vm2948_vm8, %v3203_v10, -inf }
0x1936   :  { %3208 = vmax.xlane.f32.xlu0 %v3207_v38  ;;  %v3567_v38 = vld [vmem:[%s6933_s13 + $0x60] sm:$0xff] }
0x19c3   :  { %v3209_v41 = vpop.xlane.xlu0 %3208 }
0x19c4   :  { %v3210_v52 = vsub.f32 %v3203_v10, %v3209_v41  ;;  %v3566_v10 = vld [vmem:[%s6933_s13 + $0x58] sm:$0xff]  ;;  %v3568_v41 = vld [vmem:[%s6933_s13 + $0x68] sm:$0xff] }
0x19c6   :  { %v3211_v62 = vmul.f32 1.442695, %v3210_v52  ;;  %v4710_v52 = vpack.c.bf16 %v3568_v41, %v3567_v38 }
0x19c8   :  { %4910 = vpow2.f32 %v3211_v62  ;;  %v3569_v62 = vld [vmem:[%s6933_s13 + $0x70] sm:$0xff] }
0x19d2   :  { %v4911_v5 = vpop.eup %4910 }
0x19d3   :  { %v3213_v56 = vsel %vm2948_vm8, %v4911_v5, 0.0 }
0x19d4   :  { %3214 = vadd.xlane.f32.xlu1 %v3213_v56 }
0x1a61   :  { %v3215_v2 = vpop.xlane.xlu1 %3214 }
0x1a62   :  { %4912 = vrcp.f32 %v3215_v2  ;;  %v3643_v2 = vld [vmem:[#allocation2] sm:$0x1] }
0x1a6c   :  { %v4913_v7 = vpop.eup %4912 }
0x1a6d   :  { %v3217_v43 = vmul.f32 %v4913_v7, %v4911_v5  ;;  %v3570_v5 = vld [vmem:[%s6933_s13 + $0x78] sm:$0xff] }
0x1a6e   :  { %v4713_v56 = vpack.c.bf16 %v3570_v5, %v3569_v62 }
0x1a6f   :  { %4261 = vmatmul.mubr.msk.f32.vlgmr.msra.gmra.mrb[60].mxu1 %vm511_vm2, %v3217_v43 }
0x1a70   :  { %3767 = vmatprep.mubr.msk.f32.mxu1 %vm473_vm4, %v3134_v30  ;;  %4639 = vmatpush1.bf16.msra.mxu1 %v6440_v21 }
0x1a71   :  { %4641 = vmatprep.subr.bf16.mxu1 %v6442_v42 }
0x1a74   :  { %4643 = vmatpush1.bf16.msra.mxu1 %v6458_v33 }
0x1a75   :  { %4645 = vmatprep.subr.bf16.mxu1 %v6461_v36 }
0x1a78   :  { %4647 = vmatpush1.bf16.msra.mxu1 %v6476_v40 }
0x1a79   :  { %4649 = vmatprep.subr.bf16.mxu1 %v6479_v23 }
0x1a7c   :  { %4651 = vmatpush1.bf16.msra.mxu1 %v6494_v48 }
0x1a7d   :  { %4653 = vmatprep.subr.bf16.mxu1 %v6497_v16 }
0x1a80   :  { %4655 = vmatpush1.bf16.msra.mxu1 %v6512_v15 }
0x1a81   :  { %4657 = vmatprep.subr.bf16.mxu1 %v6515_v59 }
0x1a84   :  { %4659 = vmatpush1.bf16.msra.mxu1 %v6530_v28 }
0x1a85   :  { %4661 = vmatprep.subr.bf16.mxu1 %v6533_v49 }
0x1a88   :  { %4663 = vmatpush1.bf16.msra.mxu1 %v6548_v9 }
0x1a89   :  { %4665 = vmatprep.subr.bf16.mxu1 %v6551_v31 }
0x1a8c   :  { %4667 = vmatpush1.bf16.msra.mxu1 %v6566_v25 }
0x1a8d   :  { %4669 = vmatprep.subr.bf16.mxu1 %v6569_v57 }
0x1a90   :  { %4671 = vmatpush1.bf16.msra.mxu1 %v6584_v13 }
0x1a91   :  { %4673 = vmatprep.subr.bf16.mxu1 %v6587_v60 }
0x1a94   :  { %4675 = vmatpush1.bf16.msra.mxu1 %v6602_v37 }
0x1a95   :  { %4677 = vmatprep.subr.bf16.mxu1 %v6605_v3 }
0x1a98   :  { %4679 = vmatpush1.bf16.msra.mxu1 %v6620_v45 }
0x1a99   :  { %4681 = vmatprep.subr.bf16.mxu1 %v6623_v55 }
0x1a9c   :  { %4683 = vmatpush1.bf16.msra.mxu1 %v6632_v50 }
0x1b42   :  { %v3287_v22 = vpop.f32.mrb[60].mxu1 }
0x1b43   :  { %3293 = vrot.lane.b32.xlu0 %v3287_v22, %s5175_s6  ;;  %v4262_v21 = vpop.f32.mrb[61].mxu1 }
0x1bb5   :  { %v3294_v42 = vpop.permute.xlu0 %3293 }
0x1bb6   :  { %v3296_v33 = vsel %vm473_vm4, %v3134_v30, %v3294_v42  ;;  %v3565_v30 = vld [vmem:[%s6933_s13 + $0x50] sm:$0xff] }
0x1bb7   :  { %3362 = vmatmul.mubr.f32.vlgmr.msra.gmra.mrb[62].mxu1 %v3296_v33  ;;  %v4707_v18 = vpack.c.bf16 %v3566_v10, %v3565_v30  ;;  %v3571_v33 = vld [vmem:[#allocation15] sm:$0x1] }
0x1c8a   :  { %v3363_v36 = vpop.f32.mrb[62].mxu1 }
0x1c8b   :  { %v3364_v40 = vadd.f32 %v3363_v36, %v6654_v35  ;;  %v3365_v23 = vpop.f32.mrb[63].mxu1 }
0x1c8c   :  { %v3366_v16 = vadd.f32 %v3365_v23, %v6673_v12 }
0x1c8d   :  { %v3768_v48 = vmul.f32 -1.442695, %v3364_v40 }
0x1c8e   :  { %v3769_v31 = vmul.f32 -1.442695, %v3366_v16 }
0x1c8f   :  { %4914 = vpow2.f32 %v3768_v48 }
0x1c90   :  { %4916 = vtanh.f32 %v3366_v16 }
0x1c99   :  { %v4915_v15 = vpop.eup %4914 }
0x1c9a   :  { %v3371_v59 = vadd.f32 1.0, %v4915_v15  ;;  %v4917_v28 = vpop.eup %4916 }
0x1c9c   :  { %4918 = vrcp.f32 %v3371_v59 }
0x1c9d   :  { %4920 = vpow2.f32 %v3769_v31 }
0x1ca6   :  { %v4919_v49 = vpop.eup %4918 }
0x1ca7   :  { %v3382_v9 = vmul.f32 %v4919_v49, %v4917_v28  ;;  %v4921_v25 = vpop.eup %4920  ;;  %v3381_v13 = vmul.f32 %v4919_v49, %v6789_v27  ;;  %v4701_v27 = vpack.c.bf16 %v3562_v1, %v3561_v6 }
0x1ca8   :  { %v3378_v57 = vadd.f32 1.0, %v4921_v25 }
0x1ca9   :  { %3384 = vrot.lane.b32.xlu1 %v3382_v9, %s5175_s6 }
0x1caa   :  { %4922 = vrcp.f32 %v3378_v57 }
0x1cb4   :  { %v4923_v3 = vpop.eup %4922 }
0x1d1b   :  { %v3385_v60 = vpop.permute.xlu1 %3384 }
0x1d1c   :  { %v3387_v37 = vadd.f32 %v3385_v60, %v3381_v13 }
0x1d1e   :  { %4924 = vtanh.f32 %v3387_v37 }
0x1d28   :  { %v4925_v45 = vpop.eup %4924 }
0x1d29   :  { %v3389_v55 = vmul.f32 %v4925_v45, %v4923_v3 }
0x1d2b   :  { %3391 = vrot.lane.b32.xlu0 %v3389_v55, %s5175_s6 }
0x1d9d   :  { %v6834_v50 = vpop.permute.xlu0 %3391 }
0x1d9e   :  { %4270 = vmatmul.mubr.msk.f32.vlgmr.msra.gmra.mrb[64].mxu0 %vm473_vm4, %v6834_v50 }
0x1d9f   :  { %4690 = vmatpush3.bf16.msra.mxu0 %v6718_v39  ;;  %4278 = vmatprep.mubr.msk.f32.mxu0 %vm5163_vm0, %v7024_v47 }
0x1da0   :  { %4276 = vmatprep.subr.mxu0 %v7024_v47 }
0x1da3   :  { %4277 = vmatpush3.msra.mxu0 %v6731_v58  ;;  %v3555_v58 = vld [vmem:[%s6933_s13] sm:$0xff] }
0x1da4   :  { %4691 = vmatprep.subr.bf16.mxu0 %v7019_v61  ;;  %v4692_v19 = vpack.c.bf16 %v3556_v14, %v3555_v58 }
0x1e71   :  { %v3461_v35 = vpop.f32.mrb[64].mxu0 }
0x1e72   :  { %v4271_v12 = vpop.f32.mrb[65].mxu0  ;;  %v3465_v20 = vsel %vm2948_vm8, %v3461_v35, -inf }
0x1e73   :  { %3466 = vmax.xlane.f32.xlu1 %v3465_v20 }
0x1e84   :  { %3646 = vperm.xlu1 %4790, %v3643_v2  }
0x1f00   :  { %v3467_v4 = vpop.xlane.xlu1 %3466 }
0x1f01   :  { %v3468_v46 = vsub.f32 %v3461_v35, %v3467_v4 }
0x1f03   :  { %v3469_v24 = vmul.f32 1.442695, %v3468_v46 }
0x1f04   :  { %v3647_v42 = vpop.permute.xlu1 %3646 }
0x1f05   :  { %4926 = vpow2.f32 %v3469_v24  ;;  %v3652_v36 = vrot.slane %v3647_v42, %v7057_v44 }
0x1f0f   :  { %v4927_v11 = vpop.eup %4926 }
0x1f10   :  { %v3471_v39 = vsel %vm2948_vm8, %v4927_v11, 0.0 }
0x1f11   :  { %3472 = vadd.xlane.f32.xlu0 %v3471_v39 }
0x1f9e   :  { %v3473_v34 = vpop.xlane.xlu0 %3472 }
0x1f9f   :  { %4928 = vrcp.f32 %v3473_v34 }
0x1fa9   :  { %v4929_v26 = vpop.eup %4928 }
0x1faa   :  { %v3475_v0 = vmul.f32 %v4929_v26, %v4927_v11 }
0x1fac   :  { %4279 = vmatmul.mubr.msk.f32.vlgmr.msra.gmra.mrb[66].mxu0 %vm511_vm2, %v3475_v0 }
0x1fad   :  { %4313 = vmatprep.mubr.msk.f32.mxu0 %vm5163_vm0, %v7024_v47  ;;  %4693 = vmatpush3.bf16.msra.mxu0 %v4692_v19  ;;  %v3559_v47 = vld [vmem:[%s6933_s13 + $0x20] sm:$0xff]  ;;  %s5176_s13 = smov [#allocation17]  }
0x1fae   :  { %4694 = vmatprep.subr.bf16.mxu0 %v7019_v61  ;;  %v4698_v29 = vpack.c.bf16 %v3560_v8, %v3559_v47  ;;  %s3662_s3 = sshll.u32 %s5176_s13, 4  ;;  %s3663_s3 = int_to_ptr.vmem [resolvable:$true] %s3662_s3 }
0x1faf   :  { %s5120_s23 = scalar_lea.vmem %s3663_s3, 32  ;;  %p5121_p9 = scmp.lt.s32.totalorder %s3663_s3, %s3663_s3 }
0x1fb1   :  { %4696 = vmatpush3.bf16.msra.mxu0 %v4695_v53 }
0x1fb2   :  { %4697 = vmatprep.subr.bf16.mxu0 %v7019_v61 }
0x1fb5   :  { %4699 = vmatpush3.bf16.msra.mxu0 %v4698_v29 }
0x1fb6   :  { %4700 = vmatprep.subr.bf16.mxu0 %v7019_v61 }
0x1fb9   :  { %4702 = vmatpush3.bf16.msra.mxu0 %v4701_v27 }
0x1fba   :  { %4703 = vmatprep.subr.bf16.mxu0 %v7019_v61 }
0x1fbd   :  { %4705 = vmatpush3.bf16.msra.mxu0 %v4704_v54 }
0x1fbe   :  { %4706 = vmatprep.subr.bf16.mxu0 %v7019_v61 }
0x1fc1   :  { %4708 = vmatpush3.bf16.msra.mxu0 %v4707_v18 }
0x1fc2   :  { %4709 = vmatprep.subr.bf16.mxu0 %v7019_v61 }
0x1fc5   :  { %4711 = vmatpush3.bf16.msra.mxu0 %v4710_v52 }
0x1fc6   :  { %4712 = vmatprep.subr.bf16.mxu0 %v7019_v61 }
0x1fc9   :  { %4714 = vmatpush3.bf16.msra.mxu0 %v4713_v56 }
0x207f   :  { %v3545_v7 = vpop.f32.mrb[66].mxu0 }
0x2080   :  { %3551 = vrot.lane.b32.xlu0 %v3545_v7, %s5175_s6  ;;  %v4280_v43 = vpop.f32.mrb[67].mxu0  ;;  %s5116_s6 = scalar_lea.vmem %s3663_s3, 16 }
0x2081   :  { %p5117_p8 = scmp.ne.s32.totalorder %s3663_s3, %s5116_s6  ;;  %p5122_p10 = scmp.lt.s32.totalorder %s5120_s23, %s5116_s6 }
0x2083   :  { %p5123_p11 = por %p5122_p10, %p5121_p9 }
0x2085   :  { %p5124_p12 = pnand %p5123_p11, %p5117_p8 }
0x20f2   :  { %v3552_v22 = vpop.permute.xlu0 %3551 }
0x20f3   :  { %v3554_v21 = vsel %vm473_vm4, %v6834_v50, %v3552_v22 }
0x20f4   :  { %4314 = vmatmul.mubr.f32.vlgmr.msra.gmra.mrb[68].mxu0 %v3554_v21 }
0x21c7   :  { %v3638_v40 = vpop.f32.mrb[68].mxu0 }
0x21c8   :  { %v3639_v23 = vadd.f32 %v3638_v40, %v3571_v33  ;;  %v4315_v48 = vpop.f32.mrb[69].mxu0 }
0x21ca   :  { %v3653_v61 = vmul.f32 %v3652_v36, %v3639_v23  ;;  %vm3642_vm9 = vcmp.ge.f32.partialorder %v3639_v23, 0.0 }
0x21cc   :  { %v3654_v16 = vsel %vm3642_vm9, %v3639_v23, %v3653_v61 }
0x21cd   :  { %3655 = vst [vmem:[#allocation17] sm:$0x1] %v3654_v16 }
0x21ce   :  { %5127 = shalt.err (!%p5124_p12)
}
0x21cf   :  { %s5128_s28 = scalar_lea.hbm %s6936_s16, 16 }
0x21d0   :  { %p5129_p13 = scmp.ne.s32.totalorder %s6936_s16, %s5128_s28  ;;  %p5132_p0 = scmp.lt.u32.totalorder %s5128_s28, %s6936_s16 }
0x21d2   :  { %p5134_p1 = pnand %p5132_p0, %p5129_p13 }
0x21d4   :  { %5137 = shalt.err (!%p5134_p1)
}
0x21d5   :  { %3665 = dma.vmem_to_hbm [thread:$0]  %s3663_s3, 16, %s6936_s16, [#allocation5]  }
0x21d6   :  { %5148 = dma.done.wait [#allocation5], 16  }
0x21d7   :  { %5149 = vsyncadd [#allocation5], 4294967280 }
0x21d8   :  { %3669 = vsyncpa [#allocation4], 1 }
0x21d9   :  { %3670 = vsyncpa [#allocation7], 1 }
0x21da   :  { %3671 = vsyncpa [#allocation10], 1 }
0x21db   :  { %3672 = vsyncpa [#allocation13], 1 }
0x21dc   :  { %3673 = vsyncpa [#allocation16], 1 }
0x21dd   :  { %3674 = vsyncpa [#allocation5], 1 }

</bundles_post_ra>
